<compile_context>
chip_gen: v7x
topology: tpu7x:2x2x1
jax: 0.10.0
libtpu: 0.0.40
codegen_flags: <defaults>
</compile_context>

<pallas_src>
import functools

import jax
import jax.numpy as jnp
from jax import lax
from jax.experimental import pallas as pl
from jax.experimental.pallas import tpu as pltpu

EPS = 1e-5
VMEM_LIMIT_BYTES = 48 * 1024 * 1024          # sized for v7x's 64 MiB physical VMEM
LANE = 128


# ------------------------------ small helpers ------------------------------ #

def _rup(a, m):
    return (a + m - 1) // m * m


def _row_tile(m, tile_rows):
    tm = min(tile_rows, _rup(m, 8))
    return tm, _rup(m, tm)


def _pad_rows(a, mp):
    pad = mp - a.shape[0]
    return a if pad == 0 else jnp.pad(a, ((0, pad), (0, 0)))


def _pad_cols(a, cp):
    pad = cp - a.shape[-1]
    if pad == 0:
        return a
    return jnp.pad(a, [(0, 0)] * (a.ndim - 1) + [(0, pad)])


def _mosaic(semantics):
    return pltpu.CompilerParams(dimension_semantics=semantics,
                                vmem_limit_bytes=VMEM_LIMIT_BYTES)


def _cost(flops, bytes_accessed, transcendentals=0):
    return pl.CostEstimate(flops=int(flops), transcendentals=int(transcendentals),
                           bytes_accessed=int(bytes_accessed))


def _bn_from_stats(t, stats, gamma, beta, m_real):
    """Apply training-mode BN given (sum, sumsq) stats accumulated over M rows."""
    inv_m = jnp.float32(1.0 / m_real)
    mean = stats[0:1, :] * inv_m
    var = jnp.maximum(stats[1:2, :] * inv_m - mean * mean, 0.0)   # biased variance
    return (t - mean) * (lax.rsqrt(var + EPS) * gamma) + beta


# -------------------------------- kernels ---------------------------------- #

def _matmul_stats_kernel(x_ref, w_ref, t_ref, st_ref, *, m_real, tm):
    """Pass 1: t = x @ w ; accumulate per-channel sum / sumsq over real rows."""
    i = pl.program_id(0)
    t = jnp.dot(x_ref[...], w_ref[...], preferred_element_type=jnp.float32)
    t_ref[...] = t.astype(t_ref.dtype)

    @pl.when(i == 0)
    def _():
        st_ref[...] = jnp.zeros_like(st_ref)

    row = i * tm + lax.broadcasted_iota(jnp.int32, (tm, 1), 0)
    tmsk = jnp.where(row < m_real, t, 0.0)          # padded rows do not pollute stats
    st_ref[...] += jnp.concatenate(
        [jnp.sum(tmsk, axis=0, keepdims=True),
         jnp.sum(tmsk * tmsk, axis=0, keepdims=True)], axis=0)


def _matmul2_stats_kernel(x_ref, w_ref, xs_ref, ws_ref, t_ref, st_ref, sts_ref,
                          *, m_real, tm):
    """Pass 1 for conv3 fused with the projection-shortcut conv's statistics.

    Writes only the conv3 pre-BN activation; the shortcut matmul is re-computed
    in the final kernel (cheaper than round-tripping it through HBM)."""
    i = pl.program_id(0)
    t = jnp.dot(x_ref[...], w_ref[...], preferred_element_type=jnp.float32)
    tsc = jnp.dot(xs_ref[...], ws_ref[...], preferred_element_type=jnp.float32)
    t_ref[...] = t.astype(t_ref.dtype)

    @pl.when(i == 0)
    def _():
        st_ref[...] = jnp.zeros_like(st_ref)
        sts_ref[...] = jnp.zeros_like(sts_ref)

    row = i * tm + lax.broadcasted_iota(jnp.int32, (tm, 1), 0)
    mask = row < m_real
    tmsk = jnp.where(mask, t, 0.0)
    smsk = jnp.where(mask, tsc, 0.0)
    st_ref[...] += jnp.concatenate(
        [jnp.sum(tmsk, axis=0, keepdims=True),
         jnp.sum(tmsk * tmsk, axis=0, keepdims=True)], axis=0)
    sts_ref[...] += jnp.concatenate(
        [jnp.sum(smsk, axis=0, keepdims=True),
         jnp.sum(smsk * smsk, axis=0, keepdims=True)], axis=0)


def _bn_act_kernel(t_ref, st_ref, g_ref, b_ref, o_ref, *, m_real, relu):
    """Pass 2: normalize with the precomputed stats (+ optional ReLU)."""
    y = _bn_from_stats(t_ref[...].astype(jnp.float32), st_ref[...],
                       g_ref[...], b_ref[...], m_real)
    if relu:
        y = jnp.maximum(y, 0.0)
    o_ref[...] = y.astype(o_ref.dtype)


def _final_proj_kernel(t3_ref, st3_ref, g3_ref, b3_ref,
                       xs_ref, ws_ref, sts_ref, gs_ref, bs_ref, o_ref, *, m_real):
    """relu( relu(bn3(conv3)) + bn_s(conv_s(x)) ) — shortcut dot fused in-kernel."""
    y3 = jnp.maximum(_bn_from_stats(t3_ref[...].astype(jnp.float32), st3_ref[...],
                                    g3_ref[...], b3_ref[...], m_real), 0.0)
    ts = jnp.dot(xs_ref[...], ws_ref[...], preferred_element_type=jnp.float32)
    ysc = _bn_from_stats(ts, sts_ref[...], gs_ref[...], bs_ref[...], m_real)
    o_ref[...] = jnp.maximum(y3 + ysc, 0.0).astype(o_ref.dtype)


def _final_identity_kernel(t3_ref, st3_ref, g3_ref, b3_ref, sc_ref, o_ref, *, m_real):
    """relu( relu(bn3(conv3)) + x ) for the identity shortcut."""
    y3 = jnp.maximum(_bn_from_stats(t3_ref[...].astype(jnp.float32), st3_ref[...],
                                    g3_ref[...], b3_ref[...], m_real), 0.0)
    o_ref[...] = jnp.maximum(y3 + sc_ref[...].astype(jnp.float32), 0.0).astype(o_ref.dtype)


# --------------------------- pallas_call wrappers --------------------------- #

def _matmul_stats(x, w, *, tm, m_real, t_dtype):
    mp, k = x.shape
    _, c = w.shape
    ti = jnp.dtype(t_dtype).itemsize
    kernel = functools.partial(_matmul_stats_kernel, m_real=m_real, tm=tm)
    return pl.pallas_call(
        kernel,
        grid=(mp // tm,),
        in_specs=[pl.BlockSpec((tm, k), lambda i: (i, 0)),
                  pl.BlockSpec((k, c), lambda i: (0, 0))],
        out_specs=(pl.BlockSpec((tm, c), lambda i: (i, 0)),
                   pl.BlockSpec((2, c), lambda i: (0, 0))),
        out_shape=(jax.ShapeDtypeStruct((mp, c), t_dtype),
                   jax.ShapeDtypeStruct((2, c), jnp.float32)),
        compiler_params=_mosaic(("arbitrary",)),     # stats accumulate across steps
        cost_estimate=_cost(2 * mp * k * c,
                            mp * k * x.dtype.itemsize + k * c * w.dtype.itemsize
                            + mp * c * ti + 2 * c * 4),
    )(x, w)


def _matmul2_stats(x, w, xs, ws, *, tm, m_real, t_dtype):
    mp, k = x.shape
    _, c = w.shape
    _, ks = xs.shape
    ti = jnp.dtype(t_dtype).itemsize
    kernel = functools.partial(_matmul2_stats_kernel, m_real=m_real, tm=tm)
    return pl.pallas_call(
        kernel,
        grid=(mp // tm,),
        in_specs=[pl.BlockSpec((tm, k), lambda i: (i, 0)),
                  pl.BlockSpec((k, c), lambda i: (0, 0)),
                  pl.BlockSpec((tm, ks), lambda i: (i, 0)),
                  pl.BlockSpec((ks, c), lambda i: (0, 0))],
        out_specs=(pl.BlockSpec((tm, c), lambda i: (i, 0)),
                   pl.BlockSpec((2, c), lambda i: (0, 0)),
                   pl.BlockSpec((2, c), lambda i: (0, 0))),
        out_shape=(jax.ShapeDtypeStruct((mp, c), t_dtype),
                   jax.ShapeDtypeStruct((2, c), jnp.float32),
                   jax.ShapeDtypeStruct((2, c), jnp.float32)),
        compiler_params=_mosaic(("arbitrary",)),
        cost_estimate=_cost(2 * mp * (k + ks) * c,
                            mp * (k + ks) * x.dtype.itemsize
                            + (k + ks) * c * w.dtype.itemsize
                            + mp * c * ti + 4 * c * 4),
    )(x, w, xs, ws)


def _bn_act(t, stats, gamma, beta, *, tm, m_real, relu, out_dtype):
    mp, c = t.shape
    kernel = functools.partial(_bn_act_kernel, m_real=m_real, relu=relu)
    return pl.pallas_call(
        kernel,
        grid=(mp // tm,),
        in_specs=[pl.BlockSpec((tm, c), lambda i: (i, 0)),
                  pl.BlockSpec((2, c), lambda i: (0, 0)),
                  pl.BlockSpec((1, c), lambda i: (0, 0)),
                  pl.BlockSpec((1, c), lambda i: (0, 0))],
        out_specs=pl.BlockSpec((tm, c), lambda i: (i, 0)),
        out_shape=jax.ShapeDtypeStruct((mp, c), out_dtype),
        compiler_params=_mosaic(("parallel",)),      # fully parallel over row tiles
        cost_estimate=_cost(6 * mp * c,
                            mp * c * (t.dtype.itemsize + jnp.dtype(out_dtype).itemsize)
                            + 4 * c * 4,
                            transcendentals=c),
    )(t, stats, gamma, beta)


def _final_proj(t3, st3, g3, b3, xs, ws, sts, gs, bs, *, tm, m_real):
    mp, c = t3.shape
    _, k = xs.shape
    kernel = functools.partial(_final_proj_kernel, m_real=m_real)
    return pl.pallas_call(
        kernel,
        grid=(mp // tm,),
        in_specs=[pl.BlockSpec((tm, c), lambda i: (i, 0)),
                  pl.BlockSpec((2, c), lambda i: (0, 0)),
                  pl.BlockSpec((1, c), lambda i: (0, 0)),
                  pl.BlockSpec((1, c), lambda i: (0, 0)),
                  pl.BlockSpec((tm, k), lambda i: (i, 0)),
                  pl.BlockSpec((k, c), lambda i: (0, 0)),
                  pl.BlockSpec((2, c), lambda i: (0, 0)),
                  pl.BlockSpec((1, c), lambda i: (0, 0)),
                  pl.BlockSpec((1, c), lambda i: (0, 0))],
        out_specs=pl.BlockSpec((tm, c), lambda i: (i, 0)),
        out_shape=jax.ShapeDtypeStruct((mp, c), jnp.float32),
        compiler_params=_mosaic(("parallel",)),
        cost_estimate=_cost(2 * mp * k * c + 14 * mp * c,
                            mp * (c * t3.dtype.itemsize + k * xs.dtype.itemsize + c * 4)
                            + k * c * ws.dtype.itemsize + 8 * c * 4,
                            transcendentals=2 * c),
    )(t3, st3, g3, b3, xs, ws, sts, gs, bs)


def _final_identity(t3, st3, g3, b3, sc, *, tm, m_real):
    mp, c = t3.shape
    kernel = functools.partial(_final_identity_kernel, m_real=m_real)
    return pl.pallas_call(
        kernel,
        grid=(mp // tm,),
        in_specs=[pl.BlockSpec((tm, c), lambda i: (i, 0)),
                  pl.BlockSpec((2, c), lambda i: (0, 0)),
                  pl.BlockSpec((1, c), lambda i: (0, 0)),
                  pl.BlockSpec((1, c), lambda i: (0, 0)),
                  pl.BlockSpec((tm, c), lambda i: (i, 0))],
        out_specs=pl.BlockSpec((tm, c), lambda i: (i, 0)),
        out_shape=jax.ShapeDtypeStruct((mp, c), jnp.float32),
        compiler_params=_mosaic(("parallel",)),
        cost_estimate=_cost(10 * mp * c,
                            mp * c * (t3.dtype.itemsize + sc.dtype.itemsize + 4)
                            + 4 * c * 4,
                            transcendentals=c),
    )(t3, st3, g3, b3, sc)


# ----------------------------- module wrapper ------------------------------ #

def res_bottleneck_block(params, x_nchw, *, downsample,
                         mxu_dtype=jnp.bfloat16, tile_rows=512):
    """Forward pass. Input/output are NCHW (PyTorch convention)."""
    assert tile_rows % 8 == 0
    N, Cin, H, W = x_nchw.shape
    mid = params["w1"].shape[1]
    out_c = params["w3"].shape[1]
    s = 2 if downsample else 1
    Ho = (H + 2 - 3) // s + 1
    Wo = (W + 2 - 3) // s + 1
    M1, M2 = N * H * W, N * Ho * Wo

    cin_p, mid_p, out_p = _rup(Cin, LANE), _rup(mid, LANE), _rup(out_c, LANE)
    tm1, m1p = _row_tile(M1, tile_rows)
    tm2, m2p = _row_tile(M2, tile_rows)

    # Lane-dense (padded to 128) weights / BN params. Conv biases are NOT used:
    # a per-channel constant before training-mode BN is cancelled by the mean.
    w1 = _pad_cols(jnp.pad(params["w1"], ((0, cin_p - Cin), (0, 0))), mid_p).astype(mxu_dtype)
    w2 = jnp.pad(params["w2"], ((0, 0), (0, 0), (0, mid_p - mid), (0, mid_p - mid)))
    w2 = w2.reshape(9 * mid_p, mid_p).astype(mxu_dtype)
    w3 = _pad_cols(jnp.pad(params["w3"], ((0, mid_p - mid), (0, 0))), out_p).astype(mxu_dtype)
    g1, be1 = _pad_cols(params["g1"], mid_p), _pad_cols(params["be1"], mid_p)
    g2, be2 = _pad_cols(params["g2"], mid_p), _pad_cols(params["be2"], mid_p)
    g3, be3 = _pad_cols(params["g3"], out_p), _pad_cols(params["be3"], out_p)

    # NCHW -> NHWC, pad channels to the lane width (zeros: inert in matmul & BN).
    x = jnp.transpose(x_nchw, (0, 2, 3, 1)).astype(jnp.float32)
    x = _pad_cols(x, cin_p)                                         # (N,H,W,cin_p)

    # ---- conv1 (1x1) + bn1 + relu : two-pass BN, tiled over rows ----------- #
    x_flat = _pad_rows(x.reshape(M1, cin_p).astype(mxu_dtype), m1p)
    t1, st1 = _matmul_stats(x_flat, w1, tm=tm1, m_real=M1, t_dtype=mxu_dtype)
    y1 = _bn_act(t1, st1, g1, be1, tm=tm1, m_real=M1, relu=True, out_dtype=mxu_dtype)

    # ---- conv2 (3x3, stride s, pad 1): one lane-concatenated im2col matmul -- #
    # TODO(synk): a halo-DMA kernel (memory_space=pl.ANY + in-VMEM shifted views)
    # would avoid materializing the 9x-duplicated im2col slab in HBM entirely.
    y1 = y1[:M1].reshape(N, H, W, mid_p)
    y1p = jnp.pad(y1, ((0, 0), (1, 1), (1, 1), (0, 0)))
    cols = []
    for kh in range(3):
        for kw in range(3):
            cols.append(y1p[:, kh:kh + s * (Ho - 1) + 1:s,
                            kw:kw + s * (Wo - 1) + 1:s, :].reshape(M2, mid_p))
    x2 = _pad_rows(jnp.concatenate(cols, axis=-1), m2p)             # (m2p, 9*mid_p)
    t2, st2 = _matmul_stats(x2, w2, tm=tm2, m_real=M2, t_dtype=mxu_dtype)
    y2 = _bn_act(t2, st2, g2, be2, tm=tm2, m_real=M2, relu=True, out_dtype=mxu_dtype)

    # ---- conv3 (1x1) [+ fused shortcut conv/BN], final add + relu ----------- #
    if "ws" in params:
        ws = _pad_cols(jnp.pad(params["ws"], ((0, cin_p - Cin), (0, 0))), out_p).astype(mxu_dtype)
        gs, bes = _pad_cols(params["gs"], out_p), _pad_cols(params["bes"], out_p)
        xs = _pad_rows(x[:, ::s, ::s, :].reshape(M2, cin_p).astype(mxu_dtype), m2p)
        t3, st3, sts = _matmul2_stats(y2, w3, xs, ws, tm=tm2, m_real=M2, t_dtype=mxu_dtype)
        out = _final_proj(t3, st3, g3, be3, xs, ws, sts, gs, bes, tm=tm2, m_real=M2)
    else:
        assert s == 1 and Cin == out_c, "identity shortcut requires stride 1, Cin == Cout"
        t3, st3 = _matmul_stats(y2, w3, tm=tm2, m_real=M2, t_dtype=mxu_dtype)
        sc = _pad_rows(_pad_cols(x.reshape(M1, cin_p), out_p), m2p)  # f32 identity
        out = _final_identity(t3, st3, g3, be3, sc, tm=tm2, m_real=M2)

    out = out[:M2, :out_c].reshape(N, Ho, Wo, out_c)
    return jnp.transpose(out, (0, 3, 1, 2))                         # back to NCHW


# ------------------------------ parameters ---------------------------------- #

def init_params(key, in_c, out_c, downsample):
    """Deterministic synthetic parameters with the shapes nn.Module.__init__ implies."""
    mid = out_c // 4
    ks = jax.random.split(key, 8)

    def u(k, shape, fan_in):
        bound = 1.0 / (fan_in ** 0.5)
        return jax.random.uniform(k, shape, jnp.float32, -bound, bound)

    params = {
        # 1x1 convs stored as (Cin, Cout); 3x3 conv stored HWIO (kh, kw, Cin, Cout)
        "w1": u(ks[0], (in_c, mid), in_c),          "b1": u(ks[1], (1, mid), in_c),
        "w2": u(ks[2], (3, 3, mid, mid), 9 * mid),  "b2": u(ks[3], (1, mid), 9 * mid),
        "w3": u(ks[4], (mid, out_c), mid),          "b3": u(ks[5], (1, out_c), mid),
        # BatchNorm affine params: PyTorch default init (gamma=1, beta=0)
        "g1": jnp.ones((1, mid), jnp.float32),   "be1": jnp.zeros((1, mid), jnp.float32),
        "g2": jnp.ones((1, mid), jnp.float32),   "be2": jnp.zeros((1, mid), jnp.float32),
        "g3": jnp.ones((1, out_c), jnp.float32), "be3": jnp.zeros((1, out_c), jnp.float32),
    }
    if downsample or in_c != out_c:
        params["ws"] = u(ks[6], (in_c, out_c), in_c)
        params["bs"] = u(ks[7], (1, out_c), in_c)
        params["gs"] = jnp.ones((1, out_c), jnp.float32)
        params["bes"] = jnp.zeros((1, out_c), jnp.float32)
    return params


# ------------------------------- reference ---------------------------------- #

def _reference(params, x_nchw, downsample):
    """Pure-JAX reference (lax.conv, f32, with conv biases) mirroring the PyTorch forward."""
    x = jnp.transpose(x_nchw, (0, 2, 3, 1)).astype(jnp.float32)
    s = 2 if downsample else 1

    def bn(t, g, b):
        mean = jnp.mean(t, axis=(0, 1, 2), keepdims=True)
        var = jnp.mean((t - mean) ** 2, axis=(0, 1, 2), keepdims=True)
        return (t - mean) * lax.rsqrt(var + EPS) * g.reshape(1, 1, 1, -1) + b.reshape(1, 1, 1, -1)

    def conv(t, w_hwio, b, stride, pad):
        y = lax.conv_general_dilated(
            t, w_hwio, (stride, stride), [(pad, pad), (pad, pad)],
            dimension_numbers=("NHWC", "HWIO", "NHWC"))
        return y + b.reshape(1, 1, 1, -1)

    if "ws" in params:
        sc = bn(conv(x, params["ws"][None, None], params["bs"], s, 0),
                params["gs"], params["bes"])
    else:
        sc = x
    t = jax.nn.relu(bn(conv(x, params["w1"][None, None], params["b1"], 1, 0),
                       params["g1"], params["be1"]))
    t = jax.nn.relu(bn(conv(t, params["w2"], params["b2"], s, 1),
                       params["g2"], params["be2"]))
    t = jax.nn.relu(bn(conv(t, params["w3"][None, None], params["b3"], 1, 0),
                       params["g3"], params["be3"]))
    out = jax.nn.relu(t + sc)
    return jnp.transpose(out, (0, 3, 1, 2))


# ---------------------------------- main ------------------------------------ #

if __name__ == "__main__":
    key = jax.random.PRNGKey(0)
    kx_a, kp_a, kx_b, kp_b = jax.random.split(key, 4)

    fwd = jax.jit(res_bottleneck_block,
                  static_argnames=("downsample", "mxu_dtype", "tile_rows"))

    # Config A: projection shortcut (downsample, Cin != Cout).
    x_a = jax.random.normal(kx_a, (2, 4, 16, 16), jnp.float32)
    p_a = init_params(kp_a, 4, 8, True)
    ref_a = _reference(p_a, x_a, True)

    out_a32 = jax.block_until_ready(
        fwd(p_a, x_a, downsample=True, mxu_dtype=jnp.float32, tile_rows=128))
    assert out_a32.shape == (2, 8, 8, 8), out_a32.shape
    err = float(jnp.max(jnp.abs(out_a32 - ref_a)))
    assert err < 5e-3, f"f32 projection-path mismatch vs reference: {err}"

    out_a16 = jax.block_until_ready(
        fwd(p_a, x_a, downsample=True, mxu_dtype=jnp.bfloat16, tile_rows=128))
    err = float(jnp.max(jnp.abs(out_a16 - ref_a)))
    assert err < 2e-1, f"bf16 projection-path mismatch vs reference: {err}"

    # Config B: identity shortcut (stride 1, Cin == Cout).
    x_b = jax.random.normal(kx_b, (2, 8, 16, 16), jnp.float32)
    p_b = init_params(kp_b, 8, 8, False)
    ref_b = _reference(p_b, x_b, False)

    out_b32 = jax.block_until_ready(
        fwd(p_b, x_b, downsample=False, mxu_dtype=jnp.float32, tile_rows=128))
    assert out_b32.shape == (2, 8, 16, 16), out_b32.shape
    err = float(jnp.max(jnp.abs(out_b32 - ref_b)))
    assert err < 5e-3, f"f32 identity-path mismatch vs reference: {err}"

    print("KERNEL_OK")
</pallas_src>

<mosaic_0001>
module attributes {stable_mosaic.version = 11 : i64} {
  func.func @_bn_act_kernel(%arg0: i32, %arg1: memref<128x128xf32, #tpu.memory_space<vmem>>, %arg2: memref<2x128xf32, #tpu.memory_space<vmem>>, %arg3: memref<1x128xf32, #tpu.memory_space<vmem>>, %arg4: memref<1x128xf32, #tpu.memory_space<vmem>>, %arg5: memref<128x128xf32, #tpu.memory_space<vmem>>) attributes {dimension_semantics = [#tpu.dimension_semantics<parallel>], iteration_bounds = array<i64: 4>, scalar_prefetch = 0 : i64, scratch_operands = 0 : i64, tpu.core_type = #tpu.core_type<tc>, window_params = [{transform_indices = @transform_0, window_bounds = array<i64: 128, 128>}, {pipeline_mode = #tpu.pipeline_mode<synchronous>, transform_indices = @transform_1, window_bounds = array<i64: 2, 128>}, {pipeline_mode = #tpu.pipeline_mode<synchronous>, transform_indices = @transform_2, window_bounds = array<i64: 1, 128>}, {pipeline_mode = #tpu.pipeline_mode<synchronous>, transform_indices = @transform_3, window_bounds = array<i64: 1, 128>}, {transform_indices = @transform_4, window_bounds = array<i64: 128, 128>}]} {
    %c0 = arith.constant 0 : index
    %c0_0 = arith.constant 0 : index
    %0 = vector.load %arg1[%c0, %c0_0] : memref<128x128xf32, #tpu.memory_space<vmem>>, vector<128x128xf32>
    %c0_1 = arith.constant 0 : index
    %c0_2 = arith.constant 0 : index
    %1 = vector.load %arg2[%c0_1, %c0_2] : memref<2x128xf32, #tpu.memory_space<vmem>>, vector<2x128xf32>
    %c0_3 = arith.constant 0 : index
    %c0_4 = arith.constant 0 : index
    %2 = vector.load %arg3[%c0_3, %c0_4] : memref<1x128xf32, #tpu.memory_space<vmem>>, vector<1x128xf32>
    %c0_5 = arith.constant 0 : index
    %c0_6 = arith.constant 0 : index
    %3 = vector.load %arg4[%c0_5, %c0_6] : memref<1x128xf32, #tpu.memory_space<vmem>>, vector<1x128xf32>
    %4 = vector.extract_strided_slice %1 {offsets = [0, 0], sizes = [1, 128], strides = [1, 1]} : vector<2x128xf32> to vector<1x128xf32>
    %cst = arith.constant 0.001953125 : f32
    %5 = vector.broadcast %cst : f32 to vector<1x128xf32>
    %6 = arith.mulf %4, %5 : vector<1x128xf32>
    %7 = vector.extract_strided_slice %1 {offsets = [1, 0], sizes = [1, 128], strides = [1, 1]} : vector<2x128xf32> to vector<1x128xf32>
    %cst_7 = arith.constant 0.001953125 : f32
    %8 = vector.broadcast %cst_7 : f32 to vector<1x128xf32>
    %9 = arith.mulf %7, %8 : vector<1x128xf32>
    %10 = arith.mulf %6, %6 : vector<1x128xf32>
    %11 = arith.subf %9, %10 : vector<1x128xf32>
    %cst_8 = arith.constant 0.000000e+00 : f32
    %12 = vector.broadcast %cst_8 : f32 to vector<1x128xf32>
    %13 = arith.maximumf %11, %12 : vector<1x128xf32>
    %14 = vector.broadcast %6 : vector<1x128xf32> to vector<128x128xf32>
    %15 = arith.subf %0, %14 : vector<128x128xf32>
    %cst_9 = arith.constant 9.99999974E-6 : f32
    %16 = vector.broadcast %cst_9 : f32 to vector<1x128xf32>
    %17 = arith.addf %13, %16 : vector<1x128xf32>
    %18 = math.rsqrt %17 : vector<1x128xf32>
    %19 = arith.mulf %18, %2 : vector<1x128xf32>
    %20 = vector.broadcast %19 : vector<1x128xf32> to vector<128x128xf32>
    %21 = arith.mulf %15, %20 : vector<128x128xf32>
    %22 = vector.broadcast %3 : vector<1x128xf32> to vector<128x128xf32>
    %23 = arith.addf %21, %22 : vector<128x128xf32>
    %cst_10 = arith.constant 0.000000e+00 : f32
    %24 = vector.broadcast %cst_10 : f32 to vector<128x128xf32>
    %25 = arith.maximumf %23, %24 : vector<128x128xf32>
    %c0_11 = arith.constant 0 : index
    %c0_12 = arith.constant 0 : index
    %26 = vector.load %arg5[%c0_11, %c0_12] : memref<128x128xf32, #tpu.memory_space<vmem>>, vector<128x128xf32>
    tpu.vector_store %arg5[%c0_11, %c0_12], %25 {strides = array<i32>} : memref<128x128xf32, #tpu.memory_space<vmem>>, vector<128x128xf32>,
    return
  }
  func.func @transform_0(%arg0: i32) -> (i32, i32) {
    %c0_i32 = arith.constant 0 : i32
    %c0_i32_0 = arith.constant 0 : i32
    return %arg0, %c0_i32 : i32, i32
  }
  func.func @transform_1(%arg0: i32) -> (i32, i32) {
    %c0_i32 = arith.constant 0 : i32
    %c0_i32_0 = arith.constant 0 : i32
    %c0_i32_1 = arith.constant 0 : i32
    return %c0_i32, %c0_i32_0 : i32, i32
  }
  func.func @transform_2(%arg0: i32) -> (i32, i32) {
    %c0_i32 = arith.constant 0 : i32
    %c0_i32_0 = arith.constant 0 : i32
    %c0_i32_1 = arith.constant 0 : i32
    return %c0_i32, %c0_i32_0 : i32, i32
  }
  func.func @transform_3(%arg0: i32) -> (i32, i32) {
    %c0_i32 = arith.constant 0 : i32
    %c0_i32_0 = arith.constant 0 : i32
    %c0_i32_1 = arith.constant 0 : i32
    return %c0_i32, %c0_i32_0 : i32, i32
  }
  func.func @transform_4(%arg0: i32) -> (i32, i32) {
    %c0_i32 = arith.constant 0 : i32
    %c0_i32_0 = arith.constant 0 : i32
    return %arg0, %c0_i32 : i32, i32
  }
}

module attributes {stable_mosaic.version = 11 : i64} {
  func.func @_matmul_stats_kernel(%arg0: i32, %arg1: memref<128x128xf32, #tpu.memory_space<vmem>>, %arg2: memref<128x128xf32, #tpu.memory_space<vmem>>, %arg3: memref<128x128xf32, #tpu.memory_space<vmem>>, %arg4: memref<2x128xf32, #tpu.memory_space<vmem>>) attributes {dimension_semantics = [#tpu.dimension_semantics<arbitrary>], iteration_bounds = array<i64: 4>, scalar_prefetch = 0 : i64, scratch_operands = 0 : i64, tpu.core_type = #tpu.core_type<tc>, window_params = [{transform_indices = @transform_0, window_bounds = array<i64: 128, 128>}, {pipeline_mode = #tpu.pipeline_mode<synchronous>, transform_indices = @transform_1, window_bounds = array<i64: 128, 128>}, {transform_indices = @transform_2, window_bounds = array<i64: 128, 128>}, {pipeline_mode = #tpu.pipeline_mode<synchronous>, transform_indices = @transform_3, window_bounds = array<i64: 2, 128>}]} {
    %c0 = arith.constant 0 : index
    %c0_0 = arith.constant 0 : index
    %0 = vector.load %arg1[%c0, %c0_0] : memref<128x128xf32, #tpu.memory_space<vmem>>, vector<128x128xf32>
    %c0_1 = arith.constant 0 : index
    %c0_2 = arith.constant 0 : index
    %1 = vector.load %arg2[%c0_1, %c0_2] : memref<128x128xf32, #tpu.memory_space<vmem>>, vector<128x128xf32>
    %cst = arith.constant dense<0.000000e+00> : vector<128x128xf32>
    %2 = tpu.matmul %0, %1, %cst {dimension_numbers = #tpu.dot_dimension_numbers<[1], [0], [0], [1], [0, 0, 1, 1], [], []>} : vector<128x128xf32>, vector<128x128xf32>, vector<128x128xf32> -> vector<128x128xf32>
    %c0_3 = arith.constant 0 : index
    %c0_4 = arith.constant 0 : index
    %3 = vector.load %arg3[%c0_3, %c0_4] : memref<128x128xf32, #tpu.memory_space<vmem>>, vector<128x128xf32>
    tpu.vector_store %arg3[%c0_3, %c0_4], %2 {strides = array<i32>} : memref<128x128xf32, #tpu.memory_space<vmem>>, vector<128x128xf32>,
    %c0_i32 = arith.constant 0 : i32
    %4 = arith.cmpi eq, %arg0, %c0_i32 : i32
    %5 = arith.extui %4 : i1 to i32
    %c0_i32_5 = arith.constant 0 : i32
    %6 = arith.cmpi ne, %5, %c0_i32_5 : i32
    scf.if %6 {
      %cst_13 = arith.constant 0.000000e+00 : f32
      %26 = vector.broadcast %cst_13 : f32 to vector<2x128xf32>
      %c0_14 = arith.constant 0 : index
      %c0_15 = arith.constant 0 : index
      %27 = vector.load %arg4[%c0_14, %c0_15] : memref<2x128xf32, #tpu.memory_space<vmem>>, vector<2x128xf32>
      tpu.vector_store %arg4[%c0_14, %c0_15], %26 {strides = array<i32>} : memref<2x128xf32, #tpu.memory_space<vmem>>, vector<2x128xf32>,
    } else {
    }
    %c128_i32 = arith.constant 128 : i32
    %7 = arith.muli %arg0, %c128_i32 : i32
    %8 = tpu.iota {dimensions = array<i32: 0>} : vector<128x1xi32>
    %9 = vector.broadcast %7 : i32 to vector<128x1xi32>
    %10 = arith.addi %9, %8 : vector<128x1xi32>
    %c512_i32 = arith.constant 512 : i32
    %11 = vector.broadcast %c512_i32 : i32 to vector<128x1xi32>
    %12 = arith.cmpi slt, %10, %11 : vector<128x1xi32>
    %cst_6 = arith.constant 0.000000e+00 : f32
    %13 = vector.shape_cast %12 : vector<128x1xi1> to vector<128x1xi1>
    %14 = vector.broadcast %13 : vector<128x1xi1> to vector<128x128xi1>
    %15 = vector.broadcast %cst_6 : f32 to vector<128x128xf32>
    %16 = arith.select %14, %2, %15 : vector<128x128xi1>, vector<128x128xf32>
    %c0_7 = arith.constant 0 : index
    %c0_8 = arith.constant 0 : index
    %17 = vector.load %arg4[%c0_7, %c0_8] : memref<2x128xf32, #tpu.memory_space<vmem>>, vector<2x128xf32>
    %cst_9 = arith.constant dense<0.000000e+00> : vector<128xf32>
    %18 = vector.multi_reduction <add>, %16, %cst_9 [0] : vector<128x128xf32> to vector<128xf32>
    %19 = vector.shape_cast %18 : vector<128xf32> to vector<1x128xf32>
    %20 = arith.mulf %16, %16 : vector<128x128xf32>
    %cst_10 = arith.constant dense<0.000000e+00> : vector<128xf32>
    %21 = vector.multi_reduction <add>, %20, %cst_10 [0] : vector<128x128xf32> to vector<128xf32>
    %22 = vector.shape_cast %21 : vector<128xf32> to vector<1x128xf32>
    %23 = tpu.concatenate %19, %22 in 0 : vector<1x128xf32>, vector<1x128xf32> -> vector<2x128xf32>
    %24 = arith.addf %17, %23 : vector<2x128xf32>
    %c0_11 = arith.constant 0 : index
    %c0_12 = arith.constant 0 : index
    %25 = vector.load %arg4[%c0_11, %c0_12] : memref<2x128xf32, #tpu.memory_space<vmem>>, vector<2x128xf32>
    tpu.vector_store %arg4[%c0_11, %c0_12], %24 {strides = array<i32>} : memref<2x128xf32, #tpu.memory_space<vmem>>, vector<2x128xf32>,
    return
  }
  func.func @transform_0(%arg0: i32) -> (i32, i32) {
    %c0_i32 = arith.constant 0 : i32
    %c0_i32_0 = arith.constant 0 : i32
    return %arg0, %c0_i32 : i32, i32
  }
  func.func @transform_1(%arg0: i32) -> (i32, i32) {
    %c0_i32 = arith.constant 0 : i32
    %c0_i32_0 = arith.constant 0 : i32
    %c0_i32_1 = arith.constant 0 : i32
    return %c0_i32, %c0_i32_0 : i32, i32
  }
  func.func @transform_2(%arg0: i32) -> (i32, i32) {
    %c0_i32 = arith.constant 0 : i32
    %c0_i32_0 = arith.constant 0 : i32
    return %arg0, %c0_i32 : i32, i32
  }
  func.func @transform_3(%arg0: i32) -> (i32, i32) {
    %c0_i32 = arith.constant 0 : i32
    %c0_i32_0 = arith.constant 0 : i32
    %c0_i32_1 = arith.constant 0 : i32
    return %c0_i32, %c0_i32_0 : i32, i32
  }
}

module attributes {stable_mosaic.version = 11 : i64} {
  func.func @_bn_act_kernel(%arg0: i32, %arg1: memref<128x128xf32, #tpu.memory_space<vmem>>, %arg2: memref<2x128xf32, #tpu.memory_space<vmem>>, %arg3: memref<1x128xf32, #tpu.memory_space<vmem>>, %arg4: memref<1x128xf32, #tpu.memory_space<vmem>>, %arg5: memref<128x128xf32, #tpu.memory_space<vmem>>) attributes {dimension_semantics = [#tpu.dimension_semantics<parallel>], iteration_bounds = array<i64: 1>, scalar_prefetch = 0 : i64, scratch_operands = 0 : i64, tpu.core_type = #tpu.core_type<tc>, window_params = [{transform_indices = @transform_0, window_bounds = array<i64: 128, 128>}, {pipeline_mode = #tpu.pipeline_mode<synchronous>, transform_indices = @transform_1, window_bounds = array<i64: 2, 128>}, {pipeline_mode = #tpu.pipeline_mode<synchronous>, transform_indices = @transform_2, window_bounds = array<i64: 1, 128>}, {pipeline_mode = #tpu.pipeline_mode<synchronous>, transform_indices = @transform_3, window_bounds = array<i64: 1, 128>}, {transform_indices = @transform_4, window_bounds = array<i64: 128, 128>}]} {
    %c0 = arith.constant 0 : index
    %c0_0 = arith.constant 0 : index
    %0 = vector.load %arg1[%c0, %c0_0] : memref<128x128xf32, #tpu.memory_space<vmem>>, vector<128x128xf32>
    %c0_1 = arith.constant 0 : index
    %c0_2 = arith.constant 0 : index
    %1 = vector.load %arg2[%c0_1, %c0_2] : memref<2x128xf32, #tpu.memory_space<vmem>>, vector<2x128xf32>
    %c0_3 = arith.constant 0 : index
    %c0_4 = arith.constant 0 : index
    %2 = vector.load %arg3[%c0_3, %c0_4] : memref<1x128xf32, #tpu.memory_space<vmem>>, vector<1x128xf32>
    %c0_5 = arith.constant 0 : index
    %c0_6 = arith.constant 0 : index
    %3 = vector.load %arg4[%c0_5, %c0_6] : memref<1x128xf32, #tpu.memory_space<vmem>>, vector<1x128xf32>
    %4 = vector.extract_strided_slice %1 {offsets = [0, 0], sizes = [1, 128], strides = [1, 1]} : vector<2x128xf32> to vector<1x128xf32>
    %cst = arith.constant 7.812500e-03 : f32
    %5 = vector.broadcast %cst : f32 to vector<1x128xf32>
    %6 = arith.mulf %4, %5 : vector<1x128xf32>
    %7 = vector.extract_strided_slice %1 {offsets = [1, 0], sizes = [1, 128], strides = [1, 1]} : vector<2x128xf32> to vector<1x128xf32>
    %cst_7 = arith.constant 7.812500e-03 : f32
    %8 = vector.broadcast %cst_7 : f32 to vector<1x128xf32>
    %9 = arith.mulf %7, %8 : vector<1x128xf32>
    %10 = arith.mulf %6, %6 : vector<1x128xf32>
    %11 = arith.subf %9, %10 : vector<1x128xf32>
    %cst_8 = arith.constant 0.000000e+00 : f32
    %12 = vector.broadcast %cst_8 : f32 to vector<1x128xf32>
    %13 = arith.maximumf %11, %12 : vector<1x128xf32>
    %14 = vector.broadcast %6 : vector<1x128xf32> to vector<128x128xf32>
    %15 = arith.subf %0, %14 : vector<128x128xf32>
    %cst_9 = arith.constant 9.99999974E-6 : f32
    %16 = vector.broadcast %cst_9 : f32 to vector<1x128xf32>
    %17 = arith.addf %13, %16 : vector<1x128xf32>
    %18 = math.rsqrt %17 : vector<1x128xf32>
    %19 = arith.mulf %18, %2 : vector<1x128xf32>
    %20 = vector.broadcast %19 : vector<1x128xf32> to vector<128x128xf32>
    %21 = arith.mulf %15, %20 : vector<128x128xf32>
    %22 = vector.broadcast %3 : vector<1x128xf32> to vector<128x128xf32>
    %23 = arith.addf %21, %22 : vector<128x128xf32>
    %cst_10 = arith.constant 0.000000e+00 : f32
    %24 = vector.broadcast %cst_10 : f32 to vector<128x128xf32>
    %25 = arith.maximumf %23, %24 : vector<128x128xf32>
    %c0_11 = arith.constant 0 : index
    %c0_12 = arith.constant 0 : index
    %26 = vector.load %arg5[%c0_11, %c0_12] : memref<128x128xf32, #tpu.memory_space<vmem>>, vector<128x128xf32>
    tpu.vector_store %arg5[%c0_11, %c0_12], %25 {strides = array<i32>} : memref<128x128xf32, #tpu.memory_space<vmem>>, vector<128x128xf32>,
    return
  }
  func.func @transform_0(%arg0: i32) -> (i32, i32) {
    %c0_i32 = arith.constant 0 : i32
    %c0_i32_0 = arith.constant 0 : i32
    return %arg0, %c0_i32 : i32, i32
  }
  func.func @transform_1(%arg0: i32) -> (i32, i32) {
    %c0_i32 = arith.constant 0 : i32
    %c0_i32_0 = arith.constant 0 : i32
    %c0_i32_1 = arith.constant 0 : i32
    return %c0_i32, %c0_i32_0 : i32, i32
  }
  func.func @transform_2(%arg0: i32) -> (i32, i32) {
    %c0_i32 = arith.constant 0 : i32
    %c0_i32_0 = arith.constant 0 : i32
    %c0_i32_1 = arith.constant 0 : i32
    return %c0_i32, %c0_i32_0 : i32, i32
  }
  func.func @transform_3(%arg0: i32) -> (i32, i32) {
    %c0_i32 = arith.constant 0 : i32
    %c0_i32_0 = arith.constant 0 : i32
    %c0_i32_1 = arith.constant 0 : i32
    return %c0_i32, %c0_i32_0 : i32, i32
  }
  func.func @transform_4(%arg0: i32) -> (i32, i32) {
    %c0_i32 = arith.constant 0 : i32
    %c0_i32_0 = arith.constant 0 : i32
    return %arg0, %c0_i32 : i32, i32
  }
}

module attributes {stable_mosaic.version = 11 : i64} {
  func.func @_matmul_stats_kernel(%arg0: i32, %arg1: memref<128x1152xf32, #tpu.memory_space<vmem>>, %arg2: memref<1152x128xf32, #tpu.memory_space<vmem>>, %arg3: memref<128x128xf32, #tpu.memory_space<vmem>>, %arg4: memref<2x128xf32, #tpu.memory_space<vmem>>) attributes {dimension_semantics = [#tpu.dimension_semantics<arbitrary>], iteration_bounds = array<i64: 1>, scalar_prefetch = 0 : i64, scratch_operands = 0 : i64, tpu.core_type = #tpu.core_type<tc>, window_params = [{transform_indices = @transform_0, window_bounds = array<i64: 128, 1152>}, {pipeline_mode = #tpu.pipeline_mode<synchronous>, transform_indices = @transform_1, window_bounds = array<i64: 1152, 128>}, {transform_indices = @transform_2, window_bounds = array<i64: 128, 128>}, {pipeline_mode = #tpu.pipeline_mode<synchronous>, transform_indices = @transform_3, window_bounds = array<i64: 2, 128>}]} {
    %c0 = arith.constant 0 : index
    %c0_0 = arith.constant 0 : index
    %0 = vector.load %arg1[%c0, %c0_0] : memref<128x1152xf32, #tpu.memory_space<vmem>>, vector<128x1152xf32>
    %c0_1 = arith.constant 0 : index
    %c0_2 = arith.constant 0 : index
    %1 = vector.load %arg2[%c0_1, %c0_2] : memref<1152x128xf32, #tpu.memory_space<vmem>>, vector<1152x128xf32>
    %cst = arith.constant dense<0.000000e+00> : vector<128x128xf32>
    %2 = tpu.matmul %0, %1, %cst {dimension_numbers = #tpu.dot_dimension_numbers<[1], [0], [0], [1], [0, 0, 1, 1], [], []>} : vector<128x1152xf32>, vector<1152x128xf32>, vector<128x128xf32> -> vector<128x128xf32>
    %c0_3 = arith.constant 0 : index
    %c0_4 = arith.constant 0 : index
    %3 = vector.load %arg3[%c0_3, %c0_4] : memref<128x128xf32, #tpu.memory_space<vmem>>, vector<128x128xf32>
    tpu.vector_store %arg3[%c0_3, %c0_4], %2 {strides = array<i32>} : memref<128x128xf32, #tpu.memory_space<vmem>>, vector<128x128xf32>,
    %c0_i32 = arith.constant 0 : i32
    %4 = arith.cmpi eq, %arg0, %c0_i32 : i32
    %5 = arith.extui %4 : i1 to i32
    %c0_i32_5 = arith.constant 0 : i32
    %6 = arith.cmpi ne, %5, %c0_i32_5 : i32
    scf.if %6 {
      %cst_14 = arith.constant 0.000000e+00 : f32
      %26 = vector.broadcast %cst_14 : f32 to vector<2x128xf32>
      %c0_15 = arith.constant 0 : index
      %c0_16 = arith.constant 0 : index
      %27 = vector.load %arg4[%c0_15, %c0_16] : memref<2x128xf32, #tpu.memory_space<vmem>>, vector<2x128xf32>
      tpu.vector_store %arg4[%c0_15, %c0_16], %26 {strides = array<i32>} : memref<2x128xf32, #tpu.memory_space<vmem>>, vector<2x128xf32>,
    } else {
    }
    %c128_i32 = arith.constant 128 : i32
    %7 = arith.muli %arg0, %c128_i32 : i32
    %8 = tpu.iota {dimensions = array<i32: 0>} : vector<128x1xi32>
    %9 = vector.broadcast %7 : i32 to vector<128x1xi32>
    %10 = arith.addi %9, %8 : vector<128x1xi32>
    %c128_i32_6 = arith.constant 128 : i32
    %11 = vector.broadcast %c128_i32_6 : i32 to vector<128x1xi32>
    %12 = arith.cmpi slt, %10, %11 : vector<128x1xi32>
    %cst_7 = arith.constant 0.000000e+00 : f32
    %13 = vector.shape_cast %12 : vector<128x1xi1> to vector<128x1xi1>
    %14 = vector.broadcast %13 : vector<128x1xi1> to vector<128x128xi1>
    %15 = vector.broadcast %cst_7 : f32 to vector<128x128xf32>
    %16 = arith.select %14, %2, %15 : vector<128x128xi1>, vector<128x128xf32>
    %c0_8 = arith.constant 0 : index
    %c0_9 = arith.constant 0 : index
    %17 = vector.load %arg4[%c0_8, %c0_9] : memref<2x128xf32, #tpu.memory_space<vmem>>, vector<2x128xf32>
    %cst_10 = arith.constant dense<0.000000e+00> : vector<128xf32>
    %18 = vector.multi_reduction <add>, %16, %cst_10 [0] : vector<128x128xf32> to vector<128xf32>
    %19 = vector.shape_cast %18 : vector<128xf32> to vector<1x128xf32>
    %20 = arith.mulf %16, %16 : vector<128x128xf32>
    %cst_11 = arith.constant dense<0.000000e+00> : vector<128xf32>
    %21 = vector.multi_reduction <add>, %20, %cst_11 [0] : vector<128x128xf32> to vector<128xf32>
    %22 = vector.shape_cast %21 : vector<128xf32> to vector<1x128xf32>
    %23 = tpu.concatenate %19, %22 in 0 : vector<1x128xf32>, vector<1x128xf32> -> vector<2x128xf32>
    %24 = arith.addf %17, %23 : vector<2x128xf32>
    %c0_12 = arith.constant 0 : index
    %c0_13 = arith.constant 0 : index
    %25 = vector.load %arg4[%c0_12, %c0_13] : memref<2x128xf32, #tpu.memory_space<vmem>>, vector<2x128xf32>
    tpu.vector_store %arg4[%c0_12, %c0_13], %24 {strides = array<i32>} : memref<2x128xf32, #tpu.memory_space<vmem>>, vector<2x128xf32>,
    return
  }
  func.func @transform_0(%arg0: i32) -> (i32, i32) {
    %c0_i32 = arith.constant 0 : i32
    %c0_i32_0 = arith.constant 0 : i32
    return %arg0, %c0_i32 : i32, i32
  }
  func.func @transform_1(%arg0: i32) -> (i32, i32) {
    %c0_i32 = arith.constant 0 : i32
    %c0_i32_0 = arith.constant 0 : i32
    %c0_i32_1 = arith.constant 0 : i32
    return %c0_i32, %c0_i32_0 : i32, i32
  }
  func.func @transform_2(%arg0: i32) -> (i32, i32) {
    %c0_i32 = arith.constant 0 : i32
    %c0_i32_0 = arith.constant 0 : i32
    return %arg0, %c0_i32 : i32, i32
  }
  func.func @transform_3(%arg0: i32) -> (i32, i32) {
    %c0_i32 = arith.constant 0 : i32
    %c0_i32_0 = arith.constant 0 : i32
    %c0_i32_1 = arith.constant 0 : i32
    return %c0_i32, %c0_i32_0 : i32, i32
  }
}

module attributes {stable_mosaic.version = 11 : i64} {
  func.func @_matmul2_stats_kernel(%arg0: i32, %arg1: memref<128x128xf32, #tpu.memory_space<vmem>>, %arg2: memref<128x128xf32, #tpu.memory_space<vmem>>, %arg3: memref<128x128xf32, #tpu.memory_space<vmem>>, %arg4: memref<128x128xf32, #tpu.memory_space<vmem>>, %arg5: memref<128x128xf32, #tpu.memory_space<vmem>>, %arg6: memref<2x128xf32, #tpu.memory_space<vmem>>, %arg7: memref<2x128xf32, #tpu.memory_space<vmem>>) attributes {dimension_semantics = [#tpu.dimension_semantics<arbitrary>], iteration_bounds = array<i64: 1>, scalar_prefetch = 0 : i64, scratch_operands = 0 : i64, tpu.core_type = #tpu.core_type<tc>, window_params = [{transform_indices = @transform_0, window_bounds = array<i64: 128, 128>}, {pipeline_mode = #tpu.pipeline_mode<synchronous>, transform_indices = @transform_1, window_bounds = array<i64: 128, 128>}, {transform_indices = @transform_2, window_bounds = array<i64: 128, 128>}, {pipeline_mode = #tpu.pipeline_mode<synchronous>, transform_indices = @transform_3, window_bounds = array<i64: 128, 128>}, {transform_indices = @transform_4, window_bounds = array<i64: 128, 128>}, {pipeline_mode = #tpu.pipeline_mode<synchronous>, transform_indices = @transform_5, window_bounds = array<i64: 2, 128>}, {pipeline_mode = #tpu.pipeline_mode<synchronous>, transform_indices = @transform_6, window_bounds = array<i64: 2, 128>}]} {
    %c0 = arith.constant 0 : index
    %c0_0 = arith.constant 0 : index
    %0 = vector.load %arg1[%c0, %c0_0] : memref<128x128xf32, #tpu.memory_space<vmem>>, vector<128x128xf32>
    %c0_1 = arith.constant 0 : index
    %c0_2 = arith.constant 0 : index
    %1 = vector.load %arg2[%c0_1, %c0_2] : memref<128x128xf32, #tpu.memory_space<vmem>>, vector<128x128xf32>
    %cst = arith.constant dense<0.000000e+00> : vector<128x128xf32>
    %2 = tpu.matmul %0, %1, %cst {dimension_numbers = #tpu.dot_dimension_numbers<[1], [0], [0], [1], [0, 0, 1, 1], [], []>} : vector<128x128xf32>, vector<128x128xf32>, vector<128x128xf32> -> vector<128x128xf32>
    %c0_3 = arith.constant 0 : index
    %c0_4 = arith.constant 0 : index
    %3 = vector.load %arg3[%c0_3, %c0_4] : memref<128x128xf32, #tpu.memory_space<vmem>>, vector<128x128xf32>
    %c0_5 = arith.constant 0 : index
    %c0_6 = arith.constant 0 : index
    %4 = vector.load %arg4[%c0_5, %c0_6] : memref<128x128xf32, #tpu.memory_space<vmem>>, vector<128x128xf32>
    %cst_7 = arith.constant dense<0.000000e+00> : vector<128x128xf32>
    %5 = tpu.matmul %3, %4, %cst_7 {dimension_numbers = #tpu.dot_dimension_numbers<[1], [0], [0], [1], [0, 0, 1, 1], [], []>} : vector<128x128xf32>, vector<128x128xf32>, vector<128x128xf32> -> vector<128x128xf32>
    %c0_8 = arith.constant 0 : index
    %c0_9 = arith.constant 0 : index
    %6 = vector.load %arg5[%c0_8, %c0_9] : memref<128x128xf32, #tpu.memory_space<vmem>>, vector<128x128xf32>
    tpu.vector_store %arg5[%c0_8, %c0_9], %2 {strides = array<i32>} : memref<128x128xf32, #tpu.memory_space<vmem>>, vector<128x128xf32>,
    %c0_i32 = arith.constant 0 : i32
    %7 = arith.cmpi eq, %arg0, %c0_i32 : i32
    %8 = arith.extui %7 : i1 to i32
    %c0_i32_10 = arith.constant 0 : i32
    %9 = arith.cmpi ne, %8, %c0_i32_10 : i32
    scf.if %9 {
      %cst_26 = arith.constant 0.000000e+00 : f32
      %42 = vector.broadcast %cst_26 : f32 to vector<2x128xf32>
      %c0_27 = arith.constant 0 : index
      %c0_28 = arith.constant 0 : index
      %43 = vector.load %arg6[%c0_27, %c0_28] : memref<2x128xf32, #tpu.memory_space<vmem>>, vector<2x128xf32>
      tpu.vector_store %arg6[%c0_27, %c0_28], %42 {strides = array<i32>} : memref<2x128xf32, #tpu.memory_space<vmem>>, vector<2x128xf32>,
      %cst_29 = arith.constant 0.000000e+00 : f32
      %44 = vector.broadcast %cst_29 : f32 to vector<2x128xf32>
      %c0_30 = arith.constant 0 : index
      %c0_31 = arith.constant 0 : index
      %45 = vector.load %arg7[%c0_30, %c0_31] : memref<2x128xf32, #tpu.memory_space<vmem>>, vector<2x128xf32>
      tpu.vector_store %arg7[%c0_30, %c0_31], %44 {strides = array<i32>} : memref<2x128xf32, #tpu.memory_space<vmem>>, vector<2x128xf32>,
    } else {
    }
    %c128_i32 = arith.constant 128 : i32
    %10 = arith.muli %arg0, %c128_i32 : i32
    %11 = tpu.iota {dimensions = array<i32: 0>} : vector<128x1xi32>
    %12 = vector.broadcast %10 : i32 to vector<128x1xi32>
    %13 = arith.addi %12, %11 : vector<128x1xi32>
    %c128_i32_11 = arith.constant 128 : i32
    %14 = vector.broadcast %c128_i32_11 : i32 to vector<128x1xi32>
    %15 = arith.cmpi slt, %13, %14 : vector<128x1xi32>
    %cst_12 = arith.constant 0.000000e+00 : f32
    %16 = vector.shape_cast %15 : vector<128x1xi1> to vector<128x1xi1>
    %17 = vector.broadcast %16 : vector<128x1xi1> to vector<128x128xi1>
    %18 = vector.broadcast %cst_12 : f32 to vector<128x128xf32>
    %19 = arith.select %17, %2, %18 : vector<128x128xi1>, vector<128x128xf32>
    %cst_13 = arith.constant 0.000000e+00 : f32
    %20 = vector.shape_cast %15 : vector<128x1xi1> to vector<128x1xi1>
    %21 = vector.broadcast %20 : vector<128x1xi1> to vector<128x128xi1>
    %22 = vector.broadcast %cst_13 : f32 to vector<128x128xf32>
    %23 = arith.select %21, %5, %22 : vector<128x128xi1>, vector<128x128xf32>
    %c0_14 = arith.constant 0 : index
    %c0_15 = arith.constant 0 : index
    %24 = vector.load %arg6[%c0_14, %c0_15] : memref<2x128xf32, #tpu.memory_space<vmem>>, vector<2x128xf32>
    %cst_16 = arith.constant dense<0.000000e+00> : vector<128xf32>
    %25 = vector.multi_reduction <add>, %19, %cst_16 [0] : vector<128x128xf32> to vector<128xf32>
    %26 = vector.shape_cast %25 : vector<128xf32> to vector<1x128xf32>
    %27 = arith.mulf %19, %19 : vector<128x128xf32>
    %cst_17 = arith.constant dense<0.000000e+00> : vector<128xf32>
    %28 = vector.multi_reduction <add>, %27, %cst_17 [0] : vector<128x128xf32> to vector<128xf32>
    %29 = vector.shape_cast %28 : vector<128xf32> to vector<1x128xf32>
    %30 = tpu.concatenate %26, %29 in 0 : vector<1x128xf32>, vector<1x128xf32> -> vector<2x128xf32>
    %31 = arith.addf %24, %30 : vector<2x128xf32>
    %c0_18 = arith.constant 0 : index
    %c0_19 = arith.constant 0 : index
    %32 = vector.load %arg6[%c0_18, %c0_19] : memref<2x128xf32, #tpu.memory_space<vmem>>, vector<2x128xf32>
    tpu.vector_store %arg6[%c0_18, %c0_19], %31 {strides = array<i32>} : memref<2x128xf32, #tpu.memory_space<vmem>>, vector<2x128xf32>,
    %c0_20 = arith.constant 0 : index
    %c0_21 = arith.constant 0 : index
    %33 = vector.load %arg7[%c0_20, %c0_21] : memref<2x128xf32, #tpu.memory_space<vmem>>, vector<2x128xf32>
    %cst_22 = arith.constant dense<0.000000e+00> : vector<128xf32>
    %34 = vector.multi_reduction <add>, %23, %cst_22 [0] : vector<128x128xf32> to vector<128xf32>
    %35 = vector.shape_cast %34 : vector<128xf32> to vector<1x128xf32>
    %36 = arith.mulf %23, %23 : vector<128x128xf32>
    %cst_23 = arith.constant dense<0.000000e+00> : vector<128xf32>
    %37 = vector.multi_reduction <add>, %36, %cst_23 [0] : vector<128x128xf32> to vector<128xf32>
    %38 = vector.shape_cast %37 : vector<128xf32> to vector<1x128xf32>
    %39 = tpu.concatenate %35, %38 in 0 : vector<1x128xf32>, vector<1x128xf32> -> vector<2x128xf32>
    %40 = arith.addf %33, %39 : vector<2x128xf32>
    %c0_24 = arith.constant 0 : index
    %c0_25 = arith.constant 0 : index
    %41 = vector.load %arg7[%c0_24, %c0_25] : memref<2x128xf32, #tpu.memory_space<vmem>>, vector<2x128xf32>
    tpu.vector_store %arg7[%c0_24, %c0_25], %40 {strides = array<i32>} : memref<2x128xf32, #tpu.memory_space<vmem>>, vector<2x128xf32>,
    return
  }
  func.func @transform_0(%arg0: i32) -> (i32, i32) {
    %c0_i32 = arith.constant 0 : i32
    %c0_i32_0 = arith.constant 0 : i32
    return %arg0, %c0_i32 : i32, i32
  }
  func.func @transform_1(%arg0: i32) -> (i32, i32) {
    %c0_i32 = arith.constant 0 : i32
    %c0_i32_0 = arith.constant 0 : i32
    %c0_i32_1 = arith.constant 0 : i32
    return %c0_i32, %c0_i32_0 : i32, i32
  }
  func.func @transform_2(%arg0: i32) -> (i32, i32) {
    %c0_i32 = arith.constant 0 : i32
    %c0_i32_0 = arith.constant 0 : i32
    return %arg0, %c0_i32 : i32, i32
  }
  func.func @transform_3(%arg0: i32) -> (i32, i32) {
    %c0_i32 = arith.constant 0 : i32
    %c0_i32_0 = arith.constant 0 : i32
    %c0_i32_1 = arith.constant 0 : i32
    return %c0_i32, %c0_i32_0 : i32, i32
  }
  func.func @transform_4(%arg0: i32) -> (i32, i32) {
    %c0_i32 = arith.constant 0 : i32
    %c0_i32_0 = arith.constant 0 : i32
    return %arg0, %c0_i32 : i32, i32
  }
  func.func @transform_5(%arg0: i32) -> (i32, i32) {
    %c0_i32 = arith.constant 0 : i32
    %c0_i32_0 = arith.constant 0 : i32
    %c0_i32_1 = arith.constant 0 : i32
    return %c0_i32, %c0_i32_0 : i32, i32
  }
  func.func @transform_6(%arg0: i32) -> (i32, i32) {
    %c0_i32 = arith.constant 0 : i32
    %c0_i32_0 = arith.constant 0 : i32
    %c0_i32_1 = arith.constant 0 : i32
    return %c0_i32, %c0_i32_0 : i32, i32
  }
}

module attributes {stable_mosaic.version = 11 : i64} {
  func.func @_final_proj_kernel(%arg0: i32, %arg1: memref<128x128xf32, #tpu.memory_space<vmem>>, %arg2: memref<2x128xf32, #tpu.memory_space<vmem>>, %arg3: memref<1x128xf32, #tpu.memory_space<vmem>>, %arg4: memref<1x128xf32, #tpu.memory_space<vmem>>, %arg5: memref<128x128xf32, #tpu.memory_space<vmem>>, %arg6: memref<128x128xf32, #tpu.memory_space<vmem>>, %arg7: memref<2x128xf32, #tpu.memory_space<vmem>>, %arg8: memref<1x128xf32, #tpu.memory_space<vmem>>, %arg9: memref<1x128xf32, #tpu.memory_space<vmem>>, %arg10: memref<128x128xf32, #tpu.memory_space<vmem>>) attributes {dimension_semantics = [#tpu.dimension_semantics<parallel>], iteration_bounds = array<i64: 1>, scalar_prefetch = 0 : i64, scratch_operands = 0 : i64, tpu.core_type = #tpu.core_type<tc>, window_params = [{transform_indices = @transform_0, window_bounds = array<i64: 128, 128>}, {pipeline_mode = #tpu.pipeline_mode<synchronous>, transform_indices = @transform_1, window_bounds = array<i64: 2, 128>}, {pipeline_mode = #tpu.pipeline_mode<synchronous>, transform_indices = @transform_2, window_bounds = array<i64: 1, 128>}, {pipeline_mode = #tpu.pipeline_mode<synchronous>, transform_indices = @transform_3, window_bounds = array<i64: 1, 128>}, {transform_indices = @transform_4, window_bounds = array<i64: 128, 128>}, {pipeline_mode = #tpu.pipeline_mode<synchronous>, transform_indices = @transform_5, window_bounds = array<i64: 128, 128>}, {pipeline_mode = #tpu.pipeline_mode<synchronous>, transform_indices = @transform_6, window_bounds = array<i64: 2, 128>}, {pipeline_mode = #tpu.pipeline_mode<synchronous>, transform_indices = @transform_7, window_bounds = array<i64: 1, 128>}, {pipeline_mode = #tpu.pipeline_mode<synchronous>, transform_indices = @transform_8, window_bounds = array<i64: 1, 128>}, {transform_indices = @transform_9, window_bounds = array<i64: 128, 128>}]} {
    %c0 = arith.constant 0 : index
    %c0_0 = arith.constant 0 : index
    %0 = vector.load %arg1[%c0, %c0_0] : memref<128x128xf32, #tpu.memory_space<vmem>>, vector<128x128xf32>
    %c0_1 = arith.constant 0 : index
    %c0_2 = arith.constant 0 : index
    %1 = vector.load %arg2[%c0_1, %c0_2] : memref<2x128xf32, #tpu.memory_space<vmem>>, vector<2x128xf32>
    %c0_3 = arith.constant 0 : index
    %c0_4 = arith.constant 0 : index
    %2 = vector.load %arg3[%c0_3, %c0_4] : memref<1x128xf32, #tpu.memory_space<vmem>>, vector<1x128xf32>
    %c0_5 = arith.constant 0 : index
    %c0_6 = arith.constant 0 : index
    %3 = vector.load %arg4[%c0_5, %c0_6] : memref<1x128xf32, #tpu.memory_space<vmem>>, vector<1x128xf32>
    %4 = vector.extract_strided_slice %1 {offsets = [0, 0], sizes = [1, 128], strides = [1, 1]} : vector<2x128xf32> to vector<1x128xf32>
    %cst = arith.constant 7.812500e-03 : f32
    %5 = vector.broadcast %cst : f32 to vector<1x128xf32>
    %6 = arith.mulf %4, %5 : vector<1x128xf32>
    %7 = vector.extract_strided_slice %1 {offsets = [1, 0], sizes = [1, 128], strides = [1, 1]} : vector<2x128xf32> to vector<1x128xf32>
    %cst_7 = arith.constant 7.812500e-03 : f32
    %8 = vector.broadcast %cst_7 : f32 to vector<1x128xf32>
    %9 = arith.mulf %7, %8 : vector<1x128xf32>
    %10 = arith.mulf %6, %6 : vector<1x128xf32>
    %11 = arith.subf %9, %10 : vector<1x128xf32>
    %cst_8 = arith.constant 0.000000e+00 : f32
    %12 = vector.broadcast %cst_8 : f32 to vector<1x128xf32>
    %13 = arith.maximumf %11, %12 : vector<1x128xf32>
    %14 = vector.broadcast %6 : vector<1x128xf32> to vector<128x128xf32>
    %15 = arith.subf %0, %14 : vector<128x128xf32>
    %cst_9 = arith.constant 9.99999974E-6 : f32
    %16 = vector.broadcast %cst_9 : f32 to vector<1x128xf32>
    %17 = arith.addf %13, %16 : vector<1x128xf32>
    %18 = math.rsqrt %17 : vector<1x128xf32>
    %19 = arith.mulf %18, %2 : vector<1x128xf32>
    %20 = vector.broadcast %19 : vector<1x128xf32> to vector<128x128xf32>
    %21 = arith.mulf %15, %20 : vector<128x128xf32>
    %22 = vector.broadcast %3 : vector<1x128xf32> to vector<128x128xf32>
    %23 = arith.addf %21, %22 : vector<128x128xf32>
    %cst_10 = arith.constant 0.000000e+00 : f32
    %24 = vector.broadcast %cst_10 : f32 to vector<128x128xf32>
    %25 = arith.maximumf %23, %24 : vector<128x128xf32>
    %c0_11 = arith.constant 0 : index
    %c0_12 = arith.constant 0 : index
    %26 = vector.load %arg5[%c0_11, %c0_12] : memref<128x128xf32, #tpu.memory_space<vmem>>, vector<128x128xf32>
    %c0_13 = arith.constant 0 : index
    %c0_14 = arith.constant 0 : index
    %27 = vector.load %arg6[%c0_13, %c0_14] : memref<128x128xf32, #tpu.memory_space<vmem>>, vector<128x128xf32>
    %cst_15 = arith.constant dense<0.000000e+00> : vector<128x128xf32>
    %28 = tpu.matmul %26, %27, %cst_15 {dimension_numbers = #tpu.dot_dimension_numbers<[1], [0], [0], [1], [0, 0, 1, 1], [], []>} : vector<128x128xf32>, vector<128x128xf32>, vector<128x128xf32> -> vector<128x128xf32>
    %c0_16 = arith.constant 0 : index
    %c0_17 = arith.constant 0 : index
    %29 = vector.load %arg7[%c0_16, %c0_17] : memref<2x128xf32, #tpu.memory_space<vmem>>, vector<2x128xf32>
    %c0_18 = arith.constant 0 : index
    %c0_19 = arith.constant 0 : index
    %30 = vector.load %arg8[%c0_18, %c0_19] : memref<1x128xf32, #tpu.memory_space<vmem>>, vector<1x128xf32>
    %c0_20 = arith.constant 0 : index
    %c0_21 = arith.constant 0 : index
    %31 = vector.load %arg9[%c0_20, %c0_21] : memref<1x128xf32, #tpu.memory_space<vmem>>, vector<1x128xf32>
    %32 = vector.extract_strided_slice %29 {offsets = [0, 0], sizes = [1, 128], strides = [1, 1]} : vector<2x128xf32> to vector<1x128xf32>
    %cst_22 = arith.constant 7.812500e-03 : f32
    %33 = vector.broadcast %cst_22 : f32 to vector<1x128xf32>
    %34 = arith.mulf %32, %33 : vector<1x128xf32>
    %35 = vector.extract_strided_slice %29 {offsets = [1, 0], sizes = [1, 128], strides = [1, 1]} : vector<2x128xf32> to vector<1x128xf32>
    %cst_23 = arith.constant 7.812500e-03 : f32
    %36 = vector.broadcast %cst_23 : f32 to vector<1x128xf32>
    %37 = arith.mulf %35, %36 : vector<1x128xf32>
    %38 = arith.mulf %34, %34 : vector<1x128xf32>
    %39 = arith.subf %37, %38 : vector<1x128xf32>
    %cst_24 = arith.constant 0.000000e+00 : f32
    %40 = vector.broadcast %cst_24 : f32 to vector<1x128xf32>
    %41 = arith.maximumf %39, %40 : vector<1x128xf32>
    %42 = vector.broadcast %34 : vector<1x128xf32> to vector<128x128xf32>
    %43 = arith.subf %28, %42 : vector<128x128xf32>
    %cst_25 = arith.constant 9.99999974E-6 : f32
    %44 = vector.broadcast %cst_25 : f32 to vector<1x128xf32>
    %45 = arith.addf %41, %44 : vector<1x128xf32>
    %46 = math.rsqrt %45 : vector<1x128xf32>
    %47 = arith.mulf %46, %30 : vector<1x128xf32>
    %48 = vector.broadcast %47 : vector<1x128xf32> to vector<128x128xf32>
    %49 = arith.mulf %43, %48 : vector<128x128xf32>
    %50 = vector.broadcast %31 : vector<1x128xf32> to vector<128x128xf32>
    %51 = arith.addf %49, %50 : vector<128x128xf32>
    %52 = arith.addf %25, %51 : vector<128x128xf32>
    %cst_26 = arith.constant 0.000000e+00 : f32
    %53 = vector.broadcast %cst_26 : f32 to vector<128x128xf32>
    %54 = arith.maximumf %52, %53 : vector<128x128xf32>
    %c0_27 = arith.constant 0 : index
    %c0_28 = arith.constant 0 : index
    %55 = vector.load %arg10[%c0_27, %c0_28] : memref<128x128xf32, #tpu.memory_space<vmem>>, vector<128x128xf32>
    tpu.vector_store %arg10[%c0_27, %c0_28], %54 {strides = array<i32>} : memref<128x128xf32, #tpu.memory_space<vmem>>, vector<128x128xf32>,
    return
  }
  func.func @transform_0(%arg0: i32) -> (i32, i32) {
    %c0_i32 = arith.constant 0 : i32
    %c0_i32_0 = arith.constant 0 : i32
    return %arg0, %c0_i32 : i32, i32
  }
  func.func @transform_1(%arg0: i32) -> (i32, i32) {
    %c0_i32 = arith.constant 0 : i32
    %c0_i32_0 = arith.constant 0 : i32
    %c0_i32_1 = arith.constant 0 : i32
    return %c0_i32, %c0_i32_0 : i32, i32
  }
  func.func @transform_2(%arg0: i32) -> (i32, i32) {
    %c0_i32 = arith.constant 0 : i32
    %c0_i32_0 = arith.constant 0 : i32
    %c0_i32_1 = arith.constant 0 : i32
    return %c0_i32, %c0_i32_0 : i32, i32
  }
  func.func @transform_3(%arg0: i32) -> (i32, i32) {
    %c0_i32 = arith.constant 0 : i32
    %c0_i32_0 = arith.constant 0 : i32
    %c0_i32_1 = arith.constant 0 : i32
    return %c0_i32, %c0_i32_0 : i32, i32
  }
  func.func @transform_4(%arg0: i32) -> (i32, i32) {
    %c0_i32 = arith.constant 0 : i32
    %c0_i32_0 = arith.constant 0 : i32
    return %arg0, %c0_i32 : i32, i32
  }
  func.func @transform_5(%arg0: i32) -> (i32, i32) {
    %c0_i32 = arith.constant 0 : i32
    %c0_i32_0 = arith.constant 0 : i32
    %c0_i32_1 = arith.constant 0 : i32
    return %c0_i32, %c0_i32_0 : i32, i32
  }
  func.func @transform_6(%arg0: i32) -> (i32, i32) {
    %c0_i32 = arith.constant 0 : i32
    %c0_i32_0 = arith.constant 0 : i32
    %c0_i32_1 = arith.constant 0 : i32
    return %c0_i32, %c0_i32_0 : i32, i32
  }
  func.func @transform_7(%arg0: i32) -> (i32, i32) {
    %c0_i32 = arith.constant 0 : i32
    %c0_i32_0 = arith.constant 0 : i32
    %c0_i32_1 = arith.constant 0 : i32
    return %c0_i32, %c0_i32_0 : i32, i32
  }
  func.func @transform_8(%arg0: i32) -> (i32, i32) {
    %c0_i32 = arith.constant 0 : i32
    %c0_i32_0 = arith.constant 0 : i32
    %c0_i32_1 = arith.constant 0 : i32
    return %c0_i32, %c0_i32_0 : i32, i32
  }
  func.func @transform_9(%arg0: i32) -> (i32, i32) {
    %c0_i32 = arith.constant 0 : i32
    %c0_i32_0 = arith.constant 0 : i32
    return %arg0, %c0_i32 : i32, i32
  }
}

</mosaic_0001>

<bundles_post_ra>
// kernel: res_bottleneck_block.6
= control target key start
LH: loop header
LB: loop body
LE: loop exit
PB: predicated region body
PF: predicated region fallthrough
CT: control target
= control target key end

     0   :  { %s781_s12 = smov 0   ;;  %s979_s0 = inlined_call_operand.vmem [shape: f32[512,128], index: 0, kind: input, shape index: {}]   ;;  %s980_s1 = inlined_call_operand.vmem [shape: f32[128,128], index: 1, kind: input, shape index: {}]   ;;  %s981_s2 = inlined_call_operand.vmem [shape: f32[512,128], index: 2, kind: output, shape index: {0}]   ;;  %s982_s3 = inlined_call_operand.vmem [shape: f32[2,128], index: 3, kind: output, shape index: {1}]  }
   0x1 LB: > { %s787_s13 = sadd.s32 4294967295, %s758_s12   ;;  %p598_p0 = scmp.ge.s32.totalorder %s758_s12, 1  ;;  %s758_s12 = sphi %s781_s12, %s14_s12  }
   0x2   : > { %p136_p1 = scmp.lt.s32.totalorder %s758_s12, 5 }
   0x4   : > { %p137_p2 = pnand %p598_p0, %p136_p1 }
   0x5   : > { %v188_v0 = vld [vmem:[%s980_s1] sm:$0xff] (!%p137_p2)  ;;  %v189_v1 = vld [vmem:[%s980_s1 + $0x8] sm:$0xff] (!%p137_p2)  ;;  %v190_v2 = vld [vmem:[%s980_s1 + $0x10] sm:$0xff] (!%p137_p2)  ;;  %s599_s20 = sshll.u32 (!%p137_p2), %s787_s13, 4  ;;  %p603_p4 = scmp.ne.s32.totalorder (!%p137_p2), %s787_s13, 0 }
   0x6   : > { %140 = sbr.rel (%p137_p2) target bundleno = 326 (0x146), region = 28  ;;  %v695_v3 = vpack.c.bf16 (!%p137_p2), %v189_v1, %v188_v0  ;;  %v191_v4 = vld [vmem:[%s980_s1 + $0x18] sm:$0xff] (!%p137_p2)  ;;  %p161_p3 = scmp.lt.s32.totalorder (!%p137_p2), %s599_s20, 63  ;;  %v192_v6 = vld [vmem:[%s980_s1 + $0x20] sm:$0xff] (!%p137_p2)  ;;  %v193_v7 = vld [vmem:[%s980_s1 + $0x28] sm:$0xff] (!%p137_p2) }
   0x7   : > { %v699_v5 = vpack.c.bf16 (!%p137_p2), %v191_v4, %v190_v2  ;;  %v703_v8 = vpack.c.bf16 (!%p137_p2), %v193_v7, %v192_v6  ;;  %v194_v9 = vld [vmem:[%s980_s1 + $0x30] sm:$0xff] (!%p137_p2)  ;;  %v195_v10 = vld [vmem:[%s980_s1 + $0x38] sm:$0xff] (!%p137_p2)  ;;  %v196_v14 = vld [vmem:[%s980_s1 + $0x40] sm:$0xff] (!%p137_p2) }
   0x8   : > { %696 = vmatprep.subr.bf16.mxu0 (!%p137_p2), %v695_v3  ;;  %727 = vmatprep.subr.bf16.mxu1 (!%p137_p2), %v695_v3  ;;  %v707_v13 = vpack.c.bf16 (!%p137_p2), %v195_v10, %v194_v9  ;;  %v197_v15 = vld [vmem:[%s980_s1 + $0x48] sm:$0xff] (!%p137_p2)  ;;  %v198_v17 = vld [vmem:[%s980_s1 + $0x50] sm:$0xff] (!%p137_p2)  ;;  %v199_v18 = vld [vmem:[%s980_s1 + $0x58] sm:$0xff] (!%p137_p2) }
   0x9   : > { %698 = vmatpush3.bf16.msra.mxu0 (!%p137_p2), %v695_v3  ;;  %735 = vmatpush3.bf16.msra.mxu1 (!%p137_p2), %v695_v3  ;;  %v711_v16 = vpack.c.bf16 (!%p137_p2), %v197_v15, %v196_v14  ;;  %v715_v19 = vpack.c.bf16 (!%p137_p2), %v199_v18, %v198_v17  ;;  %v200_v20 = vld [vmem:[%s980_s1 + $0x60] sm:$0xff] (!%p137_p2)  ;;  %v201_v21 = vld [vmem:[%s980_s1 + $0x68] sm:$0xff] (!%p137_p2)  ;;  %v202_v23 = vld [vmem:[%s980_s1 + $0x70] sm:$0xff] (!%p137_p2) }
   0xa   : > { %700 = vmatprep.subr.bf16.mxu0 (!%p137_p2), %v699_v5  ;;  %728 = vmatprep.subr.bf16.mxu1 (!%p137_p2), %v699_v5  ;;  %v719_v22 = vpack.c.bf16 (!%p137_p2), %v201_v21, %v200_v20  ;;  %v203_v24 = vld [vmem:[%s980_s1 + $0x78] sm:$0xff] (!%p137_p2) }
   0xb   : > { %v723_v25 = vpack.c.bf16 (!%p137_p2), %v203_v24, %v202_v23 }
   0xd   : > { %s984_s20 = smov (!%p161_p3, %s599_s20), 63  ;;  %702 = vmatpush3.bf16.msra.mxu0 %v699_v5  ;;  %736 = vmatpush3.bf16.msra.mxu1 %v699_v5  ;;  %v760_v56 = vmov (!%p603_p4), 0.0  }
   0xe   : > { %s600_s27 = sshll.u32 %s984_s20, 3  ;;  %704 = vmatprep.subr.bf16.mxu0 %v703_v8  ;;  %729 = vmatprep.subr.bf16.mxu1 %v703_v8  ;;  %369 = vst [vmem:[%s982_s3] sm:$0x3] (!%p603_p4), %v760_v56 }
   0xf   : > { %s824_s7 = scalar_lea.vmem %s979_s0, %s600_s27  ;;  %s871_s30 = scalar_lea.vmem %s981_s2, %s600_s27 }
  0x10   : > { %v172_v11 = vld [vmem:[%s824_s7] sm:$0xff]  ;;  %v173_v26 = vld [vmem:[%s824_s7 + $0x8] sm:$0xff]  ;;  %v174_v28 = vld [vmem:[%s824_s7 + $0x10] sm:$0xff] }
  0x11   : > { %v180_v12 = vld [vmem:[%s824_s7 + $0x40] sm:$0xff]  ;;  %671 = vmatprep.mubr.f32.mxu0 %v172_v11  ;;  %706 = vmatpush3.bf16.msra.mxu0 %v703_v8  ;;  %v181_v27 = vld [vmem:[%s824_s7 + $0x48] sm:$0xff]  ;;  %v182_v29 = vld [vmem:[%s824_s7 + $0x50] sm:$0xff] }
  0x12   : > { %683 = vmatprep.mubr.f32.mxu1 %v180_v12  ;;  %737 = vmatpush3.bf16.msra.mxu1 %v703_v8  ;;  %v175_v30 = vld [vmem:[%s824_s7 + $0x18] sm:$0xff]  ;;  %v176_v32 = vld [vmem:[%s824_s7 + $0x20] sm:$0xff]  ;;  %v177_v34 = vld [vmem:[%s824_s7 + $0x28] sm:$0xff] }
  0x13   : > { %708 = vmatprep.subr.bf16.mxu0 %v707_v13  ;;  %730 = vmatprep.subr.bf16.mxu1 %v707_v13  ;;  %v183_v31 = vld [vmem:[%s824_s7 + $0x58] sm:$0xff]  ;;  %v184_v33 = vld [vmem:[%s824_s7 + $0x60] sm:$0xff]  ;;  %v185_v35 = vld [vmem:[%s824_s7 + $0x68] sm:$0xff] }
  0x14   : > { %v178_v36 = vld [vmem:[%s824_s7 + $0x30] sm:$0xff]  ;;  %v179_v38 = vld [vmem:[%s824_s7 + $0x38] sm:$0xff] }
  0x15   : > { %710 = vmatpush3.bf16.msra.mxu0 %v707_v13  ;;  %v186_v37 = vld [vmem:[%s824_s7 + $0x70] sm:$0xff]  ;;  %v187_v39 = vld [vmem:[%s824_s7 + $0x78] sm:$0xff] }
  0x16   : > { %738 = vmatpush3.bf16.msra.mxu1 %v707_v13  ;;  %712 = vmatprep.subr.bf16.mxu0 %v711_v16 }
  0x17   : > { %731 = vmatprep.subr.bf16.mxu1 %v711_v16 }
  0x19   : > { %714 = vmatpush3.bf16.msra.mxu0 %v711_v16 }
  0x1a   : > { %739 = vmatpush3.bf16.msra.mxu1 %v711_v16  ;;  %716 = vmatprep.subr.bf16.mxu0 %v715_v19 }
  0x1b   : > { %732 = vmatprep.subr.bf16.mxu1 %v715_v19 }
  0x1d   : > { %718 = vmatpush3.bf16.msra.mxu0 %v715_v19 }
  0x1e   : > { %740 = vmatpush3.bf16.msra.mxu1 %v715_v19  ;;  %720 = vmatprep.subr.bf16.mxu0 %v719_v22 }
  0x1f   : > { %733 = vmatprep.subr.bf16.mxu1 %v719_v22 }
  0x21   : > { %722 = vmatpush3.bf16.msra.mxu0 %v719_v22 }
  0x22   : > { %741 = vmatpush3.bf16.msra.mxu1 %v719_v22  ;;  %724 = vmatprep.subr.bf16.mxu0 %v723_v25 }
  0x23   : > { %734 = vmatprep.subr.bf16.mxu1 %v723_v25 }
  0x25   : > { %726 = vmatpush3.bf16.msra.mxu0 %v723_v25 }
  0x26   : > { %742 = vmatpush3.bf16.msra.mxu1 %v723_v25 }
  0x28   : > { %672 = vmatmul.mubr.f32.vlgmr.msra.gmra.mrb[0].mxu0 %v173_v26 }
  0x29   : > { %684 = vmatmul.mubr.f32.vlgmr.msra.gmra.mrb[0].mxu1 %v181_v27  ;;  %674 = vmatprep.mubr.f32.mxu0 %v174_v28 }
  0x2a   : > { %686 = vmatprep.mubr.f32.mxu1 %v182_v29 }
  0x2c   : > { %675 = vmatmul.mubr.f32.gmra.mrb[2].mxu0 %v175_v30 }
  0x2d   : > { %687 = vmatmul.mubr.f32.gmra.mrb[2].mxu1 %v183_v31  ;;  %677 = vmatprep.mubr.f32.mxu0 %v176_v32 }
  0x2e   : > { %689 = vmatprep.mubr.f32.mxu1 %v184_v33 }
  0x30   : > { %678 = vmatmul.mubr.f32.gmra.mrb[4].mxu0 %v177_v34 }
  0x31   : > { %690 = vmatmul.mubr.f32.gmra.mrb[4].mxu1 %v185_v35  ;;  %680 = vmatprep.mubr.f32.mxu0 %v178_v36 }
  0x32   : > { %692 = vmatprep.mubr.f32.mxu1 %v186_v37 }
  0x34   : > { %681 = vmatmul.mubr.f32.gmra.mrb[6].mxu0 %v179_v38 }
  0x35   : > { %693 = vmatmul.mubr.f32.gmra.mrb[6].mxu1 %v187_v39 }
  0xfb   : > { %v673_v40 = vpop.f32.mrb[0].mxu0 }
  0xfc   : > { %v873_v41 = vpop.f32.mrb[0].mxu1  ;;  %350 = vst [vmem:[%s871_s30 + $0x8] sm:$0xff] %v673_v40  ;;  %v270_v42 = vpop.f32.mrb[1].mxu0 }
  0xfd   : > { %358 = vst [vmem:[%s871_s30 + $0x48] sm:$0xff] %v873_v41  ;;  %v878_v43 = vpop.f32.mrb[1].mxu1  ;;  %349 = vst [vmem:[%s871_s30] sm:$0xff] %v270_v42 }
  0xfe   : > { %357 = vst [vmem:[%s871_s30 + $0x40] sm:$0xff] %v878_v43 }
  0xff   : > { %v676_v44 = vpop.f32.mrb[2].mxu0 }
 0x100   : > { %v883_v45 = vpop.f32.mrb[2].mxu1  ;;  %352 = vst [vmem:[%s871_s30 + $0x18] sm:$0xff] %v676_v44  ;;  %v280_v46 = vpop.f32.mrb[3].mxu0 }
 0x101   : > { %360 = vst [vmem:[%s871_s30 + $0x58] sm:$0xff] %v883_v45  ;;  %v888_v47 = vpop.f32.mrb[3].mxu1  ;;  %351 = vst [vmem:[%s871_s30 + $0x10] sm:$0xff] %v280_v46 }
 0x102   : > { %359 = vst [vmem:[%s871_s30 + $0x50] sm:$0xff] %v888_v47 }
 0x103   : > { %v893_v48 = vpop.f32.mrb[4].mxu0 }
 0x104   : > { %v895_v49 = vpop.f32.mrb[4].mxu1  ;;  %354 = vst [vmem:[%s871_s30 + $0x28] sm:$0xff] %v893_v48  ;;  %v290_v50 = vpop.f32.mrb[5].mxu0  ;;  %368 = sbr.rel (%p603_p4) target bundleno = 267 (0x10b), region = 32 }
 0x105   : > { %362 = vst [vmem:[%s871_s30 + $0x68] sm:$0xff] %v895_v49  ;;  %v901_v51 = vpop.f32.mrb[5].mxu1  ;;  %353 = vst [vmem:[%s871_s30 + $0x20] sm:$0xff] %v290_v50 }
 0x106   : > { %361 = vst [vmem:[%s871_s30 + $0x60] sm:$0xff] %v901_v51 }
 0x107   : > { %v906_v52 = vpop.f32.mrb[6].mxu0 }
 0x108   : > { %v908_v53 = vpop.f32.mrb[6].mxu1  ;;  %356 = vst [vmem:[%s871_s30 + $0x38] sm:$0xff] %v906_v52  ;;  %v300_v54 = vpop.f32.mrb[7].mxu0 }
 0x109   : > { %364 = vst [vmem:[%s871_s30 + $0x78] sm:$0xff] %v908_v53  ;;  %v914_v55 = vpop.f32.mrb[7].mxu1  ;;  %355 = vst [vmem:[%s871_s30 + $0x30] sm:$0xff] %v300_v54 }
 0x10a   : > { %363 = vst [vmem:[%s871_s30 + $0x70] sm:$0xff] %v914_v55 }
 0x10b PF: > { %v371_v57 = vlaneseq  ;;  %s604_s4 = sshll.u32 %s787_s13, 7 }
 0x10c   : > { %v927_v60 = vstv %s604_s4 }
 0x10d   : > { %v923_v58 = vshrl.u32 %v371_v57, 7 }
 0x10f   : > { %v373_v59 = vadd.s32 8, %v923_v58  ;;  %v374_v61 = vadd.s32 16, %v923_v58  ;;  %v375_v62 = vadd.s32 24, %v923_v58  ;;  %v389_v63 = vadd.s32 %v927_v60, %v923_v58 }
 0x110   : > { %v376_v1 = vadd.s32 32, %v923_v58  ;;  %v377_v3 = vadd.s32 40, %v923_v58  ;;  %v378_v5 = vadd.s32 48, %v923_v58  ;;  %v379_v9 = vadd.s32 56, %v923_v58 }
 0x111   : > { %v390_v0 = vadd.s32 %v927_v60, %v373_v59  ;;  %v391_v2 = vadd.s32 %v927_v60, %v374_v61  ;;  %v392_v4 = vadd.s32 %v927_v60, %v375_v62  ;;  %vm405_vm0 = vcmp.lt.s32.totalorder %v389_v63, 512 }
 0x112   : > { %v393_v6 = vadd.s32 %v927_v60, %v376_v1  ;;  %v453_v7 = vsel %vm405_vm0, %v270_v42, 0.0  ;;  %v394_v10 = vadd.s32 %v927_v60, %v377_v3  ;;  %v380_v11 = vadd.s32 64, %v923_v58 }
 0x113   : > { %vm406_vm1 = vcmp.lt.s32.totalorder %v390_v0, 512  ;;  %vm407_vm2 = vcmp.lt.s32.totalorder %v391_v2, 512  ;;  %vm408_vm3 = vcmp.lt.s32.totalorder %v392_v4, 512  ;;  %v395_v14 = vadd.s32 %v927_v60, %v378_v5 }
 0x114   : > { %v454_v8 = vsel %vm406_vm1, %v673_v40, 0.0  ;;  %v455_v12 = vsel %vm407_vm2, %v280_v46, 0.0  ;;  %vm409_vm4 = vcmp.lt.s32.totalorder %v393_v6, 512  ;;  %v491_v15 = vmul.f32 %v453_v7, %v453_v7 }
 0x115   : > { %v470_v13 = vadd.f32 %v454_v8, %v453_v7  ;;  %v492_v16 = vmul.f32 %v454_v8, %v454_v8  ;;  %v456_v17 = vsel %vm408_vm3, %v676_v44, 0.0  ;;  %v381_v19 = vadd.s32 72, %v923_v58 }
 0x116   : > { %v396_v20 = vadd.s32 %v927_v60, %v379_v9  ;;  %vm410_vm5 = vcmp.lt.s32.totalorder %v394_v10, 512  ;;  %v493_v21 = vmul.f32 %v455_v12, %v455_v12  ;;  %v382_v22 = vadd.s32 80, %v923_v58 }
 0x117   : > { %v471_v18 = vadd.f32 %v470_v13, %v455_v12  ;;  %v457_v23 = vsel %vm409_vm4, %v290_v50, 0.0  ;;  %v397_v25 = vadd.s32 %v927_v60, %v380_v11  ;;  %vm411_vm6 = vcmp.lt.s32.totalorder %v395_v14, 512 }
 0x118   : > { %v494_v26 = vmul.f32 %v456_v17, %v456_v17  ;;  %v507_v27 = vadd.f32 %v492_v16, %v491_v15  ;;  %v383_v28 = vadd.s32 88, %v923_v58  ;;  %v458_v29 = vsel %vm410_vm5, %v893_v48, 0.0 }
 0x119   : > { %v472_v24 = vadd.f32 %v471_v18, %v456_v17  ;;  %v398_v31 = vadd.s32 %v927_v60, %v381_v19  ;;  %vm412_vm7 = vcmp.lt.s32.totalorder %v396_v20, 512  ;;  %v495_v32 = vmul.f32 %v457_v23, %v457_v23 }
 0x11a   : > { %v508_v33 = vadd.f32 %v507_v27, %v493_v21  ;;  %v384_v34 = vadd.s32 96, %v923_v58  ;;  %v459_v35 = vsel %vm411_vm6, %v300_v54, 0.0  ;;  %v399_v37 = vadd.s32 %v927_v60, %v382_v22 }
 0x11b   : > { %v473_v30 = vadd.f32 %v472_v24, %v457_v23  ;;  %vm413_vm8 = vcmp.lt.s32.totalorder %v397_v25, 512  ;;  %v496_v38 = vmul.f32 %v458_v29, %v458_v29  ;;  %v385_v40 = vadd.s32 104, %v923_v58 }
 0x11c   : > { %v509_v39 = vadd.f32 %v508_v33, %v494_v26  ;;  %v460_v42 = vsel %vm412_vm7, %v906_v52, 0.0  ;;  %v400_v46 = vadd.s32 %v927_v60, %v383_v28  ;;  %vm414_vm9 = vcmp.lt.s32.totalorder %v398_v31, 512 }
 0x11d   : > { %v474_v36 = vadd.f32 %v473_v30, %v458_v29  ;;  %v497_v48 = vmul.f32 %v459_v35, %v459_v35  ;;  %v386_v56 = vadd.s32 112, %v923_v58  ;;  %v461_v54 = vsel %vm413_vm8, %v878_v43, 0.0 }
 0x11e   : > { %v510_v50 = vadd.f32 %v509_v39, %v495_v32  ;;  %v401_v59 = vadd.s32 %v927_v60, %v384_v34  ;;  %vm415_vm10 = vcmp.lt.s32.totalorder %v399_v37, 512  ;;  %v498_v61 = vmul.f32 %v460_v42, %v460_v42 }
 0x11f   : > { %v475_v44 = vadd.f32 %v474_v36, %v459_v35  ;;  %v387_v63 = vadd.s32 120, %v923_v58  ;;  %v462_v52 = vsel %vm414_vm9, %v873_v41, 0.0  ;;  %v402_v1 = vadd.s32 %v927_v60, %v385_v40 }
 0x120   : > { %v511_v62 = vadd.f32 %v510_v50, %v496_v38  ;;  %vm416_vm11 = vcmp.lt.s32.totalorder %v400_v46, 512  ;;  %v499_v2 = vmul.f32 %v461_v54, %v461_v54  ;;  %v463_v4 = vsel %vm415_vm10, %v888_v47, 0.0 }
 0x121   : > { %v476_v57 = vadd.f32 %v475_v44, %v460_v42  ;;  %v403_v43 = vadd.s32 %v927_v60, %v386_v56  ;;  %vm417_vm12 = vcmp.lt.s32.totalorder %v401_v59, 512  ;;  %v500_v6 = vmul.f32 %v462_v52, %v462_v52 }
 0x122   : > { %v512_v3 = vadd.f32 %v511_v62, %v497_v48  ;;  %v464_v8 = vsel %vm416_vm11, %v883_v45, 0.0  ;;  %v404_v58 = vadd.s32 %v927_v60, %v387_v63  ;;  %vm418_vm13 = vcmp.lt.s32.totalorder %v402_v1, 512 }
 0x123   : > { %v477_v0 = vadd.f32 %v476_v57, %v461_v54  ;;  %v501_v41 = vmul.f32 %v463_v4, %v463_v4  ;;  %v465_v11 = vsel %vm417_vm12, %v901_v51, 0.0  ;;  %vm419_vm14 = vcmp.lt.s32.totalorder %v403_v43, 512 }
 0x124   : > { %v513_v7 = vadd.f32 %v512_v3, %v498_v61  ;;  %v502_v13 = vmul.f32 %v464_v8, %v464_v8  ;;  %v466_v14 = vsel %vm418_vm13, %v895_v49, 0.0  ;;  %vm420_vm15 = vcmp.lt.s32.totalorder %v404_v58, 512 }
 0x125   : > { %v478_v5 = vadd.f32 %v477_v0, %v462_v52  ;;  %v503_v16 = vmul.f32 %v465_v11, %v465_v11  ;;  %v467_v45 = vsel %vm419_vm14, %v914_v55, 0.0  ;;  %v504_v19 = vmul.f32 %v466_v14, %v466_v14 }
 0x126   : > { %v514_v10 = vadd.f32 %v513_v7, %v499_v2  ;;  %v468_v20 = vsel %vm420_vm15, %v908_v53, 0.0  ;;  %v505_v22 = vmul.f32 %v467_v45, %v467_v45  ;;  %vm528_vm0 = vcmask 1040384   ;;  %v469_v53 = vld [vmem:[%s982_s3] sm:$0x3] }
 0x127   : > { %v479_v9 = vadd.f32 %v478_v5, %v463_v4  ;;  %v506_v24 = vmul.f32 %v468_v20, %v468_v20 }
 0x128   : > { %v515_v47 = vadd.f32 %v514_v10, %v500_v6 }
 0x129   : > { %v480_v12 = vadd.f32 %v479_v9, %v464_v8 }
 0x12a   : > { %v516_v17 = vadd.f32 %v515_v47, %v501_v41 }
 0x12b   : > { %v481_v15 = vadd.f32 %v480_v12, %v465_v11 }
 0x12c   : > { %v517_v60 = vadd.f32 %v516_v17, %v502_v13 }
 0x12d   : > { %v482_v18 = vadd.f32 %v481_v15, %v466_v14 }
 0x12e   : > { %v518_v51 = vadd.f32 %v517_v60, %v503_v16 }
 0x12f   : > { %v483_v21 = vadd.f32 %v482_v18, %v467_v45 }
 0x130   : > { %v519_v25 = vadd.f32 %v518_v51, %v504_v19 }
 0x131   : > { %v484_v23 = vadd.f32 %v483_v21, %v468_v20 }
 0x132   : > { %v520_v27 = vadd.f32 %v519_v25, %v505_v22 }
 0x133   : > { %v485_v26 = vrot.slane %v484_v23, 4 }
 0x134   : > { %v521_v28 = vadd.f32 %v520_v27, %v506_v24 }
 0x135   : > { %v486_v49 = vadd.f32 %v485_v26, %v484_v23 }
 0x136   : > { %v522_v30 = vrot.slane %v521_v28, 4 }
 0x137   : > { %v487_v29 = vrot.slane %v486_v49, 2 }
 0x138   : > { %v523_v32 = vadd.f32 %v522_v30, %v521_v28 }
 0x139   : > { %v488_v31 = vadd.f32 %v487_v29, %v486_v49 }
 0x13a   : > { %v524_v33 = vrot.slane %v523_v32, 2 }
 0x13b   : > { %v489_v55 = vrot.slane %v488_v31, 1 }
 0x13c   : > { %v525_v34 = vadd.f32 %v524_v33, %v523_v32 }
 0x13d   : > { %v490_v35 = vadd.f32 %v489_v55, %v488_v31 }
 0x13e   : > { %v526_v36 = vrot.slane %v525_v34, 1 }
 0x140   : > { %v527_v37 = vadd.f32 %v526_v36, %v525_v34 }
 0x142   : > { %v529_v38 = vsel %vm528_vm0, %v490_v35, %v527_v37 }
 0x143   : > { %v530_v39 = vadd.f32 %v529_v38, %v469_v53 }
 0x145   : > { %531 = vst [vmem:[%s982_s3] sm:$0x3] %v530_v39 }
 0x146 PF: > { %s14_s12 = sadd.s32 1, %s758_s12  }
 0x147   : > { %p11_p5 = scmp.ge.s32.totalorder %s14_s12, 6  }
 0x149   :  { %13 = sbr.rel (!%p11_p5) target bundleno = 1 (0x1), region = 70 }

// kernel: res_bottleneck_block.7
= control target key start
LH: loop header
LB: loop body
LE: loop exit
PB: predicated region body
PF: predicated region fallthrough
CT: control target
= control target key end

     0   :  { %s442_s15 = smov 0   ;;  %s511_s0 = inlined_call_operand.vmem [shape: f32[512,128], index: 0, kind: input, shape index: {}]   ;;  %s512_s1 = inlined_call_operand.vmem [shape: f32[2,128], index: 1, kind: input, shape index: {}]   ;;  %s513_s2 = inlined_call_operand.vmem [shape: f32[1,128], index: 2, kind: input, shape index: {}]   ;;  %s514_s3 = inlined_call_operand.vmem [shape: f32[1,128], index: 3, kind: input, shape index: {}]   ;;  %s515_s4 = inlined_call_operand.vmem [shape: f32[512,128], index: 4, kind: output, shape index: {}]  }
   0x1 LB: > { %s386_s16 = sadd.s32 4294967295, %s415_s15   ;;  %p390_p0 = scmp.ge.s32.totalorder %s415_s15, 1  ;;  %s415_s15 = sphi %s442_s15, %s14_s15  }
   0x2   : > { %p163_p1 = scmp.lt.s32.totalorder %s415_s15, 5 }
   0x4   : > { %p164_p2 = pnand %p390_p0, %p163_p1 }
   0x5   : > { %v217_v0 = vld [vmem:[%s512_s1] sm:$0x3] (!%p164_p2)  ;;  %s391_s19 = sshll.u32 (!%p164_p2), %s386_s16, 4  ;;  %v227_v5 = vlaneseq (!%p164_p2) }
   0x6   : > { %167 = sbr.rel (%p164_p2) target bundleno = 50 (0x32), region = 36  ;;  %v220_v1 = vmul.f32 (!%p164_p2), 0.001953125, %v217_v0  ;;  %p190_p3 = scmp.lt.s32.totalorder (!%p164_p2), %s391_s19, 63  ;;  %v395_v11 = vld [vmem:[%s513_s2] ss:$0 sm:$0xff] (!%p164_p2) }
   0x7   : > { %v228_v7 = vshrl.u32 (!%p164_p2), %v227_v5, 7  ;;  %v396_v44 = vld [vmem:[%s514_s3] ss:$0 sm:$0xff] (!%p164_p2) }
   0x8   : > { %v221_v2 = vmul.f32 (!%p164_p2), %v220_v1, %v220_v1 }
   0x9   : > { %v229_v9 = vsub.s32 (!%p164_p2), 0, %v228_v7  ;;  %v258_v19 = vsub.s32 (!%p164_p2), 1, %v228_v7 }
   0xa   : > { %v223_v3 = vrot.slane (!%p164_p2), %v221_v2, 7 }
   0xb   : > { %v464_v12 = vrot.slane (!%p164_p2), %v220_v1, %v229_v9 }
   0xc   : > { %v225_v4 = vsub.f32 (!%p164_p2), %v220_v1, %v223_v3 }
   0xd   : > { %s517_s19 = smov (!%p190_p3, %s391_s19), 63 }
   0xe   : > { %v226_v6 = vmax.f32 %v225_v4, 0.0  ;;  %s392_s20 = sshll.u32 %s517_s19, 3 }
   0xf   : > { %s193_s23 = scalar_lea.vmem %s511_s0, %s392_s20  ;;  %s490_s30 = scalar_lea.vmem %s515_s4, %s392_s20 }
  0x10   : > { %v247_v8 = vadd.f32 1e-05, %v226_v6  ;;  %v201_v10 = vld [vmem:[%s193_s23] sm:$0xff]  ;;  %v202_v13 = vld [vmem:[%s193_s23 + $0x8] sm:$0xff]  ;;  %v203_v14 = vld [vmem:[%s193_s23 + $0x10] sm:$0xff] }
  0x11   : > { %v204_v15 = vld [vmem:[%s193_s23 + $0x18] sm:$0xff]  ;;  %v205_v16 = vld [vmem:[%s193_s23 + $0x20] sm:$0xff]  ;;  %v206_v17 = vld [vmem:[%s193_s23 + $0x28] sm:$0xff]  ;;  %v231_v24 = vsub.f32 %v201_v10, %v464_v12  ;;  %v232_v25 = vsub.f32 %v202_v13, %v464_v12  ;;  %v233_v30 = vsub.f32 %v203_v14, %v464_v12 }
  0x12   : > { %407 = vrsqrt.f32 %v247_v8  ;;  %v207_v18 = vld [vmem:[%s193_s23 + $0x30] sm:$0xff]  ;;  %v208_v20 = vld [vmem:[%s193_s23 + $0x38] sm:$0xff]  ;;  %v209_v21 = vld [vmem:[%s193_s23 + $0x40] sm:$0xff]  ;;  %v234_v31 = vsub.f32 %v204_v15, %v464_v12  ;;  %v235_v32 = vsub.f32 %v205_v16, %v464_v12  ;;  %v236_v36 = vsub.f32 %v206_v17, %v464_v12 }
  0x13   : > { %v210_v22 = vld [vmem:[%s193_s23 + $0x48] sm:$0xff]  ;;  %v211_v26 = vld [vmem:[%s193_s23 + $0x50] sm:$0xff]  ;;  %v212_v27 = vld [vmem:[%s193_s23 + $0x58] sm:$0xff]  ;;  %v237_v37 = vsub.f32 %v207_v18, %v464_v12  ;;  %v238_v38 = vsub.f32 %v208_v20, %v464_v12  ;;  %v239_v39 = vsub.f32 %v209_v21, %v464_v12 }
  0x14   : > { %v213_v28 = vld [vmem:[%s193_s23 + $0x60] sm:$0xff]  ;;  %v214_v33 = vld [vmem:[%s193_s23 + $0x68] sm:$0xff]  ;;  %v215_v34 = vld [vmem:[%s193_s23 + $0x70] sm:$0xff]  ;;  %v240_v41 = vsub.f32 %v210_v22, %v464_v12  ;;  %v241_v42 = vsub.f32 %v211_v26, %v464_v12  ;;  %v242_v43 = vsub.f32 %v212_v27, %v464_v12 }
  0x15   : > { %v216_v35 = vld [vmem:[%s193_s23 + $0x78] sm:$0xff]  ;;  %v243_v45 = vsub.f32 %v213_v28, %v464_v12  ;;  %v244_v46 = vsub.f32 %v214_v33, %v464_v12  ;;  %v245_v47 = vsub.f32 %v215_v34, %v464_v12 }
  0x16   : > { %v246_v48 = vsub.f32 %v216_v35, %v464_v12 }
  0x1c   : > { %v408_v23 = vpop.eup %407 }
  0x1d   : > { %v255_v29 = vmul.f32 %v408_v23, %v395_v11 }
  0x1f   : > { %v259_v40 = vrot.slane %v255_v29, %v258_v19 }
  0x21   : > { %v260_v49 = vmul.f32 %v259_v40, %v231_v24  ;;  %v261_v50 = vmul.f32 %v259_v40, %v232_v25  ;;  %v262_v51 = vmul.f32 %v259_v40, %v233_v30  ;;  %v263_v52 = vmul.f32 %v259_v40, %v234_v31 }
  0x22   : > { %v264_v53 = vmul.f32 %v259_v40, %v235_v32  ;;  %v265_v54 = vmul.f32 %v259_v40, %v236_v36  ;;  %v266_v55 = vmul.f32 %v259_v40, %v237_v37  ;;  %v267_v56 = vmul.f32 %v259_v40, %v238_v38 }
  0x23   : > { %v282_v57 = vadd.f32 %v396_v44, %v260_v49  ;;  %v283_v58 = vadd.f32 %v396_v44, %v261_v50  ;;  %v284_v59 = vadd.f32 %v396_v44, %v262_v51  ;;  %v285_v60 = vadd.f32 %v396_v44, %v263_v52 }
  0x24   : > { %v286_v61 = vadd.f32 %v396_v44, %v264_v53  ;;  %v287_v62 = vadd.f32 %v396_v44, %v265_v54  ;;  %v288_v63 = vadd.f32 %v396_v44, %v266_v55  ;;  %v289_v0 = vadd.f32 %v396_v44, %v267_v56 }
  0x25   : > { %v298_v1 = vmax.f32 %v282_v57, 0.0  ;;  %v299_v2 = vmax.f32 %v283_v58, 0.0  ;;  %v300_v3 = vmax.f32 %v284_v59, 0.0  ;;  %v301_v4 = vmax.f32 %v285_v60, 0.0 }
  0x26   : > { %v302_v5 = vmax.f32 %v286_v61, 0.0  ;;  %v303_v6 = vmax.f32 %v287_v62, 0.0  ;;  %v304_v7 = vmax.f32 %v288_v63, 0.0  ;;  %v305_v8 = vmax.f32 %v289_v0, 0.0 }
  0x27   : > { %314 = vst [vmem:[%s490_s30] sm:$0xff] %v298_v1  ;;  %315 = vst [vmem:[%s490_s30 + $0x8] sm:$0xff] %v299_v2  ;;  %v268_v9 = vmul.f32 %v259_v40, %v239_v39  ;;  %v269_v10 = vmul.f32 %v259_v40, %v240_v41  ;;  %v270_v11 = vmul.f32 %v259_v40, %v241_v42 }
  0x28   : > { %316 = vst [vmem:[%s490_s30 + $0x10] sm:$0xff] %v300_v3  ;;  %317 = vst [vmem:[%s490_s30 + $0x18] sm:$0xff] %v301_v4  ;;  %v271_v12 = vmul.f32 %v259_v40, %v242_v43  ;;  %v272_v13 = vmul.f32 %v259_v40, %v243_v45  ;;  %v273_v14 = vmul.f32 %v259_v40, %v244_v46 }
  0x29   : > { %318 = vst [vmem:[%s490_s30 + $0x20] sm:$0xff] %v302_v5  ;;  %319 = vst [vmem:[%s490_s30 + $0x28] sm:$0xff] %v303_v6  ;;  %v274_v15 = vmul.f32 %v259_v40, %v245_v47  ;;  %v275_v16 = vmul.f32 %v259_v40, %v246_v48  ;;  %v290_v17 = vadd.f32 %v396_v44, %v268_v9 }
  0x2a   : > { %320 = vst [vmem:[%s490_s30 + $0x30] sm:$0xff] %v304_v7  ;;  %321 = vst [vmem:[%s490_s30 + $0x38] sm:$0xff] %v305_v8  ;;  %v291_v18 = vadd.f32 %v396_v44, %v269_v10  ;;  %v292_v19 = vadd.f32 %v396_v44, %v270_v11  ;;  %v293_v20 = vadd.f32 %v396_v44, %v271_v12 }
  0x2b   : > { %v294_v21 = vadd.f32 %v396_v44, %v272_v13  ;;  %v295_v22 = vadd.f32 %v396_v44, %v273_v14  ;;  %v296_v23 = vadd.f32 %v396_v44, %v274_v15  ;;  %v297_v24 = vadd.f32 %v396_v44, %v275_v16 }
  0x2c   : > { %v306_v25 = vmax.f32 %v290_v17, 0.0  ;;  %v307_v26 = vmax.f32 %v291_v18, 0.0  ;;  %v308_v27 = vmax.f32 %v292_v19, 0.0  ;;  %v309_v28 = vmax.f32 %v293_v20, 0.0 }
  0x2d   : > { %v310_v29 = vmax.f32 %v294_v21, 0.0  ;;  %v311_v30 = vmax.f32 %v295_v22, 0.0  ;;  %v312_v31 = vmax.f32 %v296_v23, 0.0  ;;  %v313_v32 = vmax.f32 %v297_v24, 0.0 }
  0x2e   : > { %322 = vst [vmem:[%s490_s30 + $0x40] sm:$0xff] %v306_v25  ;;  %323 = vst [vmem:[%s490_s30 + $0x48] sm:$0xff] %v307_v26 }
  0x2f   : > { %324 = vst [vmem:[%s490_s30 + $0x50] sm:$0xff] %v308_v27  ;;  %325 = vst [vmem:[%s490_s30 + $0x58] sm:$0xff] %v309_v28 }
  0x30   : > { %326 = vst [vmem:[%s490_s30 + $0x60] sm:$0xff] %v310_v29  ;;  %327 = vst [vmem:[%s490_s30 + $0x68] sm:$0xff] %v311_v30 }
  0x31   : > { %328 = vst [vmem:[%s490_s30 + $0x70] sm:$0xff] %v312_v31  ;;  %329 = vst [vmem:[%s490_s30 + $0x78] sm:$0xff] %v313_v32 }
  0x32 PF: > { %s14_s15 = sadd.s32 1, %s415_s15  }
  0x33   : > { %p11_p4 = scmp.ge.s32.totalorder %s14_s15, 6  }
  0x35   :  { %13 = sbr.rel (!%p11_p4) target bundleno = 1 (0x1), region = 66 }

// kernel: res_bottleneck_block.9
= control target key start
LH: loop header
LB: loop body
LE: loop exit
PB: predicated region body
PF: predicated region fallthrough
CT: control target
= control target key end

     0   :  { %v43_v5 = vlaneseq  ;;  %s302_s1 = inlined_call_operand.vmem [shape: f32[2,128], index: 1, kind: input, shape index: {}]   ;;  %s303_s0 = inlined_call_operand.vmem [shape: f32[128,128], index: 0, kind: input, shape index: {}]   ;;  %s304_s2 = inlined_call_operand.vmem [shape: f32[1,128], index: 2, kind: input, shape index: {}]   ;;  %s305_s3 = inlined_call_operand.vmem [shape: f32[1,128], index: 3, kind: input, shape index: {}]   ;;  %s306_s4 = inlined_call_operand.vmem [shape: f32[128,128], index: 4, kind: output, shape index: {}]  }
   0x1   :  { %v33_v0 = vld [vmem:[%s302_s1] sm:$0x3]  ;;  %v18_v13 = vld [vmem:[%s303_s0 + $0x8] sm:$0xff]  ;;  %v19_v14 = vld [vmem:[%s303_s0 + $0x10] sm:$0xff] }
   0x2   :  { %v36_v1 = vmul.f32 0.0078125, %v33_v0  ;;  %v44_v7 = vshrl.u32 %v43_v5, 7  ;;  %v17_v10 = vld [vmem:[%s303_s0] sm:$0xff]  ;;  %v20_v15 = vld [vmem:[%s303_s0 + $0x18] sm:$0xff]  ;;  %v22_v17 = vld [vmem:[%s303_s0 + $0x28] sm:$0xff] }
   0x3   :  { %v150_v11 = vld [vmem:[%s304_s2] ss:$0 sm:$0xff]  ;;  %v23_v18 = vld [vmem:[%s303_s0 + $0x30] sm:$0xff]  ;;  %v24_v20 = vld [vmem:[%s303_s0 + $0x38] sm:$0xff] }
   0x4   :  { %v37_v2 = vmul.f32 %v36_v1, %v36_v1  ;;  %v45_v9 = vsub.s32 0, %v44_v7  ;;  %v21_v16 = vld [vmem:[%s303_s0 + $0x20] sm:$0xff]  ;;  %v74_v19 = vsub.s32 1, %v44_v7  ;;  %v26_v22 = vld [vmem:[%s303_s0 + $0x48] sm:$0xff]  ;;  %v27_v26 = vld [vmem:[%s303_s0 + $0x50] sm:$0xff] }
   0x5   :  { %v25_v21 = vld [vmem:[%s303_s0 + $0x40] sm:$0xff]  ;;  %v28_v27 = vld [vmem:[%s303_s0 + $0x58] sm:$0xff]  ;;  %v30_v33 = vld [vmem:[%s303_s0 + $0x68] sm:$0xff] }
   0x6   :  { %v39_v3 = vrot.slane %v37_v2, 7  ;;  %v188_v12 = vrot.slane %v36_v1, %v45_v9  ;;  %v29_v28 = vld [vmem:[%s303_s0 + $0x60] sm:$0xff]  ;;  %v31_v34 = vld [vmem:[%s303_s0 + $0x70] sm:$0xff]  ;;  %v32_v35 = vld [vmem:[%s303_s0 + $0x78] sm:$0xff] }
   0x7   :  { %v151_v44 = vld [vmem:[%s305_s3] ss:$0 sm:$0xff] }
   0x8   :  { %v41_v4 = vsub.f32 %v36_v1, %v39_v3  ;;  %v47_v24 = vsub.f32 %v17_v10, %v188_v12  ;;  %v48_v25 = vsub.f32 %v18_v13, %v188_v12  ;;  %v49_v30 = vsub.f32 %v19_v14, %v188_v12 }
   0x9   :  { %v50_v31 = vsub.f32 %v20_v15, %v188_v12  ;;  %v51_v32 = vsub.f32 %v21_v16, %v188_v12  ;;  %v52_v36 = vsub.f32 %v22_v17, %v188_v12  ;;  %v53_v37 = vsub.f32 %v23_v18, %v188_v12 }
   0xa   :  { %v42_v6 = vmax.f32 %v41_v4, 0.0  ;;  %v54_v38 = vsub.f32 %v24_v20, %v188_v12  ;;  %v55_v39 = vsub.f32 %v25_v21, %v188_v12  ;;  %v56_v41 = vsub.f32 %v26_v22, %v188_v12 }
   0xb   :  { %v57_v42 = vsub.f32 %v27_v26, %v188_v12  ;;  %v58_v43 = vsub.f32 %v28_v27, %v188_v12  ;;  %v59_v45 = vsub.f32 %v29_v28, %v188_v12  ;;  %v60_v46 = vsub.f32 %v30_v33, %v188_v12 }
   0xc   :  { %v63_v8 = vadd.f32 1e-05, %v42_v6  ;;  %v61_v47 = vsub.f32 %v31_v34, %v188_v12  ;;  %v62_v48 = vsub.f32 %v32_v35, %v188_v12 }
   0xe   :  { %152 = vrsqrt.f32 %v63_v8 }
  0x18   :  { %v153_v23 = vpop.eup %152 }
  0x19   :  { %v71_v29 = vmul.f32 %v153_v23, %v150_v11 }
  0x1b   :  { %v75_v40 = vrot.slane %v71_v29, %v74_v19 }
  0x1d   :  { %v76_v49 = vmul.f32 %v75_v40, %v47_v24  ;;  %v77_v50 = vmul.f32 %v75_v40, %v48_v25  ;;  %v78_v51 = vmul.f32 %v75_v40, %v49_v30  ;;  %v79_v52 = vmul.f32 %v75_v40, %v50_v31 }
  0x1e   :  { %v80_v53 = vmul.f32 %v75_v40, %v51_v32  ;;  %v81_v54 = vmul.f32 %v75_v40, %v52_v36  ;;  %v82_v55 = vmul.f32 %v75_v40, %v53_v37  ;;  %v83_v56 = vmul.f32 %v75_v40, %v54_v38 }
  0x1f   :  { %v98_v57 = vadd.f32 %v151_v44, %v76_v49  ;;  %v99_v58 = vadd.f32 %v151_v44, %v77_v50  ;;  %v100_v59 = vadd.f32 %v151_v44, %v78_v51  ;;  %v101_v60 = vadd.f32 %v151_v44, %v79_v52 }
  0x20   :  { %v102_v61 = vadd.f32 %v151_v44, %v80_v53  ;;  %v103_v62 = vadd.f32 %v151_v44, %v81_v54  ;;  %v104_v63 = vadd.f32 %v151_v44, %v82_v55  ;;  %v105_v0 = vadd.f32 %v151_v44, %v83_v56 }
  0x21   :  { %v114_v1 = vmax.f32 %v98_v57, 0.0  ;;  %v115_v2 = vmax.f32 %v99_v58, 0.0  ;;  %v116_v3 = vmax.f32 %v100_v59, 0.0  ;;  %v117_v4 = vmax.f32 %v101_v60, 0.0 }
  0x22   :  { %v118_v5 = vmax.f32 %v102_v61, 0.0  ;;  %v119_v6 = vmax.f32 %v103_v62, 0.0  ;;  %v120_v7 = vmax.f32 %v104_v63, 0.0  ;;  %v121_v8 = vmax.f32 %v105_v0, 0.0 }
  0x23   :  { %130 = vst [vmem:[%s306_s4] sm:$0xff] %v114_v1  ;;  %131 = vst [vmem:[%s306_s4 + $0x8] sm:$0xff] %v115_v2  ;;  %v84_v9 = vmul.f32 %v75_v40, %v55_v39  ;;  %v85_v10 = vmul.f32 %v75_v40, %v56_v41  ;;  %v86_v11 = vmul.f32 %v75_v40, %v57_v42 }
  0x24   :  { %132 = vst [vmem:[%s306_s4 + $0x10] sm:$0xff] %v116_v3  ;;  %133 = vst [vmem:[%s306_s4 + $0x18] sm:$0xff] %v117_v4  ;;  %v87_v12 = vmul.f32 %v75_v40, %v58_v43  ;;  %v88_v13 = vmul.f32 %v75_v40, %v59_v45  ;;  %v89_v14 = vmul.f32 %v75_v40, %v60_v46 }
  0x25   :  { %134 = vst [vmem:[%s306_s4 + $0x20] sm:$0xff] %v118_v5  ;;  %135 = vst [vmem:[%s306_s4 + $0x28] sm:$0xff] %v119_v6  ;;  %v90_v15 = vmul.f32 %v75_v40, %v61_v47  ;;  %v91_v16 = vmul.f32 %v75_v40, %v62_v48  ;;  %v106_v17 = vadd.f32 %v151_v44, %v84_v9 }
  0x26   :  { %136 = vst [vmem:[%s306_s4 + $0x30] sm:$0xff] %v120_v7  ;;  %137 = vst [vmem:[%s306_s4 + $0x38] sm:$0xff] %v121_v8  ;;  %v107_v18 = vadd.f32 %v151_v44, %v85_v10  ;;  %v108_v19 = vadd.f32 %v151_v44, %v86_v11  ;;  %v109_v20 = vadd.f32 %v151_v44, %v87_v12 }
  0x27   :  { %v110_v21 = vadd.f32 %v151_v44, %v88_v13  ;;  %v111_v22 = vadd.f32 %v151_v44, %v89_v14  ;;  %v112_v23 = vadd.f32 %v151_v44, %v90_v15  ;;  %v113_v24 = vadd.f32 %v151_v44, %v91_v16 }
  0x28   :  { %v122_v25 = vmax.f32 %v106_v17, 0.0  ;;  %v123_v26 = vmax.f32 %v107_v18, 0.0  ;;  %v124_v27 = vmax.f32 %v108_v19, 0.0  ;;  %v125_v28 = vmax.f32 %v109_v20, 0.0 }
  0x29   :  { %v126_v29 = vmax.f32 %v110_v21, 0.0  ;;  %v127_v30 = vmax.f32 %v111_v22, 0.0  ;;  %v128_v31 = vmax.f32 %v112_v23, 0.0  ;;  %v129_v32 = vmax.f32 %v113_v24, 0.0 }
  0x2a   :  { %138 = vst [vmem:[%s306_s4 + $0x40] sm:$0xff] %v122_v25  ;;  %139 = vst [vmem:[%s306_s4 + $0x48] sm:$0xff] %v123_v26 }
  0x2b   :  { %140 = vst [vmem:[%s306_s4 + $0x50] sm:$0xff] %v124_v27  ;;  %141 = vst [vmem:[%s306_s4 + $0x58] sm:$0xff] %v125_v28 }
  0x2c   :  { %142 = vst [vmem:[%s306_s4 + $0x60] sm:$0xff] %v126_v29  ;;  %143 = vst [vmem:[%s306_s4 + $0x68] sm:$0xff] %v127_v30 }
  0x2d   :  { %144 = vst [vmem:[%s306_s4 + $0x70] sm:$0xff] %v128_v31  ;;  %145 = vst [vmem:[%s306_s4 + $0x78] sm:$0xff] %v129_v32 }

// kernel: res_bottleneck_block.8
= control target key start
LH: loop header
LB: loop body
LE: loop exit
PB: predicated region body
PF: predicated region fallthrough
CT: control target
= control target key end

     0   :  { %vm1205_vm0 = vcmask 1040384   ;;  %s2831_s1 = inlined_call_operand.vmem [shape: f32[1152,128], index: 1, kind: input, shape index: {}]   ;;  %s2832_s0 = inlined_call_operand.vmem [shape: f32[128,1152], index: 0, kind: input, shape index: {}]   ;;  %s2833_s3 = inlined_call_operand.vmem [shape: f32[2,128], index: 3, kind: output, shape index: {1}]   ;;  %s2834_s2 = inlined_call_operand.vmem [shape: f32[128,128], index: 2, kind: output, shape index: {0}]  }
   0x1   :  { %v173_v0 = vld [vmem:[%s2831_s1 + $0x80] sm:$0xff]  ;;  %v174_v1 = vld [vmem:[%s2831_s1 + $0x88] sm:$0xff]  ;;  %v175_v11 = vld [vmem:[%s2831_s1 + $0x90] sm:$0xff] }
   0x2   :  { %v205_v2 = vld [vmem:[%s2831_s1 + $0x180] sm:$0xff]  ;;  %v1625_v3 = vpack.c.bf16 %v174_v1, %v173_v0  ;;  %v206_v4 = vld [vmem:[%s2831_s1 + $0x188] sm:$0xff]  ;;  %v176_v13 = vld [vmem:[%s2831_s1 + $0x98] sm:$0xff] }
   0x3   :  { %v157_v5 = vld [vmem:[%s2831_s1] sm:$0xff]  ;;  %v158_v6 = vld [vmem:[%s2831_s1 + $0x8] sm:$0xff]  ;;  %v1657_v7 = vpack.c.bf16 %v206_v4, %v205_v2  ;;  %v207_v14 = vld [vmem:[%s2831_s1 + $0x190] sm:$0xff]  ;;  %v1629_v16 = vpack.c.bf16 %v176_v13, %v175_v11 }
   0x4   :  { %v1627_v8 = vpack.c.bf16 %v158_v6, %v157_v5  ;;  %v189_v9 = vld [vmem:[%s2831_s1 + $0x100] sm:$0xff]  ;;  %v190_v10 = vld [vmem:[%s2831_s1 + $0x108] sm:$0xff]  ;;  %1626 = vmatprep.subr.bf16.mxu0 %v1625_v3  ;;  %v208_v15 = vld [vmem:[%s2831_s1 + $0x198] sm:$0xff] }
   0x5   :  { %v1659_v12 = vpack.c.bf16 %v190_v10, %v189_v9  ;;  %1658 = vmatprep.subr.bf16.mxu1 %v1657_v7  ;;  %v1661_v17 = vpack.c.bf16 %v208_v15, %v207_v14  ;;  %v159_v18 = vld [vmem:[%s2831_s1 + $0x10] sm:$0xff]  ;;  %v160_v19 = vld [vmem:[%s2831_s1 + $0x18] sm:$0xff]  ;;  %v177_v23 = vld [vmem:[%s2831_s1 + $0xa0] sm:$0xff] }
   0x6   :  { %1628 = vmatpush3.bf16.msra.mxu0 %v1627_v8  ;;  %v191_v20 = vld [vmem:[%s2831_s1 + $0x110] sm:$0xff]  ;;  %v1631_v21 = vpack.c.bf16 %v160_v19, %v159_v18  ;;  %v192_v22 = vld [vmem:[%s2831_s1 + $0x118] sm:$0xff]  ;;  %v178_v24 = vld [vmem:[%s2831_s1 + $0xa8] sm:$0xff] }
   0x7   :  { %1660 = vmatpush3.bf16.msra.mxu1 %v1659_v12  ;;  %1630 = vmatprep.subr.bf16.mxu0 %v1629_v16  ;;  %v1663_v25 = vpack.c.bf16 %v192_v22, %v191_v20  ;;  %v1633_v26 = vpack.c.bf16 %v178_v24, %v177_v23  ;;  %v209_v27 = vld [vmem:[%s2831_s1 + $0x1a0] sm:$0xff]  ;;  %v210_v28 = vld [vmem:[%s2831_s1 + $0x1a8] sm:$0xff]  ;;  %v179_v35 = vld [vmem:[%s2831_s1 + $0xb0] sm:$0xff] }
   0x8   :  { %1662 = vmatprep.subr.bf16.mxu1 %v1661_v17  ;;  %v161_v29 = vld [vmem:[%s2831_s1 + $0x20] sm:$0xff]  ;;  %v1665_v30 = vpack.c.bf16 %v210_v28, %v209_v27  ;;  %v162_v31 = vld [vmem:[%s2831_s1 + $0x28] sm:$0xff]  ;;  %v180_v36 = vld [vmem:[%s2831_s1 + $0xb8] sm:$0xff] }
   0x9   :  { %v193_v32 = vld [vmem:[%s2831_s1 + $0x120] sm:$0xff]  ;;  %v194_v33 = vld [vmem:[%s2831_s1 + $0x128] sm:$0xff]  ;;  %v1635_v34 = vpack.c.bf16 %v162_v31, %v161_v29  ;;  %v211_v37 = vld [vmem:[%s2831_s1 + $0x1b0] sm:$0xff]  ;;  %v1637_v39 = vpack.c.bf16 %v180_v36, %v179_v35 }
   0xa   :  { %1632 = vmatpush3.bf16.msra.mxu0 %v1631_v21  ;;  %v1667_v38 = vpack.c.bf16 %v194_v33, %v193_v32  ;;  %v212_v40 = vld [vmem:[%s2831_s1 + $0x1b8] sm:$0xff]  ;;  %v163_v41 = vld [vmem:[%s2831_s1 + $0x30] sm:$0xff]  ;;  %v181_v46 = vld [vmem:[%s2831_s1 + $0xc0] sm:$0xff] }
   0xb   :  { %1664 = vmatpush3.bf16.msra.mxu1 %v1663_v25  ;;  %1634 = vmatprep.subr.bf16.mxu0 %v1633_v26  ;;  %v164_v42 = vld [vmem:[%s2831_s1 + $0x38] sm:$0xff]  ;;  %v1669_v43 = vpack.c.bf16 %v212_v40, %v211_v37  ;;  %v195_v44 = vld [vmem:[%s2831_s1 + $0x130] sm:$0xff]  ;;  %v182_v47 = vld [vmem:[%s2831_s1 + $0xc8] sm:$0xff] }
   0xc   :  { %1666 = vmatprep.subr.bf16.mxu1 %v1665_v30  ;;  %v196_v45 = vld [vmem:[%s2831_s1 + $0x138] sm:$0xff]  ;;  %v213_v48 = vld [vmem:[%s2831_s1 + $0x1c0] sm:$0xff]  ;;  %v214_v49 = vld [vmem:[%s2831_s1 + $0x1c8] sm:$0xff]  ;;  %v1639_v50 = vpack.c.bf16 %v164_v42, %v163_v41  ;;  %v1641_v52 = vpack.c.bf16 %v182_v47, %v181_v46 }
   0xd   :  { %v1671_v51 = vpack.c.bf16 %v196_v45, %v195_v44  ;;  %v165_v53 = vld [vmem:[%s2831_s1 + $0x40] sm:$0xff]  ;;  %v166_v54 = vld [vmem:[%s2831_s1 + $0x48] sm:$0xff]  ;;  %v1673_v56 = vpack.c.bf16 %v214_v49, %v213_v48  ;;  %v183_v58 = vld [vmem:[%s2831_s1 + $0xd0] sm:$0xff] }
   0xe   :  { %1636 = vmatpush3.bf16.msra.mxu0 %v1635_v34  ;;  %v197_v55 = vld [vmem:[%s2831_s1 + $0x140] sm:$0xff]  ;;  %v198_v57 = vld [vmem:[%s2831_s1 + $0x148] sm:$0xff]  ;;  %v184_v59 = vld [vmem:[%s2831_s1 + $0xd8] sm:$0xff]  ;;  %v1643_v62 = vpack.c.bf16 %v166_v54, %v165_v53 }
   0xf   :  { %1668 = vmatpush3.bf16.msra.mxu1 %v1667_v38  ;;  %1638 = vmatprep.subr.bf16.mxu0 %v1637_v39  ;;  %v215_v60 = vld [vmem:[%s2831_s1 + $0x1d0] sm:$0xff]  ;;  %v216_v61 = vld [vmem:[%s2831_s1 + $0x1d8] sm:$0xff]  ;;  %v1675_v63 = vpack.c.bf16 %v198_v57, %v197_v55  ;;  %v1645_v0 = vpack.c.bf16 %v184_v59, %v183_v58  ;;  %v185_v6 = vld [vmem:[%s2831_s1 + $0xe0] sm:$0xff] }
  0x10   :  { %1670 = vmatprep.subr.bf16.mxu1 %v1669_v43  ;;  %v167_v1 = vld [vmem:[%s2831_s1 + $0x50] sm:$0xff]  ;;  %v168_v2 = vld [vmem:[%s2831_s1 + $0x58] sm:$0xff]  ;;  %v1677_v4 = vpack.c.bf16 %v216_v61, %v215_v60  ;;  %v186_v7 = vld [vmem:[%s2831_s1 + $0xe8] sm:$0xff] }
  0x11   :  { %v199_v3 = vld [vmem:[%s2831_s1 + $0x150] sm:$0xff]  ;;  %v200_v5 = vld [vmem:[%s2831_s1 + $0x158] sm:$0xff]  ;;  %v217_v8 = vld [vmem:[%s2831_s1 + $0x1e0] sm:$0xff]  ;;  %v1647_v10 = vpack.c.bf16 %v168_v2, %v167_v1  ;;  %v1649_v14 = vpack.c.bf16 %v186_v7, %v185_v6 }
  0x12   :  { %1640 = vmatpush3.bf16.msra.mxu0 %v1639_v50  ;;  %v218_v9 = vld [vmem:[%s2831_s1 + $0x1e8] sm:$0xff]  ;;  %v169_v11 = vld [vmem:[%s2831_s1 + $0x60] sm:$0xff]  ;;  %v1679_v13 = vpack.c.bf16 %v200_v5, %v199_v3  ;;  %v16_v17 = vld [vmem:[%s2832_s0 + $0x18] sm:$0xff] }
  0x13   :  { %1672 = vmatpush3.bf16.msra.mxu1 %v1671_v51  ;;  %1642 = vmatprep.subr.bf16.mxu0 %v1641_v52  ;;  %v170_v12 = vld [vmem:[%s2831_s1 + $0x68] sm:$0xff]  ;;  %v201_v15 = vld [vmem:[%s2831_s1 + $0x160] sm:$0xff]  ;;  %v1681_v18 = vpack.c.bf16 %v218_v9, %v217_v8  ;;  %v187_v20 = vld [vmem:[%s2831_s1 + $0xf0] sm:$0xff] }
  0x14   :  { %1674 = vmatprep.subr.bf16.mxu1 %v1673_v56  ;;  %v14_v16 = vld [vmem:[%s2832_s0 + $0x8] sm:$0xff]  ;;  %v188_v21 = vld [vmem:[%s2831_s1 + $0xf8] sm:$0xff]  ;;  %v219_v22 = vld [vmem:[%s2831_s1 + $0x1f0] sm:$0xff]  ;;  %510 = vmatprep.mubr.f32.mxu1 %v16_v17  ;;  %v1651_v24 = vpack.c.bf16 %v170_v12, %v169_v11 }
  0x15   :  { %v202_v19 = vld [vmem:[%s2831_s1 + $0x168] sm:$0xff]  ;;  %365 = vmatprep.mubr.f32.mxu0 %v14_v16  ;;  %v220_v23 = vld [vmem:[%s2831_s1 + $0x1f8] sm:$0xff]  ;;  %v1653_v26 = vpack.c.bf16 %v188_v21, %v187_v20  ;;  %v171_v27 = vld [vmem:[%s2831_s1 + $0x70] sm:$0xff] }
  0x16   :  { %1644 = vmatpush3.bf16.msra.mxu0 %v1643_v62  ;;  %v1683_v25 = vpack.c.bf16 %v202_v19, %v201_v15  ;;  %v172_v28 = vld [vmem:[%s2831_s1 + $0x78] sm:$0xff]  ;;  %v203_v29 = vld [vmem:[%s2831_s1 + $0x170] sm:$0xff]  ;;  %v1685_v30 = vpack.c.bf16 %v220_v23, %v219_v22  ;;  %v237_v32 = vld [vmem:[%s2831_s1 + $0x280] sm:$0xff] }
  0x17   :  { %1676 = vmatpush3.bf16.msra.mxu1 %v1675_v63  ;;  %1646 = vmatprep.subr.bf16.mxu0 %v1645_v0  ;;  %v204_v31 = vld [vmem:[%s2831_s1 + $0x178] sm:$0xff]  ;;  %v238_v33 = vld [vmem:[%s2831_s1 + $0x288] sm:$0xff]  ;;  %v1655_v34 = vpack.c.bf16 %v172_v28, %v171_v27  ;;  %v221_v37 = vld [vmem:[%s2831_s1 + $0x200] sm:$0xff] }
  0x18   :  { %1678 = vmatprep.subr.bf16.mxu1 %v1677_v4  ;;  %v1687_v35 = vpack.c.bf16 %v204_v31, %v203_v29  ;;  %v1689_v36 = vpack.c.bf16 %v238_v33, %v237_v32  ;;  %v222_v38 = vld [vmem:[%s2831_s1 + $0x208] sm:$0xff]  ;;  %v239_v39 = vld [vmem:[%s2831_s1 + $0x290] sm:$0xff]  ;;  %v240_v40 = vld [vmem:[%s2831_s1 + $0x298] sm:$0xff] }
  0x19   :  { %v269_v41 = vld [vmem:[%s2831_s1 + $0x380] sm:$0xff]  ;;  %v270_v42 = vld [vmem:[%s2831_s1 + $0x388] sm:$0xff]  ;;  %v1691_v44 = vpack.c.bf16 %v222_v38, %v221_v37  ;;  %v15_v47 = vld [vmem:[%s2832_s0 + $0x10] sm:$0xff]  ;;  %v1693_v51 = vpack.c.bf16 %v240_v40, %v239_v39 }
  0x1a   :  { %1648 = vmatpush3.bf16.msra.mxu0 %v1647_v10  ;;  %v13_v43 = vld [vmem:[%s2832_s0] sm:$0xff]  ;;  %v1721_v45 = vpack.c.bf16 %v270_v42, %v269_v41  ;;  %v23_v48 = vld [vmem:[%s2832_s0 + $0x50] sm:$0xff]  ;;  %v254_v49 = vld [vmem:[%s2831_s1 + $0x308] sm:$0xff] }
  0x1b   :  { %1680 = vmatpush3.bf16.msra.mxu1 %v1679_v13  ;;  %1650 = vmatprep.subr.bf16.mxu0 %v1649_v14  ;;  %v253_v46 = vld [vmem:[%s2831_s1 + $0x300] sm:$0xff]  ;;  %v223_v52 = vld [vmem:[%s2831_s1 + $0x210] sm:$0xff]  ;;  %v224_v53 = vld [vmem:[%s2831_s1 + $0x218] sm:$0xff] }
  0x1c   :  { %1682 = vmatprep.subr.bf16.mxu1 %v1681_v18  ;;  %v25_v50 = vld [vmem:[%s2832_s0 + $0x60] sm:$0xff]  ;;  %v1723_v54 = vpack.c.bf16 %v254_v49, %v253_v46  ;;  %v22_v55 = vld [vmem:[%s2832_s0 + $0x48] sm:$0xff]  ;;  %v24_v58 = vld [vmem:[%s2832_s0 + $0x58] sm:$0xff]  ;;  %v1695_v62 = vpack.c.bf16 %v224_v53, %v223_v52 }
  0x1d   :  { %v241_v56 = vld [vmem:[%s2831_s1 + $0x2a0] sm:$0xff]  ;;  %v242_v57 = vld [vmem:[%s2831_s1 + $0x2a8] sm:$0xff]  ;;  %v32_v59 = vld [vmem:[%s2832_s0 + $0x98] sm:$0xff] }
  0x1e   :  { %1652 = vmatpush3.bf16.msra.mxu0 %v1651_v24  ;;  %v271_v60 = vld [vmem:[%s2831_s1 + $0x390] sm:$0xff]  ;;  %v34_v61 = vld [vmem:[%s2832_s0 + $0xa8] sm:$0xff]  ;;  %v225_v63 = vld [vmem:[%s2831_s1 + $0x220] sm:$0xff]  ;;  %v1697_v1 = vpack.c.bf16 %v242_v57, %v241_v56 }
  0x1f   :  { %1684 = vmatpush3.bf16.msra.mxu1 %v1683_v25  ;;  %1654 = vmatprep.subr.bf16.mxu0 %v1653_v26  ;;  %v272_v0 = vld [vmem:[%s2831_s1 + $0x398] sm:$0xff]  ;;  %v226_v2 = vld [vmem:[%s2831_s1 + $0x228] sm:$0xff]  ;;  %v255_v4 = vld [vmem:[%s2831_s1 + $0x310] sm:$0xff] }
  0x20   :  { %1686 = vmatprep.subr.bf16.mxu1 %v1685_v30  ;;  %v1725_v3 = vpack.c.bf16 %v272_v0, %v271_v60  ;;  %v256_v5 = vld [vmem:[%s2831_s1 + $0x318] sm:$0xff]  ;;  %v243_v6 = vld [vmem:[%s2831_s1 + $0x2b0] sm:$0xff]  ;;  %v33_v10 = vld [vmem:[%s2832_s0 + $0xa0] sm:$0xff]  ;;  %v1699_v13 = vpack.c.bf16 %v226_v2, %v225_v63 }
  0x21   :  { %v244_v7 = vld [vmem:[%s2831_s1 + $0x2b8] sm:$0xff]  ;;  %v1727_v8 = vpack.c.bf16 %v256_v5, %v255_v4  ;;  %v31_v9 = vld [vmem:[%s2832_s0 + $0x90] sm:$0xff]  ;;  %v41_v11 = vld [vmem:[%s2832_s0 + $0xe0] sm:$0xff] }
  0x22   :  { %1656 = vmatpush3.bf16.msra.mxu0 %v1655_v34  ;;  %v43_v12 = vld [vmem:[%s2832_s0 + $0xf0] sm:$0xff]  ;;  %v228_v15 = vld [vmem:[%s2831_s1 + $0x238] sm:$0xff]  ;;  %v1701_v16 = vpack.c.bf16 %v244_v7, %v243_v6  ;;  %v245_v17 = vld [vmem:[%s2831_s1 + $0x2c0] sm:$0xff] }
  0x23   :  { %1688 = vmatpush3.bf16.msra.mxu1 %v1687_v35  ;;  %1690 = vmatprep.subr.bf16.mxu0 %v1689_v36  ;;  %v227_v14 = vld [vmem:[%s2831_s1 + $0x230] sm:$0xff]  ;;  %v273_v18 = vld [vmem:[%s2831_s1 + $0x3a0] sm:$0xff]  ;;  %v274_v19 = vld [vmem:[%s2831_s1 + $0x3a8] sm:$0xff] }
  0x24   :  { %1722 = vmatprep.subr.bf16.mxu1 %v1721_v45  ;;  %v246_v20 = vld [vmem:[%s2831_s1 + $0x2c8] sm:$0xff]  ;;  %v1729_v21 = vpack.c.bf16 %v274_v19, %v273_v18  ;;  %v257_v22 = vld [vmem:[%s2831_s1 + $0x320] sm:$0xff]  ;;  %v40_v24 = vld [vmem:[%s2832_s0 + $0xd8] sm:$0xff]  ;;  %v1703_v29 = vpack.c.bf16 %v228_v15, %v227_v14 }
  0x25   :  { %366 = vmatmul.mubr.f32.vlgmr.msra.gmra.mrb[0].mxu0 %v13_v43  ;;  %v258_v23 = vld [vmem:[%s2831_s1 + $0x328] sm:$0xff]  ;;  %v52_v28 = vld [vmem:[%s2832_s0 + $0x138] sm:$0xff]  ;;  %v1705_v30 = vpack.c.bf16 %v246_v20, %v245_v17  ;;  %v229_v31 = vld [vmem:[%s2831_s1 + $0x240] sm:$0xff] }
  0x26   :  { %511 = vmatmul.mubr.f32.vlgmr.msra.gmra.mrb[0].mxu1 %v15_v47  ;;  %1692 = vmatpush3.bf16.msra.mxu0 %v1691_v44  ;;  %v1731_v25 = vpack.c.bf16 %v258_v23, %v257_v22  ;;  %v42_v26 = vld [vmem:[%s2832_s0 + $0xe8] sm:$0xff]  ;;  %v247_v33 = vld [vmem:[%s2831_s1 + $0x2d0] sm:$0xff]  ;;  %v248_v34 = vld [vmem:[%s2831_s1 + $0x2d8] sm:$0xff] }
  0x27   :  { %370 = vmatprep.mubr.f32.mxu0 %v23_v48  ;;  %515 = vmatprep.mubr.f32.mxu1 %v25_v50  ;;  %v50_v27 = vld [vmem:[%s2832_s0 + $0x128] sm:$0xff]  ;;  %v275_v35 = vld [vmem:[%s2831_s1 + $0x3b0] sm:$0xff]  ;;  %v276_v36 = vld [vmem:[%s2831_s1 + $0x3b8] sm:$0xff]  ;;  %v1709_v45 = vpack.c.bf16 %v248_v34, %v247_v33 }
  0x28   :  { %1694 = vmatprep.subr.bf16.mxu0 %v1693_v51  ;;  %1724 = vmatpush3.bf16.msra.mxu1 %v1723_v54  ;;  %v230_v32 = vld [vmem:[%s2831_s1 + $0x248] sm:$0xff]  ;;  %v49_v37 = vld [vmem:[%s2832_s0 + $0x120] sm:$0xff]  ;;  %v1733_v38 = vpack.c.bf16 %v276_v36, %v275_v35  ;;  %v259_v39 = vld [vmem:[%s2831_s1 + $0x330] sm:$0xff] }
  0x29   :  { %371 = vmatmul.mubr.f32.gmra.mrb[2].mxu0 %v22_v55  ;;  %1726 = vmatprep.subr.bf16.mxu1 %v1725_v3  ;;  %v51_v40 = vld [vmem:[%s2832_s0 + $0x130] sm:$0xff]  ;;  %v1707_v42 = vpack.c.bf16 %v230_v32, %v229_v31  ;;  %v260_v43 = vld [vmem:[%s2831_s1 + $0x338] sm:$0xff]  ;;  %v61_v44 = vld [vmem:[%s2832_s0 + $0x180] sm:$0xff] }
  0x2a   :  { %516 = vmatmul.mubr.f32.gmra.mrb[2].mxu1 %v24_v58  ;;  %375 = vmatprep.mubr.f32.mxu0 %v32_v59  ;;  %v59_v41 = vld [vmem:[%s2832_s0 + $0x170] sm:$0xff]  ;;  %v232_v47 = vld [vmem:[%s2831_s1 + $0x258] sm:$0xff]  ;;  %v1735_v48 = vpack.c.bf16 %v260_v43, %v259_v39  ;;  %v58_v49 = vld [vmem:[%s2832_s0 + $0x168] sm:$0xff] }
  0x2b   :  { %520 = vmatprep.mubr.f32.mxu1 %v34_v61  ;;  %1696 = vmatpush3.bf16.msra.mxu0 %v1695_v62  ;;  %v231_v46 = vld [vmem:[%s2831_s1 + $0x250] sm:$0xff]  ;;  %v60_v50 = vld [vmem:[%s2832_s0 + $0x178] sm:$0xff]  ;;  %v249_v52 = vld [vmem:[%s2831_s1 + $0x2e0] sm:$0xff] }
  0x2c   :  { %1698 = vmatprep.subr.bf16.mxu0 %v1697_v1  ;;  %1728 = vmatpush3.bf16.msra.mxu1 %v1727_v8  ;;  %v68_v51 = vld [vmem:[%s2832_s0 + $0x1b8] sm:$0xff]  ;;  %v250_v53 = vld [vmem:[%s2831_s1 + $0x2e8] sm:$0xff]  ;;  %v277_v54 = vld [vmem:[%s2831_s1 + $0x3c0] sm:$0xff]  ;;  %v1711_v56 = vpack.c.bf16 %v232_v47, %v231_v46 }
  0x2d   :  { %376 = vmatmul.mubr.f32.gmra.mrb[4].mxu0 %v31_v9  ;;  %1730 = vmatprep.subr.bf16.mxu1 %v1729_v21  ;;  %v70_v55 = vld [vmem:[%s2832_s0 + $0x1c8] sm:$0xff]  ;;  %v233_v58 = vld [vmem:[%s2831_s1 + $0x260] sm:$0xff]  ;;  %v1713_v59 = vpack.c.bf16 %v250_v53, %v249_v52  ;;  %v67_v0 = vld [vmem:[%s2832_s0 + $0x1b0] sm:$0xff] }
  0x2e   :  { %521 = vmatmul.mubr.f32.gmra.mrb[4].mxu1 %v33_v10  ;;  %380 = vmatprep.mubr.f32.mxu0 %v41_v11  ;;  %v278_v57 = vld [vmem:[%s2831_s1 + $0x3c8] sm:$0xff]  ;;  %v261_v62 = vld [vmem:[%s2831_s1 + $0x340] sm:$0xff]  ;;  %v279_v2 = vld [vmem:[%s2831_s1 + $0x3d0] sm:$0xff] }
  0x2f   :  { %525 = vmatprep.mubr.f32.mxu1 %v43_v12  ;;  %1700 = vmatpush3.bf16.msra.mxu0 %v1699_v13  ;;  %v1737_v60 = vpack.c.bf16 %v278_v57, %v277_v54  ;;  %v234_v61 = vld [vmem:[%s2831_s1 + $0x268] sm:$0xff]  ;;  %v280_v3 = vld [vmem:[%s2831_s1 + $0x3d8] sm:$0xff]  ;;  %v263_v4 = vld [vmem:[%s2831_s1 + $0x350] sm:$0xff] }
  0x30   :  { %1702 = vmatprep.subr.bf16.mxu0 %v1701_v16  ;;  %1732 = vmatpush3.bf16.msra.mxu1 %v1731_v25  ;;  %v262_v63 = vld [vmem:[%s2831_s1 + $0x348] sm:$0xff]  ;;  %v69_v5 = vld [vmem:[%s2832_s0 + $0x1c0] sm:$0xff]  ;;  %v1715_v7 = vpack.c.bf16 %v234_v61, %v233_v58  ;;  %v264_v8 = vld [vmem:[%s2831_s1 + $0x358] sm:$0xff]  ;;  %v1741_v11 = vpack.c.bf16 %v280_v3, %v279_v2 }
  0x31   :  { %381 = vmatmul.mubr.f32.gmra.mrb[6].mxu0 %v40_v24  ;;  %1734 = vmatprep.subr.bf16.mxu1 %v1733_v38  ;;  %v1739_v1 = vpack.c.bf16 %v262_v63, %v261_v62  ;;  %v77_v6 = vld [vmem:[%s2832_s0 + $0x200] sm:$0xff]  ;;  %v79_v9 = vld [vmem:[%s2832_s0 + $0x210] sm:$0xff]  ;;  %v76_v10 = vld [vmem:[%s2832_s0 + $0x1f8] sm:$0xff]  ;;  %v1743_v13 = vpack.c.bf16 %v264_v8, %v263_v4 }
  0x32   :  { %526 = vmatmul.mubr.f32.gmra.mrb[6].mxu1 %v42_v26  ;;  %385 = vmatprep.mubr.f32.mxu0 %v50_v27  ;;  %v251_v12 = vld [vmem:[%s2831_s1 + $0x2f0] sm:$0xff]  ;;  %v252_v14 = vld [vmem:[%s2831_s1 + $0x2f8] sm:$0xff]  ;;  %v281_v15 = vld [vmem:[%s2831_s1 + $0x3e0] sm:$0xff] }
  0x33   :  { %530 = vmatprep.mubr.f32.mxu1 %v52_v28  ;;  %1704 = vmatpush3.bf16.msra.mxu0 %v1703_v29  ;;  %v282_v16 = vld [vmem:[%s2831_s1 + $0x3e8] sm:$0xff]  ;;  %v1717_v17 = vpack.c.bf16 %v252_v14, %v251_v12  ;;  %v235_v18 = vld [vmem:[%s2831_s1 + $0x270] sm:$0xff]  ;;  %v236_v19 = vld [vmem:[%s2831_s1 + $0x278] sm:$0xff] }
  0x34   :  { %1706 = vmatprep.subr.bf16.mxu0 %v1705_v30  ;;  %1736 = vmatpush3.bf16.msra.mxu1 %v1735_v48  ;;  %v265_v20 = vld [vmem:[%s2831_s1 + $0x360] sm:$0xff]  ;;  %v78_v21 = vld [vmem:[%s2832_s0 + $0x208] sm:$0xff]  ;;  %v1745_v23 = vpack.c.bf16 %v282_v16, %v281_v15  ;;  %v88_v25 = vld [vmem:[%s2832_s0 + $0x258] sm:$0xff]  ;;  %v1719_v26 = vpack.c.bf16 %v236_v19, %v235_v18 }
  0x35   :  { %386 = vmatmul.mubr.f32.gmra.mrb[8].mxu0 %v49_v37  ;;  %1738 = vmatprep.subr.bf16.mxu1 %v1737_v60  ;;  %v86_v22 = vld [vmem:[%s2832_s0 + $0x248] sm:$0xff]  ;;  %v283_v27 = vld [vmem:[%s2831_s1 + $0x3f0] sm:$0xff]  ;;  %v85_v28 = vld [vmem:[%s2832_s0 + $0x240] sm:$0xff] }
  0x36   :  { %531 = vmatmul.mubr.f32.gmra.mrb[8].mxu1 %v51_v40  ;;  %390 = vmatprep.mubr.f32.mxu0 %v59_v41  ;;  %v266_v24 = vld [vmem:[%s2831_s1 + $0x368] sm:$0xff]  ;;  %v284_v30 = vld [vmem:[%s2831_s1 + $0x3f8] sm:$0xff]  ;;  %v87_v31 = vld [vmem:[%s2832_s0 + $0x250] sm:$0xff] }
  0x37   :  { %535 = vmatprep.mubr.f32.mxu1 %v61_v44  ;;  %1708 = vmatpush3.bf16.msra.mxu0 %v1707_v42  ;;  %v1747_v29 = vpack.c.bf16 %v266_v24, %v265_v20  ;;  %v267_v32 = vld [vmem:[%s2831_s1 + $0x370] sm:$0xff]  ;;  %v268_v33 = vld [vmem:[%s2831_s1 + $0x378] sm:$0xff]  ;;  %v1749_v35 = vpack.c.bf16 %v284_v30, %v283_v27  ;;  %v285_v36 = vld [vmem:[%s2831_s1 + $0x400] sm:$0xff] }
  0x38   :  { %1710 = vmatprep.subr.bf16.mxu0 %v1709_v45  ;;  %1740 = vmatpush3.bf16.msra.mxu1 %v1739_v1  ;;  %v95_v34 = vld [vmem:[%s2832_s0 + $0x290] sm:$0xff]  ;;  %v286_v37 = vld [vmem:[%s2831_s1 + $0x408] sm:$0xff]  ;;  %v97_v38 = vld [vmem:[%s2832_s0 + $0x2a0] sm:$0xff]  ;;  %v1751_v40 = vpack.c.bf16 %v268_v33, %v267_v32 }
  0x39   :  { %391 = vmatmul.mubr.f32.gmra.mrb[10].mxu0 %v58_v49  ;;  %1742 = vmatprep.subr.bf16.mxu1 %v1741_v11  ;;  %v2327_v39 = vpack.c.bf16 %v286_v37, %v285_v36  ;;  %v94_v41 = vld [vmem:[%s2832_s0 + $0x288] sm:$0xff]  ;;  %v96_v42 = vld [vmem:[%s2832_s0 + $0x298] sm:$0xff]  ;;  %v103_v45 = vld [vmem:[%s2832_s0 + $0x2d0] sm:$0xff] }
  0x3a   :  { %536 = vmatmul.mubr.f32.gmra.mrb[10].mxu1 %v60_v50  ;;  %395 = vmatprep.mubr.f32.mxu0 %v68_v51  ;;  %v104_v43 = vld [vmem:[%s2832_s0 + $0x2d8] sm:$0xff]  ;;  %v106_v44 = vld [vmem:[%s2832_s0 + $0x2e8] sm:$0xff]  ;;  %v105_v46 = vld [vmem:[%s2832_s0 + $0x2e0] sm:$0xff] }
  0x3b   :  { %540 = vmatprep.mubr.f32.mxu1 %v70_v55  ;;  %1712 = vmatpush3.bf16.msra.mxu0 %v1711_v56  ;;  %v113_v47 = vld [vmem:[%s2832_s0 + $0x320] sm:$0xff]  ;;  %v115_v48 = vld [vmem:[%s2832_s0 + $0x330] sm:$0xff]  ;;  %v112_v49 = vld [vmem:[%s2832_s0 + $0x318] sm:$0xff] }
  0x3c   :  { %1714 = vmatprep.subr.bf16.mxu0 %v1713_v59  ;;  %1744 = vmatpush3.bf16.msra.mxu1 %v1743_v13  ;;  %v114_v50 = vld [vmem:[%s2832_s0 + $0x328] sm:$0xff]  ;;  %v124_v52 = vld [vmem:[%s2832_s0 + $0x378] sm:$0xff]  ;;  %v121_v53 = vld [vmem:[%s2832_s0 + $0x360] sm:$0xff] }
  0x3d   :  { %396 = vmatmul.mubr.f32.gmra.mrb[12].mxu0 %v67_v0  ;;  %1746 = vmatprep.subr.bf16.mxu1 %v1745_v23  ;;  %v122_v51 = vld [vmem:[%s2832_s0 + $0x368] sm:$0xff]  ;;  %v123_v54 = vld [vmem:[%s2832_s0 + $0x370] sm:$0xff]  ;;  %v133_v56 = vld [vmem:[%s2832_s0 + $0x3c0] sm:$0xff] }
  0x3e   :  { %541 = vmatmul.mubr.f32.gmra.mrb[12].mxu1 %v69_v5  ;;  %400 = vmatprep.mubr.f32.mxu0 %v77_v6  ;;  %v131_v55 = vld [vmem:[%s2832_s0 + $0x3b0] sm:$0xff]  ;;  %v130_v57 = vld [vmem:[%s2832_s0 + $0x3a8] sm:$0xff]  ;;  %v132_v58 = vld [vmem:[%s2832_s0 + $0x3b8] sm:$0xff] }
  0x3f   :  { %545 = vmatprep.mubr.f32.mxu1 %v79_v9  ;;  %1716 = vmatpush3.bf16.msra.mxu0 %v1715_v7  ;;  %v140_v59 = vld [vmem:[%s2832_s0 + $0x3f8] sm:$0xff]  ;;  %v142_v60 = vld [vmem:[%s2832_s0 + $0x408] sm:$0xff]  ;;  %v139_v61 = vld [vmem:[%s2832_s0 + $0x3f0] sm:$0xff] }
  0x40   :  { %1718 = vmatprep.subr.bf16.mxu0 %v1717_v17  ;;  %1748 = vmatpush3.bf16.msra.mxu1 %v1747_v29  ;;  %v141_v62 = vld [vmem:[%s2832_s0 + $0x400] sm:$0xff]  ;;  %v151_v0 = vld [vmem:[%s2832_s0 + $0x450] sm:$0xff]  ;;  %v148_v1 = vld [vmem:[%s2832_s0 + $0x438] sm:$0xff] }
  0x41   :  { %401 = vmatmul.mubr.f32.gmra.mrb[14].mxu0 %v76_v10  ;;  %1750 = vmatprep.subr.bf16.mxu1 %v1749_v35  ;;  %v149_v63 = vld [vmem:[%s2832_s0 + $0x440] sm:$0xff]  ;;  %v150_v2 = vld [vmem:[%s2832_s0 + $0x448] sm:$0xff]  ;;  %v20_v4 = vld [vmem:[%s2832_s0 + $0x38] sm:$0xff] }
  0x42   :  { %546 = vmatmul.mubr.f32.gmra.mrb[14].mxu1 %v78_v21  ;;  %405 = vmatprep.mubr.f32.mxu0 %v86_v22  ;;  %v18_v3 = vld [vmem:[%s2832_s0 + $0x28] sm:$0xff]  ;;  %v287_v5 = vld [vmem:[%s2831_s1 + $0x410] sm:$0xff]  ;;  %v288_v6 = vld [vmem:[%s2831_s1 + $0x418] sm:$0xff] }
  0x43   :  { %550 = vmatprep.mubr.f32.mxu1 %v88_v25  ;;  %1720 = vmatpush3.bf16.msra.mxu0 %v1719_v26  ;;  %v17_v7 = vld [vmem:[%s2832_s0 + $0x20] sm:$0xff]  ;;  %v19_v8 = vld [vmem:[%s2832_s0 + $0x30] sm:$0xff]  ;;  %v1757_v11 = vpack.c.bf16 %v288_v6, %v287_v5  ;;  %v290_v13 = vld [vmem:[%s2831_s1 + $0x428] sm:$0xff] }
  0x44   :  { %1754 = vmatprep.subr.bf16.mxu0 %v2327_v39  ;;  %1752 = vmatpush3.bf16.msra.mxu1 %v1751_v40  ;;  %v27_v9 = vld [vmem:[%s2832_s0 + $0x70] sm:$0xff]  ;;  %v29_v10 = vld [vmem:[%s2832_s0 + $0x80] sm:$0xff]  ;;  %v26_v14 = vld [vmem:[%s2832_s0 + $0x68] sm:$0xff] }
  0x45   :  { %406 = vmatmul.mubr.f32.gmra.mrb[16].mxu0 %v85_v28  ;;  %1785 = vmatprep.subr.bf16.mxu1 %v2327_v39  ;;  %v289_v12 = vld [vmem:[%s2831_s1 + $0x420] sm:$0xff]  ;;  %v28_v15 = vld [vmem:[%s2832_s0 + $0x78] sm:$0xff]  ;;  %v38_v17 = vld [vmem:[%s2832_s0 + $0xc8] sm:$0xff] }
  0x46   :  { %551 = vmatmul.mubr.f32.gmra.mrb[16].mxu1 %v87_v31  ;;  %410 = vmatprep.mubr.f32.mxu0 %v95_v34  ;;  %v36_v16 = vld [vmem:[%s2832_s0 + $0xb8] sm:$0xff]  ;;  %v1761_v18 = vpack.c.bf16 %v290_v13, %v289_v12  ;;  %v291_v19 = vld [vmem:[%s2831_s1 + $0x430] sm:$0xff]  ;;  %v37_v22 = vld [vmem:[%s2832_s0 + $0xc0] sm:$0xff] }
  0x47   :  { %555 = vmatprep.mubr.f32.mxu1 %v97_v38  ;;  %v292_v20 = vld [vmem:[%s2831_s1 + $0x438] sm:$0xff]  ;;  %v35_v21 = vld [vmem:[%s2832_s0 + $0xb0] sm:$0xff]  ;;  %v45_v23 = vld [vmem:[%s2832_s0 + $0x100] sm:$0xff] }
  0x48   :  { %v47_v24 = vld [vmem:[%s2832_s0 + $0x110] sm:$0xff]  ;;  %v1765_v25 = vpack.c.bf16 %v292_v20, %v291_v19  ;;  %v293_v26 = vld [vmem:[%s2831_s1 + $0x440] sm:$0xff]  ;;  %v294_v27 = vld [vmem:[%s2831_s1 + $0x448] sm:$0xff] }
  0x49   :  { %411 = vmatmul.mubr.f32.gmra.mrb[18].mxu0 %v94_v41  ;;  %v44_v28 = vld [vmem:[%s2832_s0 + $0xf8] sm:$0xff]  ;;  %v46_v29 = vld [vmem:[%s2832_s0 + $0x108] sm:$0xff]  ;;  %v1769_v32 = vpack.c.bf16 %v294_v27, %v293_v26  ;;  %v295_v33 = vld [vmem:[%s2831_s1 + $0x450] sm:$0xff] }
  0x4a   :  { %556 = vmatmul.mubr.f32.gmra.mrb[18].mxu1 %v96_v42  ;;  %415 = vmatprep.mubr.f32.mxu0 %v104_v43  ;;  %v54_v30 = vld [vmem:[%s2832_s0 + $0x148] sm:$0xff]  ;;  %v56_v31 = vld [vmem:[%s2832_s0 + $0x158] sm:$0xff]  ;;  %v53_v35 = vld [vmem:[%s2832_s0 + $0x140] sm:$0xff] }
  0x4b   :  { %560 = vmatprep.mubr.f32.mxu1 %v106_v44  ;;  %v296_v34 = vld [vmem:[%s2831_s1 + $0x458] sm:$0xff]  ;;  %v55_v36 = vld [vmem:[%s2832_s0 + $0x150] sm:$0xff]  ;;  %v65_v38 = vld [vmem:[%s2832_s0 + $0x1a0] sm:$0xff] }
  0x4c   :  { %v63_v37 = vld [vmem:[%s2832_s0 + $0x190] sm:$0xff]  ;;  %v297_v40 = vld [vmem:[%s2831_s1 + $0x460] sm:$0xff]  ;;  %v298_v41 = vld [vmem:[%s2831_s1 + $0x468] sm:$0xff] }
  0x4d   :  { %416 = vmatmul.mubr.f32.gmra.mrb[20].mxu0 %v103_v45  ;;  %v62_v42 = vld [vmem:[%s2832_s0 + $0x188] sm:$0xff]  ;;  %v64_v43 = vld [vmem:[%s2832_s0 + $0x198] sm:$0xff]  ;;  %v119_v5 = vld [vmem:[%s2832_s0 + $0x350] sm:$0xff] }
  0x4e   :  { %561 = vmatmul.mubr.f32.gmra.mrb[20].mxu1 %v105_v46  ;;  %420 = vmatprep.mubr.f32.mxu0 %v113_v47  ;;  %v72_v44 = vld [vmem:[%s2832_s0 + $0x1d8] sm:$0xff]  ;;  %v74_v45 = vld [vmem:[%s2832_s0 + $0x1e8] sm:$0xff]  ;;  %v1777_v46 = vpack.c.bf16 %v298_v41, %v297_v40  ;;  %v299_v47 = vld [vmem:[%s2831_s1 + $0x470] sm:$0xff] }
  0x4f   :  { %565 = vmatprep.mubr.f32.mxu1 %v115_v48  ;;  %v300_v48 = vld [vmem:[%s2831_s1 + $0x478] sm:$0xff]  ;;  %v135_v12 = vld [vmem:[%s2832_s0 + $0x3d0] sm:$0xff]  ;;  %v137_v13 = vld [vmem:[%s2832_s0 + $0x3e0] sm:$0xff] }
  0x50   :  { %v116_v6 = vld [vmem:[%s2832_s0 + $0x338] sm:$0xff]  ;;  %v145_v19 = vld [vmem:[%s2832_s0 + $0x420] sm:$0xff]  ;;  %v30_v26 = vld [vmem:[%s2832_s0 + $0x88] sm:$0xff] }
  0x51   :  { %421 = vmatmul.mubr.f32.gmra.mrb[22].mxu0 %v112_v49  ;;  %v71_v49 = vld [vmem:[%s2832_s0 + $0x1d0] sm:$0xff]  ;;  %v153_v20 = vld [vmem:[%s2832_s0 + $0x460] sm:$0xff]  ;;  %v102_v27 = vld [vmem:[%s2832_s0 + $0x2c8] sm:$0xff] }
  0x52   :  { %566 = vmatmul.mubr.f32.gmra.mrb[22].mxu1 %v114_v50  ;;  %425 = vmatprep.mubr.f32.mxu0 %v122_v51  ;;  %v73_v50 = vld [vmem:[%s2832_s0 + $0x1e0] sm:$0xff] }
  0x53   :  { %570 = vmatprep.mubr.f32.mxu1 %v124_v52  ;;  %v81_v51 = vld [vmem:[%s2832_s0 + $0x220] sm:$0xff]  ;;  %v83_v52 = vld [vmem:[%s2832_s0 + $0x230] sm:$0xff] }
  0x55   :  { %426 = vmatmul.mubr.f32.gmra.mrb[24].mxu0 %v121_v53  ;;  %v1781_v53 = vpack.c.bf16 %v300_v48, %v299_v47 }
  0x56   :  { %571 = vmatmul.mubr.f32.gmra.mrb[24].mxu1 %v123_v54  ;;  %430 = vmatprep.mubr.f32.mxu0 %v131_v55  ;;  %v80_v54 = vld [vmem:[%s2832_s0 + $0x218] sm:$0xff]  ;;  %v82_v55 = vld [vmem:[%s2832_s0 + $0x228] sm:$0xff] }
  0x57   :  { %575 = vmatprep.mubr.f32.mxu1 %v133_v56  ;;  %v90_v56 = vld [vmem:[%s2832_s0 + $0x268] sm:$0xff] }
  0x59   :  { %431 = vmatmul.mubr.f32.gmra.mrb[26].mxu0 %v130_v57  ;;  %v92_v57 = vld [vmem:[%s2832_s0 + $0x278] sm:$0xff] }
  0x5a   :  { %576 = vmatmul.mubr.f32.gmra.mrb[26].mxu1 %v132_v58  ;;  %435 = vmatprep.mubr.f32.mxu0 %v140_v59  ;;  %v89_v58 = vld [vmem:[%s2832_s0 + $0x260] sm:$0xff]  ;;  %v91_v59 = vld [vmem:[%s2832_s0 + $0x270] sm:$0xff] }
  0x5b   :  { %580 = vmatprep.mubr.f32.mxu1 %v142_v60  ;;  %v99_v60 = vld [vmem:[%s2832_s0 + $0x2b0] sm:$0xff] }
  0x5d   :  { %436 = vmatmul.mubr.f32.gmra.mrb[28].mxu0 %v139_v61  ;;  %v101_v61 = vld [vmem:[%s2832_s0 + $0x2c0] sm:$0xff] }
  0x5e   :  { %581 = vmatmul.mubr.f32.gmra.mrb[28].mxu1 %v141_v62  ;;  %440 = vmatprep.mubr.f32.mxu0 %v149_v63  ;;  %v98_v62 = vld [vmem:[%s2832_s0 + $0x2a8] sm:$0xff]  ;;  %v100_v63 = vld [vmem:[%s2832_s0 + $0x2b8] sm:$0xff] }
  0x5f   :  { %585 = vmatprep.mubr.f32.mxu1 %v151_v0  ;;  %v108_v0 = vld [vmem:[%s2832_s0 + $0x2f8] sm:$0xff] }
  0x61   :  { %441 = vmatmul.mubr.f32.gmra.mrb[30].mxu0 %v148_v1  ;;  %v110_v1 = vld [vmem:[%s2832_s0 + $0x308] sm:$0xff] }
  0x62   :  { %586 = vmatmul.mubr.f32.gmra.mrb[30].mxu1 %v150_v2  ;;  %655 = vmatprep.mubr.f32.mxu0 %v18_v3  ;;  %v107_v2 = vld [vmem:[%s2832_s0 + $0x2f0] sm:$0xff]  ;;  %v109_v3 = vld [vmem:[%s2832_s0 + $0x300] sm:$0xff] }
  0x63   :  { %800 = vmatprep.mubr.f32.mxu1 %v20_v4  ;;  %v117_v4 = vld [vmem:[%s2832_s0 + $0x340] sm:$0xff] }
  0x65   :  { %656 = vmatmul.mubr.f32.vlgmr.msra.gmra.mrb[32].mxu0 %v17_v7  ;;  %v118_v7 = vld [vmem:[%s2832_s0 + $0x348] sm:$0xff] }
  0x66   :  { %801 = vmatmul.mubr.f32.vlgmr.msra.gmra.mrb[32].mxu1 %v19_v8  ;;  %1756 = vmatpush3.bf16.msra.mxu0 %v2327_v39  ;;  %v126_v8 = vld [vmem:[%s2832_s0 + $0x388] sm:$0xff] }
  0x67   :  { %660 = vmatprep.mubr.f32.mxu0 %v27_v9  ;;  %805 = vmatprep.mubr.f32.mxu1 %v29_v10  ;;  %v128_v9 = vld [vmem:[%s2832_s0 + $0x398] sm:$0xff]  ;;  %v125_v10 = vld [vmem:[%s2832_s0 + $0x380] sm:$0xff] }
  0x68   :  { %1758 = vmatprep.subr.bf16.mxu0 %v1757_v11  ;;  %1793 = vmatpush3.bf16.msra.mxu1 %v2327_v39  ;;  %v1773_v39 = vpack.c.bf16 %v296_v34, %v295_v33  ;;  %v129_v33 = vld [vmem:[%s2832_s0 + $0x3a0] sm:$0xff]  ;;  %v66_v34 = vld [vmem:[%s2832_s0 + $0x1a8] sm:$0xff] }
  0x69   :  { %661 = vmatmul.mubr.f32.gmra.mrb[34].mxu0 %v26_v14  ;;  %1786 = vmatprep.subr.bf16.mxu1 %v1757_v11  ;;  %v134_v14 = vld [vmem:[%s2832_s0 + $0x3c8] sm:$0xff] }
  0x6a   :  { %806 = vmatmul.mubr.f32.gmra.mrb[34].mxu1 %v28_v15  ;;  %665 = vmatprep.mubr.f32.mxu0 %v36_v16  ;;  %v136_v15 = vld [vmem:[%s2832_s0 + $0x3d8] sm:$0xff] }
  0x6b   :  { %810 = vmatprep.mubr.f32.mxu1 %v38_v17  ;;  %1760 = vmatpush3.bf16.msra.mxu0 %v1757_v11  ;;  %v144_v16 = vld [vmem:[%s2832_s0 + $0x418] sm:$0xff]  ;;  %v146_v17 = vld [vmem:[%s2832_s0 + $0x428] sm:$0xff] }
  0x6c   :  { %1762 = vmatprep.subr.bf16.mxu0 %v1761_v18  ;;  %1794 = vmatpush3.bf16.msra.mxu1 %v1757_v11  ;;  %v127_v11 = vld [vmem:[%s2832_s0 + $0x390] sm:$0xff] }
  0x6d   :  { %666 = vmatmul.mubr.f32.gmra.mrb[36].mxu0 %v35_v21  ;;  %1787 = vmatprep.subr.bf16.mxu1 %v1761_v18  ;;  %v155_v21 = vld [vmem:[%s2832_s0 + $0x470] sm:$0xff] }
  0x6e   :  { %811 = vmatmul.mubr.f32.gmra.mrb[36].mxu1 %v37_v22  ;;  %670 = vmatprep.mubr.f32.mxu0 %v45_v23  ;;  %v152_v22 = vld [vmem:[%s2832_s0 + $0x458] sm:$0xff]  ;;  %v154_v23 = vld [vmem:[%s2832_s0 + $0x468] sm:$0xff] }
  0x6f   :  { %815 = vmatprep.mubr.f32.mxu1 %v47_v24  ;;  %1764 = vmatpush3.bf16.msra.mxu0 %v1761_v18  ;;  %v21_v24 = vld [vmem:[%s2832_s0 + $0x40] sm:$0xff] }
  0x70   :  { %1766 = vmatprep.subr.bf16.mxu0 %v1765_v25  ;;  %1795 = vmatpush3.bf16.msra.mxu1 %v1761_v18  ;;  %v143_v18 = vld [vmem:[%s2832_s0 + $0x410] sm:$0xff] }
  0x71   :  { %671 = vmatmul.mubr.f32.gmra.mrb[38].mxu0 %v44_v28  ;;  %1788 = vmatprep.subr.bf16.mxu1 %v1765_v25  ;;  %v39_v28 = vld [vmem:[%s2832_s0 + $0xd0] sm:$0xff] }
  0x72   :  { %816 = vmatmul.mubr.f32.gmra.mrb[38].mxu1 %v46_v29  ;;  %675 = vmatprep.mubr.f32.mxu0 %v54_v30  ;;  %v111_v29 = vld [vmem:[%s2832_s0 + $0x310] sm:$0xff]  ;;  %v48_v30 = vld [vmem:[%s2832_s0 + $0x118] sm:$0xff] }
  0x73   :  { %820 = vmatprep.mubr.f32.mxu1 %v56_v31  ;;  %1768 = vmatpush3.bf16.msra.mxu0 %v1765_v25  ;;  %v120_v31 = vld [vmem:[%s2832_s0 + $0x358] sm:$0xff] }
  0x74   :  { %1770 = vmatprep.subr.bf16.mxu0 %v1769_v32  ;;  %1796 = vmatpush3.bf16.msra.mxu1 %v1765_v25  ;;  %v93_v25 = vld [vmem:[%s2832_s0 + $0x280] sm:$0xff] }
  0x75   :  { %676 = vmatmul.mubr.f32.gmra.mrb[40].mxu0 %v53_v35  ;;  %1789 = vmatprep.subr.bf16.mxu1 %v1769_v32  ;;  %v138_v35 = vld [vmem:[%s2832_s0 + $0x3e8] sm:$0xff] }
  0x76   :  { %821 = vmatmul.mubr.f32.gmra.mrb[40].mxu1 %v55_v36  ;;  %680 = vmatprep.mubr.f32.mxu0 %v63_v37  ;;  %v75_v36 = vld [vmem:[%s2832_s0 + $0x1f0] sm:$0xff] }
  0x77   :  { %825 = vmatprep.mubr.f32.mxu1 %v65_v38  ;;  %1772 = vmatpush3.bf16.msra.mxu0 %v1769_v32  ;;  %v147_v37 = vld [vmem:[%s2832_s0 + $0x430] sm:$0xff]  ;;  %v84_v38 = vld [vmem:[%s2832_s0 + $0x238] sm:$0xff] }
  0x78   :  { %1774 = vmatprep.subr.bf16.mxu0 %v1773_v39  ;;  %1797 = vmatpush3.bf16.msra.mxu1 %v1769_v32  ;;  %v57_v32 = vld [vmem:[%s2832_s0 + $0x160] sm:$0xff] }
  0x79   :  { %681 = vmatmul.mubr.f32.gmra.mrb[42].mxu0 %v62_v42  ;;  %1790 = vmatprep.subr.bf16.mxu1 %v1773_v39 }
  0x7a   :  { %826 = vmatmul.mubr.f32.gmra.mrb[42].mxu1 %v64_v43  ;;  %685 = vmatprep.mubr.f32.mxu0 %v72_v44 }
  0x7b   :  { %830 = vmatprep.mubr.f32.mxu1 %v74_v45  ;;  %1776 = vmatpush3.bf16.msra.mxu0 %v1773_v39 }
  0x7c   :  { %1778 = vmatprep.subr.bf16.mxu0 %v1777_v46  ;;  %1798 = vmatpush3.bf16.msra.mxu1 %v1773_v39  ;;  %v156_v39 = vld [vmem:[%s2832_s0 + $0x478] sm:$0xff] }
  0x7d   :  { %686 = vmatmul.mubr.f32.gmra.mrb[44].mxu0 %v71_v49  ;;  %1791 = vmatprep.subr.bf16.mxu1 %v1777_v46 }
  0x7e   :  { %831 = vmatmul.mubr.f32.gmra.mrb[44].mxu1 %v73_v50  ;;  %690 = vmatprep.mubr.f32.mxu0 %v81_v51 }
  0x7f   :  { %835 = vmatprep.mubr.f32.mxu1 %v83_v52  ;;  %1780 = vmatpush3.bf16.msra.mxu0 %v1777_v46 }
  0x80   :  { %1782 = vmatprep.subr.bf16.mxu0 %v1781_v53  ;;  %1799 = vmatpush3.bf16.msra.mxu1 %v1777_v46 }
  0x81   :  { %691 = vmatmul.mubr.f32.gmra.mrb[46].mxu0 %v80_v54  ;;  %1792 = vmatprep.subr.bf16.mxu1 %v1781_v53 }
  0x82   :  { %836 = vmatmul.mubr.f32.gmra.mrb[46].mxu1 %v82_v55  ;;  %695 = vmatprep.mubr.f32.mxu0 %v90_v56 }
  0x83   :  { %840 = vmatprep.mubr.f32.mxu1 %v92_v57  ;;  %1784 = vmatpush3.bf16.msra.mxu0 %v1781_v53 }
  0x84   :  { %1800 = vmatpush3.bf16.msra.mxu1 %v1781_v53 }
  0x85   :  { %696 = vmatmul.mubr.f32.gmra.mrb[48].mxu0 %v89_v58 }
  0x86   :  { %841 = vmatmul.mubr.f32.gmra.mrb[48].mxu1 %v91_v59  ;;  %700 = vmatprep.mubr.f32.mxu0 %v99_v60 }
  0x87   :  { %845 = vmatprep.mubr.f32.mxu1 %v101_v61 }
  0x89   :  { %701 = vmatmul.mubr.f32.gmra.mrb[50].mxu0 %v98_v62 }
  0x8a   :  { %846 = vmatmul.mubr.f32.gmra.mrb[50].mxu1 %v100_v63  ;;  %705 = vmatprep.mubr.f32.mxu0 %v108_v0 }
  0x8b   :  { %850 = vmatprep.mubr.f32.mxu1 %v110_v1 }
  0x8d   :  { %706 = vmatmul.mubr.f32.gmra.mrb[52].mxu0 %v107_v2 }
  0x8e   :  { %851 = vmatmul.mubr.f32.gmra.mrb[52].mxu1 %v109_v3  ;;  %710 = vmatprep.mubr.f32.mxu0 %v117_v4 }
  0x8f   :  { %855 = vmatprep.mubr.f32.mxu1 %v119_v5 }
  0x91   :  { %711 = vmatmul.mubr.f32.gmra.mrb[54].mxu0 %v116_v6 }
  0x92   :  { %856 = vmatmul.mubr.f32.gmra.mrb[54].mxu1 %v118_v7  ;;  %715 = vmatprep.mubr.f32.mxu0 %v126_v8 }
  0x93   :  { %860 = vmatprep.mubr.f32.mxu1 %v128_v9 }
  0x95   :  { %716 = vmatmul.mubr.f32.gmra.mrb[56].mxu0 %v125_v10 }
  0x96   :  { %861 = vmatmul.mubr.f32.gmra.mrb[56].mxu1 %v127_v11  ;;  %720 = vmatprep.mubr.f32.mxu0 %v135_v12 }
  0x97   :  { %865 = vmatprep.mubr.f32.mxu1 %v137_v13 }
  0x99   :  { %721 = vmatmul.mubr.f32.gmra.mrb[58].mxu0 %v134_v14 }
  0x9a   :  { %866 = vmatmul.mubr.f32.gmra.mrb[58].mxu1 %v136_v15  ;;  %725 = vmatprep.mubr.f32.mxu0 %v144_v16 }
  0x9b   :  { %870 = vmatprep.mubr.f32.mxu1 %v146_v17 }
  0x9d   :  { %726 = vmatmul.mubr.f32.gmra.mrb[60].mxu0 %v143_v18 }
  0x9e   :  { %871 = vmatmul.mubr.f32.gmra.mrb[60].mxu1 %v145_v19  ;;  %730 = vmatprep.mubr.f32.mxu0 %v153_v20 }
  0x9f   :  { %875 = vmatprep.mubr.f32.mxu1 %v155_v21  ;;  %v1802_v21 = vmov 0.0  }
  0xa0   :  { %1046 = vst [vmem:[%s2833_s3] sm:$0x3] %v1802_v21 }
  0xa1   :  { %731 = vmatmul.mubr.f32.gmra.mrb[62].mxu0 %v152_v22 }
  0xa2   :  { %876 = vmatmul.mubr.f32.gmra.mrb[62].mxu1 %v154_v23  ;;  %1601 = vmatprep.mubr.f32.mxu0 %v21_v24 }
  0xa3   :  { %1613 = vmatprep.mubr.f32.mxu1 %v93_v25 }
  0xa5   :  { %1602 = vmatmul.mubr.f32.vlgmr.msra.gmra.mrb[64].mxu0 %v30_v26 }
  0xa6   :  { %1614 = vmatmul.mubr.f32.vlgmr.msra.gmra.mrb[64].mxu1 %v102_v27  ;;  %1604 = vmatprep.mubr.f32.mxu0 %v39_v28 }
  0xa7   :  { %1616 = vmatprep.mubr.f32.mxu1 %v111_v29 }
  0xa9   :  { %1605 = vmatmul.mubr.f32.gmra.mrb[66].mxu0 %v48_v30 }
  0xaa   :  { %1617 = vmatmul.mubr.f32.gmra.mrb[66].mxu1 %v120_v31  ;;  %1607 = vmatprep.mubr.f32.mxu0 %v57_v32 }
  0xab   :  { %1619 = vmatprep.mubr.f32.mxu1 %v129_v33 }
  0xad   :  { %1608 = vmatmul.mubr.f32.gmra.mrb[68].mxu0 %v66_v34 }
  0xae   :  { %1620 = vmatmul.mubr.f32.gmra.mrb[68].mxu1 %v138_v35  ;;  %1610 = vmatprep.mubr.f32.mxu0 %v75_v36 }
  0xaf   :  { %1622 = vmatprep.mubr.f32.mxu1 %v147_v37 }
  0xb1   :  { %1611 = vmatmul.mubr.f32.gmra.mrb[70].mxu0 %v84_v38 }
  0xb2   :  { %1623 = vmatmul.mubr.f32.gmra.mrb[70].mxu1 %v156_v39 }
  0xf8   :  { %v1249_v40 = vpop.f32.mrb[0].mxu0 }
  0xf9   :  { %v1329_v41 = vpop.f32.mrb[0].mxu1  ;;  %v1250_v42 = vpop.f32.mrb[1].mxu0 }
  0xfa   :  { %v1251_v43 = vadd.f32 %v1250_v42, %v1249_v40  ;;  %v1330_v44 = vpop.f32.mrb[1].mxu1 }
  0xfb   :  { %v1331_v45 = vadd.f32 %v1330_v44, %v1329_v41 }
  0xfc   :  { %v1252_v46 = vpop.f32.mrb[2].mxu0 }
  0xfd   :  { %v2693_v47 = vadd.f32 %v1331_v45, %v1251_v43  ;;  %v1332_v48 = vpop.f32.mrb[2].mxu1  ;;  %v1253_v49 = vpop.f32.mrb[3].mxu0 }
  0xfe   :  { %v1254_v50 = vadd.f32 %v1253_v49, %v1252_v46  ;;  %v1333_v51 = vpop.f32.mrb[3].mxu1 }
  0xff   :  { %v1334_v52 = vadd.f32 %v1333_v51, %v1332_v48 }
 0x100   :  { %v1255_v53 = vpop.f32.mrb[4].mxu0 }
 0x101   :  { %v2695_v54 = vadd.f32 %v1334_v52, %v1254_v50  ;;  %v1335_v55 = vpop.f32.mrb[4].mxu1  ;;  %v1256_v56 = vpop.f32.mrb[5].mxu0 }
 0x102   :  { %v1257_v57 = vadd.f32 %v1256_v56, %v1255_v53  ;;  %v1336_v58 = vpop.f32.mrb[5].mxu1 }
 0x103   :  { %v1337_v59 = vadd.f32 %v1336_v58, %v1335_v55 }
 0x104   :  { %v1258_v60 = vpop.f32.mrb[6].mxu0 }
 0x105   :  { %v2697_v61 = vadd.f32 %v1337_v59, %v1257_v57  ;;  %v1338_v62 = vpop.f32.mrb[6].mxu1  ;;  %v1259_v63 = vpop.f32.mrb[7].mxu0 }
 0x106   :  { %v1260_v0 = vadd.f32 %v1259_v63, %v1258_v60  ;;  %v1339_v1 = vpop.f32.mrb[7].mxu1 }
 0x107   :  { %v1340_v2 = vadd.f32 %v1339_v1, %v1338_v62 }
 0x108   :  { %v1261_v3 = vpop.f32.mrb[8].mxu0 }
 0x109   :  { %v2699_v4 = vadd.f32 %v1340_v2, %v1260_v0  ;;  %v1341_v5 = vpop.f32.mrb[8].mxu1  ;;  %v1262_v6 = vpop.f32.mrb[9].mxu0 }
 0x10a   :  { %v1263_v7 = vadd.f32 %v1262_v6, %v1261_v3  ;;  %v1342_v8 = vpop.f32.mrb[9].mxu1 }
 0x10b   :  { %v1343_v9 = vadd.f32 %v1342_v8, %v1341_v5 }
 0x10c   :  { %v1264_v10 = vpop.f32.mrb[10].mxu0 }
 0x10d   :  { %v2701_v11 = vadd.f32 %v1343_v9, %v1263_v7  ;;  %v1344_v12 = vpop.f32.mrb[10].mxu1  ;;  %v1265_v13 = vpop.f32.mrb[11].mxu0 }
 0x10e   :  { %v1266_v14 = vadd.f32 %v1265_v13, %v1264_v10  ;;  %v1345_v15 = vpop.f32.mrb[11].mxu1 }
 0x10f   :  { %v1346_v16 = vadd.f32 %v1345_v15, %v1344_v12 }
 0x110   :  { %v1267_v17 = vpop.f32.mrb[12].mxu0 }
 0x111   :  { %v2703_v18 = vadd.f32 %v1346_v16, %v1266_v14  ;;  %v1347_v19 = vpop.f32.mrb[12].mxu1  ;;  %v1268_v20 = vpop.f32.mrb[13].mxu0 }
 0x112   :  { %v1269_v22 = vadd.f32 %v1268_v20, %v1267_v17  ;;  %v1348_v23 = vpop.f32.mrb[13].mxu1 }
 0x113   :  { %v1349_v24 = vadd.f32 %v1348_v23, %v1347_v19 }
 0x114   :  { %v1270_v25 = vpop.f32.mrb[14].mxu0 }
 0x115   :  { %v2708_v26 = vadd.f32 %v1349_v24, %v1269_v22  ;;  %v1350_v27 = vpop.f32.mrb[14].mxu1  ;;  %v1271_v28 = vpop.f32.mrb[15].mxu0 }
 0x116   :  { %v1272_v29 = vadd.f32 %v1271_v28, %v1270_v25  ;;  %v1351_v30 = vpop.f32.mrb[15].mxu1 }
 0x117   :  { %v1352_v31 = vadd.f32 %v1351_v30, %v1350_v27 }
 0x118   :  { %v1273_v32 = vpop.f32.mrb[16].mxu0 }
 0x119   :  { %v2710_v33 = vadd.f32 %v1352_v31, %v1272_v29  ;;  %v1353_v34 = vpop.f32.mrb[16].mxu1  ;;  %v1274_v35 = vpop.f32.mrb[17].mxu0 }
 0x11a   :  { %v1275_v36 = vadd.f32 %v1274_v35, %v1273_v32  ;;  %v1354_v37 = vpop.f32.mrb[17].mxu1 }
 0x11b   :  { %v1355_v38 = vadd.f32 %v1354_v37, %v1353_v34 }
 0x11c   :  { %v1276_v39 = vpop.f32.mrb[18].mxu0 }
 0x11d   :  { %v2712_v40 = vadd.f32 %v1355_v38, %v1275_v36  ;;  %v1356_v41 = vpop.f32.mrb[18].mxu1  ;;  %v1277_v42 = vpop.f32.mrb[19].mxu0 }
 0x11e   :  { %v1278_v43 = vadd.f32 %v1277_v42, %v1276_v39  ;;  %v1357_v44 = vpop.f32.mrb[19].mxu1 }
 0x11f   :  { %v1358_v45 = vadd.f32 %v1357_v44, %v1356_v41 }
 0x120   :  { %v1279_v46 = vpop.f32.mrb[20].mxu0 }
 0x121   :  { %v2714_v48 = vadd.f32 %v1358_v45, %v1278_v43  ;;  %v1359_v49 = vpop.f32.mrb[20].mxu1  ;;  %v1280_v50 = vpop.f32.mrb[21].mxu0 }
 0x122   :  { %v1281_v51 = vadd.f32 %v1280_v50, %v1279_v46  ;;  %v1360_v52 = vpop.f32.mrb[21].mxu1 }
 0x123   :  { %v1361_v53 = vadd.f32 %v1360_v52, %v1359_v49 }
 0x124   :  { %v1282_v55 = vpop.f32.mrb[22].mxu0 }
 0x125   :  { %v2716_v56 = vadd.f32 %v1361_v53, %v1281_v51  ;;  %v1362_v57 = vpop.f32.mrb[22].mxu1  ;;  %v1283_v58 = vpop.f32.mrb[23].mxu0 }
 0x126   :  { %v1284_v59 = vadd.f32 %v1283_v58, %v1282_v55  ;;  %v1363_v60 = vpop.f32.mrb[23].mxu1 }
 0x127   :  { %v1364_v62 = vadd.f32 %v1363_v60, %v1362_v57 }
 0x128   :  { %v1285_v63 = vpop.f32.mrb[24].mxu0 }
 0x129   :  { %v2718_v0 = vadd.f32 %v1364_v62, %v1284_v59  ;;  %v1365_v1 = vpop.f32.mrb[24].mxu1  ;;  %v1286_v2 = vpop.f32.mrb[25].mxu0 }
 0x12a   :  { %v1287_v3 = vadd.f32 %v1286_v2, %v1285_v63  ;;  %v1366_v5 = vpop.f32.mrb[25].mxu1 }
 0x12b   :  { %v1367_v6 = vadd.f32 %v1366_v5, %v1365_v1 }
 0x12c   :  { %v1288_v7 = vpop.f32.mrb[26].mxu0 }
 0x12d   :  { %v2720_v8 = vadd.f32 %v1367_v6, %v1287_v3  ;;  %v1368_v9 = vpop.f32.mrb[26].mxu1  ;;  %v1289_v10 = vpop.f32.mrb[27].mxu0 }
 0x12e   :  { %v1290_v12 = vadd.f32 %v1289_v10, %v1288_v7  ;;  %v1369_v13 = vpop.f32.mrb[27].mxu1 }
 0x12f   :  { %v1370_v14 = vadd.f32 %v1369_v13, %v1368_v9 }
 0x130   :  { %v1291_v15 = vpop.f32.mrb[28].mxu0 }
 0x131   :  { %v2722_v16 = vadd.f32 %v1370_v14, %v1290_v12  ;;  %v1371_v17 = vpop.f32.mrb[28].mxu1  ;;  %v1292_v19 = vpop.f32.mrb[29].mxu0 }
 0x132   :  { %v1293_v20 = vadd.f32 %v1292_v19, %v1291_v15  ;;  %v1372_v21 = vpop.f32.mrb[29].mxu1 }
 0x133   :  { %v1373_v22 = vadd.f32 %v1372_v21, %v1371_v17 }
 0x134   :  { %v1294_v23 = vpop.f32.mrb[30].mxu0 }
 0x135   :  { %v2724_v24 = vadd.f32 %v1373_v22, %v1293_v20  ;;  %v1374_v25 = vpop.f32.mrb[30].mxu1  ;;  %v1295_v27 = vpop.f32.mrb[31].mxu0 }
 0x136   :  { %v1296_v28 = vadd.f32 %v1295_v27, %v1294_v23  ;;  %v1375_v29 = vpop.f32.mrb[31].mxu1 }
 0x137   :  { %v1376_v30 = vadd.f32 %v1375_v29, %v1374_v25 }
 0x138   :  { %v1409_v31 = vpop.f32.mrb[32].mxu0 }
 0x139   :  { %v2726_v32 = vadd.f32 %v1376_v30, %v1296_v28  ;;  %v1410_v34 = vpop.f32.mrb[33].mxu0  ;;  %v1489_v35 = vpop.f32.mrb[32].mxu1 }
 0x13a   :  { %v1411_v36 = vadd.f32 %v1410_v34, %v1409_v31  ;;  %v1490_v37 = vpop.f32.mrb[33].mxu1 }
 0x13b   :  { %v1491_v38 = vadd.f32 %v1490_v37, %v1489_v35 }
 0x13c   :  { %v658_v39 = vadd.f32 %v1411_v36, %v2693_v47  ;;  %v1412_v41 = vpop.f32.mrb[34].mxu0 }
 0x13d   :  { %v1413_v42 = vpop.f32.mrb[35].mxu0  ;;  %v1492_v43 = vpop.f32.mrb[34].mxu1 }
 0x13e   :  { %v1414_v44 = vadd.f32 %v1413_v42, %v1412_v41  ;;  %v1493_v45 = vpop.f32.mrb[35].mxu1  ;;  %v2729_v46 = vadd.f32 %v1491_v38, %v658_v39 }
 0x13f   :  { %v1494_v49 = vadd.f32 %v1493_v45, %v1492_v43 }
 0x140   :  { %v663_v50 = vadd.f32 %v1414_v44, %v2695_v54  ;;  %v1415_v51 = vpop.f32.mrb[36].mxu0 }
 0x141   :  { %v1416_v52 = vpop.f32.mrb[37].mxu0  ;;  %v1495_v53 = vpop.f32.mrb[36].mxu1 }
 0x142   :  { %v1417_v55 = vadd.f32 %v1416_v52, %v1415_v51  ;;  %v1496_v57 = vpop.f32.mrb[37].mxu1  ;;  %v2732_v58 = vadd.f32 %v1494_v49, %v663_v50 }
 0x143   :  { %v1497_v59 = vadd.f32 %v1496_v57, %v1495_v53 }
 0x144   :  { %v668_v47 = vadd.f32 %v1417_v55, %v2697_v61  ;;  %v1418_v60 = vpop.f32.mrb[38].mxu0 }
 0x145   :  { %v1419_v62 = vpop.f32.mrb[39].mxu0  ;;  %v1498_v63 = vpop.f32.mrb[38].mxu1 }
 0x146   :  { %v1420_v1 = vadd.f32 %v1419_v62, %v1418_v60  ;;  %v1499_v2 = vpop.f32.mrb[39].mxu1  ;;  %v2735_v3 = vadd.f32 %v1497_v59, %v668_v47 }
 0x147   :  { %v1500_v5 = vadd.f32 %v1499_v2, %v1498_v63 }
 0x148   :  { %v673_v54 = vadd.f32 %v1420_v1, %v2699_v4  ;;  %v1421_v6 = vpop.f32.mrb[40].mxu0 }
 0x149   :  { %v1422_v7 = vpop.f32.mrb[41].mxu0  ;;  %v1501_v9 = vpop.f32.mrb[40].mxu1 }
 0x14a   :  { %v1423_v10 = vadd.f32 %v1422_v7, %v1421_v6  ;;  %v1502_v12 = vpop.f32.mrb[41].mxu1  ;;  %v2738_v13 = vadd.f32 %v1500_v5, %v673_v54 }
 0x14b   :  { %v1503_v14 = vadd.f32 %v1502_v12, %v1501_v9 }
 0x14c   :  { %v678_v61 = vadd.f32 %v1423_v10, %v2701_v11  ;;  %v1424_v15 = vpop.f32.mrb[42].mxu0 }
 0x14d   :  { %v1425_v17 = vpop.f32.mrb[43].mxu0  ;;  %v1504_v19 = vpop.f32.mrb[42].mxu1 }
 0x14e   :  { %v1426_v20 = vadd.f32 %v1425_v17, %v1424_v15  ;;  %v1505_v21 = vpop.f32.mrb[43].mxu1  ;;  %v2741_v22 = vadd.f32 %v1503_v14, %v678_v61 }
 0x14f   :  { %v1506_v23 = vadd.f32 %v1505_v21, %v1504_v19 }
 0x150   :  { %v683_v4 = vadd.f32 %v1426_v20, %v2703_v18  ;;  %v1427_v25 = vpop.f32.mrb[44].mxu0 }
 0x151   :  { %v1428_v27 = vpop.f32.mrb[45].mxu0  ;;  %v1507_v28 = vpop.f32.mrb[44].mxu1 }
 0x152   :  { %v1429_v29 = vadd.f32 %v1428_v27, %v1427_v25  ;;  %v1508_v30 = vpop.f32.mrb[45].mxu1  ;;  %v2744_v31 = vadd.f32 %v1506_v23, %v683_v4 }
 0x153   :  { %v1509_v34 = vadd.f32 %v1508_v30, %v1507_v28 }
 0x154   :  { %v688_v11 = vadd.f32 %v1429_v29, %v2708_v26  ;;  %v1430_v35 = vpop.f32.mrb[46].mxu0 }
 0x155   :  { %v1431_v36 = vpop.f32.mrb[47].mxu0  ;;  %v1510_v37 = vpop.f32.mrb[46].mxu1 }
 0x156   :  { %v1432_v38 = vadd.f32 %v1431_v36, %v1430_v35  ;;  %v1511_v39 = vpop.f32.mrb[47].mxu1  ;;  %v2747_v41 = vadd.f32 %v1509_v34, %v688_v11 }
 0x157   :  { %v1512_v42 = vadd.f32 %v1511_v39, %v1510_v37 }
 0x158   :  { %v693_v18 = vadd.f32 %v1432_v38, %v2710_v33  ;;  %v1433_v43 = vpop.f32.mrb[48].mxu0 }
 0x159   :  { %v1434_v44 = vpop.f32.mrb[49].mxu0  ;;  %v1513_v45 = vpop.f32.mrb[48].mxu1 }
 0x15a   :  { %v1435_v49 = vadd.f32 %v1434_v44, %v1433_v43  ;;  %v1514_v50 = vpop.f32.mrb[49].mxu1  ;;  %v2750_v51 = vadd.f32 %v1512_v42, %v693_v18 }
 0x15b   :  { %v1515_v52 = vadd.f32 %v1514_v50, %v1513_v45 }
 0x15c   :  { %v698_v26 = vadd.f32 %v1435_v49, %v2712_v40  ;;  %v1436_v53 = vpop.f32.mrb[50].mxu0 }
 0x15d   :  { %v1437_v55 = vpop.f32.mrb[51].mxu0  ;;  %v1516_v57 = vpop.f32.mrb[50].mxu1 }
 0x15e   :  { %v1438_v59 = vadd.f32 %v1437_v55, %v1436_v53  ;;  %v1517_v47 = vpop.f32.mrb[51].mxu1  ;;  %v843_v60 = vadd.f32 %v1515_v52, %v698_v26 }
 0x15f   :  { %v1518_v62 = vadd.f32 %v1517_v47, %v1516_v57 }
 0x160   :  { %v703_v63 = vadd.f32 %v1438_v59, %v2714_v48  ;;  %v1439_v33 = vpop.f32.mrb[52].mxu0 }
 0x161   :  { %v1440_v1 = vpop.f32.mrb[53].mxu0  ;;  %v1519_v2 = vpop.f32.mrb[52].mxu1 }
 0x162   :  { %v1441_v5 = vadd.f32 %v1440_v1, %v1439_v33  ;;  %v1520_v54 = vpop.f32.mrb[53].mxu1  ;;  %v848_v6 = vadd.f32 %v1518_v62, %v703_v63 }
 0x163   :  { %v1521_v7 = vadd.f32 %v1520_v54, %v1519_v2 }
 0x164   :  { %v708_v9 = vadd.f32 %v1441_v5, %v2716_v56  ;;  %v1442_v10 = vpop.f32.mrb[54].mxu0 }
 0x165   :  { %v1443_v40 = vpop.f32.mrb[55].mxu0  ;;  %v1522_v12 = vpop.f32.mrb[54].mxu1 }
 0x166   :  { %v1444_v14 = vadd.f32 %v1443_v40, %v1442_v10  ;;  %v1523_v61 = vpop.f32.mrb[55].mxu1  ;;  %v853_v15 = vadd.f32 %v1521_v7, %v708_v9 }
 0x167   :  { %v1524_v17 = vadd.f32 %v1523_v61, %v1522_v12 }
 0x168   :  { %v713_v19 = vadd.f32 %v1444_v14, %v2718_v0  ;;  %v1445_v20 = vpop.f32.mrb[56].mxu0 }
 0x169   :  { %v1446_v48 = vpop.f32.mrb[57].mxu0  ;;  %v1525_v21 = vpop.f32.mrb[56].mxu1 }
 0x16a   :  { %v1447_v23 = vadd.f32 %v1446_v48, %v1445_v20  ;;  %v1526_v4 = vpop.f32.mrb[57].mxu1  ;;  %v858_v25 = vadd.f32 %v1524_v17, %v713_v19 }
 0x16b   :  { %v1527_v27 = vadd.f32 %v1526_v4, %v1525_v21 }
 0x16c   :  { %v718_v28 = vadd.f32 %v1447_v23, %v2720_v8  ;;  %v1448_v29 = vpop.f32.mrb[58].mxu0 }
 0x16d   :  { %v1449_v56 = vpop.f32.mrb[59].mxu0  ;;  %v1528_v30 = vpop.f32.mrb[58].mxu1 }
 0x16e   :  { %v1450_v34 = vadd.f32 %v1449_v56, %v1448_v29  ;;  %v1529_v11 = vpop.f32.mrb[59].mxu1  ;;  %v863_v35 = vadd.f32 %v1527_v27, %v718_v28 }
 0x16f   :  { %v1530_v36 = vadd.f32 %v1529_v11, %v1528_v30 }
 0x170   :  { %v723_v37 = vadd.f32 %v1450_v34, %v2722_v16  ;;  %v1451_v38 = vpop.f32.mrb[60].mxu0 }
 0x171   :  { %v1452_v0 = vpop.f32.mrb[61].mxu0  ;;  %v1531_v39 = vpop.f32.mrb[60].mxu1 }
 0x172   :  { %v1453_v42 = vadd.f32 %v1452_v0, %v1451_v38  ;;  %v1532_v18 = vpop.f32.mrb[61].mxu1  ;;  %v868_v43 = vadd.f32 %v1530_v36, %v723_v37 }
 0x173   :  { %v1533_v44 = vadd.f32 %v1532_v18, %v1531_v39 }
 0x174   :  { %v728_v45 = vadd.f32 %v1453_v42, %v2724_v24  ;;  %v1454_v49 = vpop.f32.mrb[62].mxu0 }
 0x175   :  { %v1455_v8 = vpop.f32.mrb[63].mxu0  ;;  %v1534_v50 = vpop.f32.mrb[62].mxu1 }
 0x176   :  { %v1456_v52 = vadd.f32 %v1455_v8, %v1454_v49  ;;  %v1535_v26 = vpop.f32.mrb[63].mxu1  ;;  %v2759_v53 = vadd.f32 %v1533_v44, %v728_v45 }
 0x177   :  { %v1536_v55 = vadd.f32 %v1535_v26, %v1534_v50 }
 0x178   :  { %v733_v57 = vadd.f32 %v1456_v52, %v2726_v32  ;;  %v1603_v16 = vpop.f32.mrb[64].mxu0 }
 0x179   :  { %v953_v59 = vadd.f32 %v1603_v16, %v2732_v58  ;;  %v1615_v47 = vpop.f32.mrb[64].mxu1  ;;  %v947_v62 = vpop.f32.mrb[65].mxu0 }
 0x17a   :  { %v2763_v63 = vadd.f32 %v1615_v47, %v848_v6  ;;  %v948_v33 = vadd.f32 %v947_v62, %v2729_v46  ;;  %v987_v24 = vpop.f32.mrb[65].mxu1  ;;  %v878_v1 = vadd.f32 %v1536_v55, %v733_v57 }
 0x17b   :  { %1027 = vst [vmem:[%s2834_s2 + $0x8] sm:$0xff] %v953_v59  ;;  %v1169_v2 = vmul.f32 %v953_v59, %v953_v59  ;;  %v988_v5 = vadd.f32 %v987_v24, %v843_v60 }
 0x17c   :  { %1035 = vst [vmem:[%s2834_s2 + $0x48] sm:$0xff] %v2763_v63  ;;  %1026 = vst [vmem:[%s2834_s2] sm:$0xff] %v948_v33  ;;  %v1147_v32 = vadd.f32 %v953_v59, %v948_v33  ;;  %v1168_v58 = vmul.f32 %v948_v33, %v948_v33  ;;  %v1606_v46 = vpop.f32.mrb[66].mxu0  ;;  %v1177_v8 = vmul.f32 %v2763_v63, %v2763_v63 }
 0x17d   :  { %1034 = vst [vmem:[%s2834_s2 + $0x40] sm:$0xff] %v988_v5  ;;  %v963_v54 = vadd.f32 %v1606_v46, %v2738_v13  ;;  %v1618_v6 = vpop.f32.mrb[66].mxu1  ;;  %v957_v60 = vpop.f32.mrb[67].mxu0  ;;  %v1176_v44 = vmul.f32 %v988_v5, %v988_v5 }
 0x17e   :  { %v1184_v7 = vadd.f32 %v1169_v2, %v1168_v58  ;;  %v1003_v9 = vadd.f32 %v1618_v6, %v858_v25  ;;  %v958_v10 = vadd.f32 %v957_v60, %v2735_v3  ;;  %v997_v40 = vpop.f32.mrb[67].mxu1 }
 0x17f   :  { %1029 = vst [vmem:[%s2834_s2 + $0x18] sm:$0xff] %v963_v54  ;;  %v998_v12 = vadd.f32 %v997_v40, %v853_v15  ;;  %v1171_v17 = vmul.f32 %v963_v54, %v963_v54 }
 0x180   :  { %1037 = vst [vmem:[%s2834_s2 + $0x58] sm:$0xff] %v1003_v9  ;;  %1028 = vst [vmem:[%s2834_s2 + $0x10] sm:$0xff] %v958_v10  ;;  %v1148_v13 = vadd.f32 %v1147_v32, %v958_v10  ;;  %v1170_v14 = vmul.f32 %v958_v10, %v958_v10  ;;  %v1609_v61 = vpop.f32.mrb[68].mxu0  ;;  %v1179_v57 = vmul.f32 %v1003_v9, %v1003_v9 }
 0x181   :  { %1036 = vst [vmem:[%s2834_s2 + $0x50] sm:$0xff] %v998_v12  ;;  %v973_v3 = vadd.f32 %v1609_v61, %v2744_v31  ;;  %v1621_v19 = vpop.f32.mrb[68].mxu1  ;;  %v967_v15 = vpop.f32.mrb[69].mxu0  ;;  %v1178_v26 = vmul.f32 %v998_v12, %v998_v12 }
 0x182   :  { %v1185_v20 = vadd.f32 %v1184_v7, %v1170_v14  ;;  %v1013_v48 = vadd.f32 %v1621_v19, %v868_v43  ;;  %v968_v21 = vadd.f32 %v967_v15, %v2741_v22  ;;  %v1149_v23 = vadd.f32 %v1148_v13, %v963_v54  ;;  %v1007_v4 = vpop.f32.mrb[69].mxu1 }
 0x183   :  { %1031 = vst [vmem:[%s2834_s2 + $0x28] sm:$0xff] %v973_v3  ;;  %v1008_v25 = vadd.f32 %v1007_v4, %v863_v35  ;;  %v1173_v22 = vmul.f32 %v973_v3, %v973_v3 }
 0x184   :  { %1039 = vst [vmem:[%s2834_s2 + $0x68] sm:$0xff] %v1013_v48  ;;  %1030 = vst [vmem:[%s2834_s2 + $0x20] sm:$0xff] %v968_v21  ;;  %v1150_v31 = vadd.f32 %v1149_v23, %v968_v21  ;;  %v1172_v27 = vmul.f32 %v968_v21, %v968_v21  ;;  %v1186_v28 = vadd.f32 %v1185_v20, %v1171_v17  ;;  %v1612_v29 = vpop.f32.mrb[70].mxu0 }
 0x185   :  { %1038 = vst [vmem:[%s2834_s2 + $0x60] sm:$0xff] %v1008_v25  ;;  %v983_v56 = vadd.f32 %v1612_v29, %v2750_v51  ;;  %v1624_v30 = vpop.f32.mrb[70].mxu1  ;;  %v977_v34 = vpop.f32.mrb[71].mxu0  ;;  %v1180_v47 = vmul.f32 %v1008_v25, %v1008_v25  ;;  %v1181_v24 = vmul.f32 %v1013_v48, %v1013_v48 }
 0x186   :  { %v1187_v11 = vadd.f32 %v1186_v28, %v1172_v27  ;;  %v1023_v35 = vadd.f32 %v1624_v30, %v878_v1  ;;  %v978_v36 = vadd.f32 %v977_v34, %v2747_v41  ;;  %v1151_v37 = vadd.f32 %v1150_v31, %v973_v3  ;;  %v1017_v38 = vpop.f32.mrb[71].mxu1  ;;  %v1146_v3 = vld [vmem:[%s2833_s3] sm:$0x3] }
 0x187   :  { %1033 = vst [vmem:[%s2834_s2 + $0x38] sm:$0xff] %v983_v56  ;;  %v1018_v0 = vadd.f32 %v1017_v38, %v2759_v53  ;;  %v1175_v41 = vmul.f32 %v983_v56, %v983_v56 }
 0x188   :  { %1041 = vst [vmem:[%s2834_s2 + $0x78] sm:$0xff] %v1023_v35  ;;  %1032 = vst [vmem:[%s2834_s2 + $0x30] sm:$0xff] %v978_v36  ;;  %v1152_v51 = vadd.f32 %v1151_v37, %v978_v36  ;;  %v1174_v39 = vmul.f32 %v978_v36, %v978_v36  ;;  %v1188_v42 = vadd.f32 %v1187_v11, %v1173_v22 }
 0x189   :  { %1040 = vst [vmem:[%s2834_s2 + $0x70] sm:$0xff] %v1018_v0  ;;  %v1182_v32 = vmul.f32 %v1018_v0, %v1018_v0  ;;  %v1183_v46 = vmul.f32 %v1023_v35, %v1023_v35 }
 0x18a   :  { %v1153_v18 = vadd.f32 %v1152_v51, %v983_v56  ;;  %v1189_v43 = vadd.f32 %v1188_v42, %v1174_v39 }
 0x18c   :  { %v1154_v45 = vadd.f32 %v1153_v18, %v988_v5  ;;  %v1190_v49 = vadd.f32 %v1189_v43, %v1175_v41 }
 0x18e   :  { %v1155_v50 = vadd.f32 %v1154_v45, %v2763_v63  ;;  %v1191_v52 = vadd.f32 %v1190_v49, %v1176_v44 }
 0x190   :  { %v1192_v53 = vadd.f32 %v1191_v52, %v1177_v8  ;;  %v1156_v55 = vadd.f32 %v1155_v50, %v998_v12 }
 0x192   :  { %v1157_v16 = vadd.f32 %v1156_v55, %v1003_v9  ;;  %v1193_v59 = vadd.f32 %v1192_v53, %v1178_v26 }
 0x194   :  { %v1158_v62 = vadd.f32 %v1157_v16, %v1008_v25  ;;  %v1194_v33 = vadd.f32 %v1193_v59, %v1179_v57 }
 0x196   :  { %v1159_v1 = vadd.f32 %v1158_v62, %v1013_v48  ;;  %v1195_v2 = vadd.f32 %v1194_v33, %v1180_v47 }
 0x198   :  { %v1160_v5 = vadd.f32 %v1159_v1, %v1018_v0  ;;  %v1196_v58 = vadd.f32 %v1195_v2, %v1181_v24 }
 0x19a   :  { %v1161_v54 = vadd.f32 %v1160_v5, %v1023_v35  ;;  %v1197_v6 = vadd.f32 %v1196_v58, %v1182_v32 }
 0x19c   :  { %v1162_v63 = vrot.slane %v1161_v54, 4  ;;  %v1198_v60 = vadd.f32 %v1197_v6, %v1183_v46 }
 0x19e   :  { %v1163_v7 = vadd.f32 %v1162_v63, %v1161_v54  ;;  %v1199_v10 = vrot.slane %v1198_v60, 4 }
 0x1a0   :  { %v1164_v40 = vrot.slane %v1163_v7, 2  ;;  %v1200_v12 = vadd.f32 %v1199_v10, %v1198_v60 }
 0x1a2   :  { %v1165_v9 = vadd.f32 %v1164_v40, %v1163_v7  ;;  %v1201_v13 = vrot.slane %v1200_v12, 2 }
 0x1a4   :  { %v1166_v14 = vrot.slane %v1165_v9, 1  ;;  %v1202_v61 = vadd.f32 %v1201_v13, %v1200_v12 }
 0x1a6   :  { %v1203_v17 = vrot.slane %v1202_v61, 1  ;;  %v1167_v19 = vadd.f32 %v1166_v14, %v1165_v9 }
 0x1a8   :  { %v1204_v15 = vadd.f32 %v1203_v17, %v1202_v61 }
 0x1aa   :  { %v1206_v20 = vsel %vm1205_vm0, %v1167_v19, %v1204_v15 }
 0x1ab   :  { %v1207_v48 = vadd.f32 %v1206_v20, %v1146_v3 }
 0x1ad   :  { %1208 = vst [vmem:[%s2833_s3] sm:$0x3] %v1207_v48 }

// kernel: res_bottleneck_block.10
= control target key start
LH: loop header
LB: loop body
LE: loop exit
PB: predicated region body
PF: predicated region fallthrough
CT: control target
= control target key end

     0   :  { %vm570_vm0 = vcmask 1040384   ;;  %s1183_s1 = inlined_call_operand.vmem [shape: f32[128,128], index: 1, kind: input, shape index: {}]   ;;  %s1184_s3 = inlined_call_operand.vmem [shape: f32[128,128], index: 3, kind: input, shape index: {}]   ;;  %s1185_s0 = inlined_call_operand.vmem [shape: f32[128,128], index: 0, kind: input, shape index: {}]   ;;  %s1186_s2 = inlined_call_operand.vmem [shape: f32[128,128], index: 2, kind: input, shape index: {}]   ;;  %s1187_s5 = inlined_call_operand.vmem [shape: f32[2,128], index: 5, kind: output, shape index: {1}]   ;;  %s1188_s6 = inlined_call_operand.vmem [shape: f32[2,128], index: 6, kind: output, shape index: {2}]   ;;  %s1189_s4 = inlined_call_operand.vmem [shape: f32[128,128], index: 4, kind: output, shape index: {0}]  }
   0x1   :  { %v36_v0 = vld [vmem:[%s1183_s1] sm:$0xff]  ;;  %v37_v1 = vld [vmem:[%s1183_s1 + $0x8] sm:$0xff]  ;;  %v38_v5 = vld [vmem:[%s1183_s1 + $0x10] sm:$0xff] }
   0x2   :  { %v213_v2 = vld [vmem:[%s1184_s3] sm:$0xff]  ;;  %v824_v3 = vpack.c.bf16 %v37_v1, %v36_v0  ;;  %v214_v4 = vld [vmem:[%s1184_s3 + $0x8] sm:$0xff]  ;;  %v39_v6 = vld [vmem:[%s1183_s1 + $0x18] sm:$0xff] }
   0x3   :  { %v856_v7 = vpack.c.bf16 %v214_v4, %v213_v2  ;;  %v828_v8 = vpack.c.bf16 %v39_v6, %v38_v5  ;;  %v215_v9 = vld [vmem:[%s1184_s3 + $0x10] sm:$0xff]  ;;  %v216_v10 = vld [vmem:[%s1184_s3 + $0x18] sm:$0xff]  ;;  %v40_v11 = vld [vmem:[%s1183_s1 + $0x20] sm:$0xff] }
   0x4   :  { %825 = vmatprep.subr.bf16.mxu0 %v824_v3  ;;  %v860_v12 = vpack.c.bf16 %v216_v10, %v215_v9  ;;  %v41_v13 = vld [vmem:[%s1183_s1 + $0x28] sm:$0xff]  ;;  %v217_v14 = vld [vmem:[%s1184_s3 + $0x20] sm:$0xff]  ;;  %v42_v18 = vld [vmem:[%s1183_s1 + $0x30] sm:$0xff] }
   0x5   :  { %v218_v15 = vld [vmem:[%s1184_s3 + $0x28] sm:$0xff]  ;;  %857 = vmatprep.subr.bf16.mxu1 %v856_v7  ;;  %827 = vmatpush3.bf16.msra.mxu0 %v824_v3  ;;  %v832_v16 = vpack.c.bf16 %v41_v13, %v40_v11  ;;  %v43_v19 = vld [vmem:[%s1183_s1 + $0x38] sm:$0xff]  ;;  %v219_v20 = vld [vmem:[%s1184_s3 + $0x30] sm:$0xff] }
   0x6   :  { %859 = vmatpush3.bf16.msra.mxu1 %v856_v7  ;;  %829 = vmatprep.subr.bf16.mxu0 %v828_v8  ;;  %v864_v17 = vpack.c.bf16 %v218_v15, %v217_v14  ;;  %v220_v21 = vld [vmem:[%s1184_s3 + $0x38] sm:$0xff]  ;;  %v836_v22 = vpack.c.bf16 %v43_v19, %v42_v18  ;;  %v44_v24 = vld [vmem:[%s1183_s1 + $0x40] sm:$0xff]  ;;  %v45_v25 = vld [vmem:[%s1183_s1 + $0x48] sm:$0xff] }
   0x7   :  { %861 = vmatprep.subr.bf16.mxu1 %v860_v12  ;;  %v868_v23 = vpack.c.bf16 %v220_v21, %v219_v20  ;;  %v20_v26 = vld [vmem:[%s1185_s0] sm:$0xff]  ;;  %v222_v28 = vld [vmem:[%s1184_s3 + $0x48] sm:$0xff]  ;;  %v840_v30 = vpack.c.bf16 %v45_v25, %v44_v24  ;;  %v46_v32 = vld [vmem:[%s1183_s1 + $0x50] sm:$0xff] }
   0x8   :  { %v221_v27 = vld [vmem:[%s1184_s3 + $0x40] sm:$0xff]  ;;  %744 = vmatprep.mubr.f32.mxu0 %v20_v26  ;;  %v47_v33 = vld [vmem:[%s1183_s1 + $0x58] sm:$0xff]  ;;  %v223_v34 = vld [vmem:[%s1184_s3 + $0x50] sm:$0xff] }
   0x9   :  { %831 = vmatpush3.bf16.msra.mxu0 %v828_v8  ;;  %v197_v29 = vld [vmem:[%s1186_s2] sm:$0xff]  ;;  %v872_v31 = vpack.c.bf16 %v222_v28, %v221_v27  ;;  %v224_v35 = vld [vmem:[%s1184_s3 + $0x58] sm:$0xff]  ;;  %v844_v36 = vpack.c.bf16 %v47_v33, %v46_v32  ;;  %v49_v39 = vld [vmem:[%s1183_s1 + $0x68] sm:$0xff] }
   0xa   :  { %863 = vmatpush3.bf16.msra.mxu1 %v860_v12  ;;  %833 = vmatprep.subr.bf16.mxu0 %v832_v16  ;;  %v876_v37 = vpack.c.bf16 %v224_v35, %v223_v34  ;;  %v48_v38 = vld [vmem:[%s1183_s1 + $0x60] sm:$0xff]  ;;  %v226_v41 = vld [vmem:[%s1184_s3 + $0x68] sm:$0xff]  ;;  %v50_v44 = vld [vmem:[%s1183_s1 + $0x70] sm:$0xff] }
   0xb   :  { %865 = vmatprep.subr.bf16.mxu1 %v864_v17  ;;  %800 = vmatprep.mubr.f32.mxu1 %v197_v29  ;;  %v225_v40 = vld [vmem:[%s1184_s3 + $0x60] sm:$0xff]  ;;  %v848_v42 = vpack.c.bf16 %v49_v39, %v48_v38  ;;  %v51_v45 = vld [vmem:[%s1183_s1 + $0x78] sm:$0xff]  ;;  %v227_v46 = vld [vmem:[%s1184_s3 + $0x70] sm:$0xff] }
   0xc   :  { %v880_v43 = vpack.c.bf16 %v226_v41, %v225_v40  ;;  %v228_v47 = vld [vmem:[%s1184_s3 + $0x78] sm:$0xff]  ;;  %v852_v48 = vpack.c.bf16 %v51_v45, %v50_v44  ;;  %v21_v50 = vld [vmem:[%s1185_s0 + $0x8] sm:$0xff]  ;;  %v22_v52 = vld [vmem:[%s1185_s0 + $0x10] sm:$0xff] }
   0xd   :  { %835 = vmatpush3.bf16.msra.mxu0 %v832_v16  ;;  %v884_v49 = vpack.c.bf16 %v228_v47, %v227_v46  ;;  %v198_v51 = vld [vmem:[%s1186_s2 + $0x8] sm:$0xff]  ;;  %v199_v53 = vld [vmem:[%s1186_s2 + $0x10] sm:$0xff]  ;;  %v23_v54 = vld [vmem:[%s1185_s0 + $0x18] sm:$0xff]  ;;  %v889_v16 = vmov 0.0  }
   0xe   :  { %867 = vmatpush3.bf16.msra.mxu1 %v864_v17  ;;  %837 = vmatprep.subr.bf16.mxu0 %v836_v22  ;;  %v200_v55 = vld [vmem:[%s1186_s2 + $0x18] sm:$0xff]  ;;  %v24_v56 = vld [vmem:[%s1185_s0 + $0x20] sm:$0xff]  ;;  %v25_v58 = vld [vmem:[%s1185_s0 + $0x28] sm:$0xff]  ;;  %394 = vst [vmem:[%s1187_s5] sm:$0x3] %v889_v16 }
   0xf   :  { %869 = vmatprep.subr.bf16.mxu1 %v868_v23  ;;  %v201_v57 = vld [vmem:[%s1186_s2 + $0x20] sm:$0xff]  ;;  %v202_v59 = vld [vmem:[%s1186_s2 + $0x28] sm:$0xff]  ;;  %v26_v60 = vld [vmem:[%s1185_s0 + $0x30] sm:$0xff]  ;;  %395 = vst [vmem:[%s1188_s6] sm:$0x3] %v889_v16 }
  0x10   :  { %v203_v61 = vld [vmem:[%s1186_s2 + $0x30] sm:$0xff]  ;;  %v27_v62 = vld [vmem:[%s1185_s0 + $0x38] sm:$0xff]  ;;  %v28_v0 = vld [vmem:[%s1185_s0 + $0x40] sm:$0xff] }
  0x11   :  { %839 = vmatpush3.bf16.msra.mxu0 %v836_v22  ;;  %v204_v63 = vld [vmem:[%s1186_s2 + $0x38] sm:$0xff]  ;;  %v205_v1 = vld [vmem:[%s1186_s2 + $0x40] sm:$0xff]  ;;  %v29_v2 = vld [vmem:[%s1185_s0 + $0x48] sm:$0xff] }
  0x12   :  { %871 = vmatpush3.bf16.msra.mxu1 %v868_v23  ;;  %841 = vmatprep.subr.bf16.mxu0 %v840_v30  ;;  %v206_v3 = vld [vmem:[%s1186_s2 + $0x48] sm:$0xff]  ;;  %v30_v4 = vld [vmem:[%s1185_s0 + $0x50] sm:$0xff]  ;;  %v31_v6 = vld [vmem:[%s1185_s0 + $0x58] sm:$0xff] }
  0x13   :  { %873 = vmatprep.subr.bf16.mxu1 %v872_v31  ;;  %v207_v5 = vld [vmem:[%s1186_s2 + $0x50] sm:$0xff]  ;;  %v208_v7 = vld [vmem:[%s1186_s2 + $0x58] sm:$0xff]  ;;  %v32_v8 = vld [vmem:[%s1185_s0 + $0x60] sm:$0xff] }
  0x14   :  { %v209_v9 = vld [vmem:[%s1186_s2 + $0x60] sm:$0xff]  ;;  %v33_v10 = vld [vmem:[%s1185_s0 + $0x68] sm:$0xff]  ;;  %v34_v12 = vld [vmem:[%s1185_s0 + $0x70] sm:$0xff] }
  0x15   :  { %843 = vmatpush3.bf16.msra.mxu0 %v840_v30  ;;  %v210_v11 = vld [vmem:[%s1186_s2 + $0x68] sm:$0xff]  ;;  %v211_v13 = vld [vmem:[%s1186_s2 + $0x70] sm:$0xff]  ;;  %v35_v14 = vld [vmem:[%s1185_s0 + $0x78] sm:$0xff] }
  0x16   :  { %875 = vmatpush3.bf16.msra.mxu1 %v872_v31  ;;  %845 = vmatprep.subr.bf16.mxu0 %v844_v36  ;;  %v212_v15 = vld [vmem:[%s1186_s2 + $0x78] sm:$0xff] }
  0x17   :  { %877 = vmatprep.subr.bf16.mxu1 %v876_v37 }
  0x19   :  { %847 = vmatpush3.bf16.msra.mxu0 %v844_v36 }
  0x1a   :  { %879 = vmatpush3.bf16.msra.mxu1 %v876_v37  ;;  %849 = vmatprep.subr.bf16.mxu0 %v848_v42 }
  0x1b   :  { %881 = vmatprep.subr.bf16.mxu1 %v880_v43 }
  0x1d   :  { %851 = vmatpush3.bf16.msra.mxu0 %v848_v42 }
  0x1e   :  { %883 = vmatpush3.bf16.msra.mxu1 %v880_v43  ;;  %853 = vmatprep.subr.bf16.mxu0 %v852_v48 }
  0x1f   :  { %885 = vmatprep.subr.bf16.mxu1 %v884_v49 }
  0x21   :  { %855 = vmatpush3.bf16.msra.mxu0 %v852_v48 }
  0x22   :  { %887 = vmatpush3.bf16.msra.mxu1 %v884_v49 }
  0x24   :  { %745 = vmatmul.mubr.f32.vlgmr.msra.gmra.mrb[0].mxu0 %v21_v50 }
  0x25   :  { %801 = vmatmul.mubr.f32.vlgmr.msra.gmra.mrb[0].mxu1 %v198_v51  ;;  %747 = vmatprep.mubr.f32.mxu0 %v22_v52 }
  0x26   :  { %803 = vmatprep.mubr.f32.mxu1 %v199_v53 }
  0x28   :  { %748 = vmatmul.mubr.f32.gmra.mrb[2].mxu0 %v23_v54 }
  0x29   :  { %804 = vmatmul.mubr.f32.gmra.mrb[2].mxu1 %v200_v55  ;;  %750 = vmatprep.mubr.f32.mxu0 %v24_v56 }
  0x2a   :  { %806 = vmatprep.mubr.f32.mxu1 %v201_v57 }
  0x2c   :  { %751 = vmatmul.mubr.f32.gmra.mrb[4].mxu0 %v25_v58 }
  0x2d   :  { %807 = vmatmul.mubr.f32.gmra.mrb[4].mxu1 %v202_v59  ;;  %753 = vmatprep.mubr.f32.mxu0 %v26_v60 }
  0x2e   :  { %809 = vmatprep.mubr.f32.mxu1 %v203_v61 }
  0x30   :  { %754 = vmatmul.mubr.f32.gmra.mrb[6].mxu0 %v27_v62 }
  0x31   :  { %810 = vmatmul.mubr.f32.gmra.mrb[6].mxu1 %v204_v63  ;;  %756 = vmatprep.mubr.f32.mxu0 %v28_v0 }
  0x32   :  { %812 = vmatprep.mubr.f32.mxu1 %v205_v1 }
  0x34   :  { %757 = vmatmul.mubr.f32.gmra.mrb[8].mxu0 %v29_v2 }
  0x35   :  { %813 = vmatmul.mubr.f32.gmra.mrb[8].mxu1 %v206_v3  ;;  %759 = vmatprep.mubr.f32.mxu0 %v30_v4 }
  0x36   :  { %815 = vmatprep.mubr.f32.mxu1 %v207_v5 }
  0x38   :  { %760 = vmatmul.mubr.f32.gmra.mrb[10].mxu0 %v31_v6 }
  0x39   :  { %816 = vmatmul.mubr.f32.gmra.mrb[10].mxu1 %v208_v7  ;;  %762 = vmatprep.mubr.f32.mxu0 %v32_v8 }
  0x3a   :  { %818 = vmatprep.mubr.f32.mxu1 %v209_v9 }
  0x3c   :  { %763 = vmatmul.mubr.f32.gmra.mrb[12].mxu0 %v33_v10 }
  0x3d   :  { %819 = vmatmul.mubr.f32.gmra.mrb[12].mxu1 %v210_v11  ;;  %765 = vmatprep.mubr.f32.mxu0 %v34_v12 }
  0x3e   :  { %821 = vmatprep.mubr.f32.mxu1 %v211_v13 }
  0x40   :  { %766 = vmatmul.mubr.f32.gmra.mrb[14].mxu0 %v35_v14 }
  0x41   :  { %822 = vmatmul.mubr.f32.gmra.mrb[14].mxu1 %v212_v15 }
  0xf7   :  { %v746_v17 = vpop.f32.mrb[0].mxu0 }
  0xf8   :  { %375 = vst [vmem:[%s1189_s4 + $0x8] sm:$0xff] %v746_v17  ;;  %v534_v18 = vmul.f32 %v746_v17, %v746_v17  ;;  %v802_v19 = vpop.f32.mrb[0].mxu1  ;;  %v118_v20 = vpop.f32.mrb[1].mxu0 }
  0xf9   :  { %v597_v21 = vmul.f32 %v802_v19, %v802_v19  ;;  %374 = vst [vmem:[%s1189_s4] sm:$0xff] %v118_v20  ;;  %v512_v22 = vadd.f32 %v746_v17, %v118_v20  ;;  %v533_v23 = vmul.f32 %v118_v20, %v118_v20  ;;  %v295_v24 = vpop.f32.mrb[1].mxu1 }
  0xfa   :  { %v575_v25 = vadd.f32 %v802_v19, %v295_v24  ;;  %v596_v26 = vmul.f32 %v295_v24, %v295_v24 }
  0xfb   :  { %v549_v27 = vadd.f32 %v534_v18, %v533_v23  ;;  %v749_v28 = vpop.f32.mrb[2].mxu0 }
  0xfc   :  { %v612_v29 = vadd.f32 %v597_v21, %v596_v26  ;;  %377 = vst [vmem:[%s1189_s4 + $0x18] sm:$0xff] %v749_v28  ;;  %v805_v30 = vpop.f32.mrb[2].mxu1  ;;  %v128_v31 = vpop.f32.mrb[3].mxu0  ;;  %v536_v37 = vmul.f32 %v749_v28, %v749_v28 }
  0xfd   :  { %376 = vst [vmem:[%s1189_s4 + $0x10] sm:$0xff] %v128_v31  ;;  %v513_v32 = vadd.f32 %v512_v22, %v128_v31  ;;  %v535_v33 = vmul.f32 %v128_v31, %v128_v31  ;;  %v305_v34 = vpop.f32.mrb[3].mxu1  ;;  %v599_v41 = vmul.f32 %v805_v30, %v805_v30 }
  0xfe   :  { %v576_v35 = vadd.f32 %v575_v25, %v305_v34  ;;  %v598_v36 = vmul.f32 %v305_v34, %v305_v34 }
  0xff   :  { %v550_v38 = vadd.f32 %v549_v27, %v535_v33  ;;  %v752_v39 = vpop.f32.mrb[4].mxu0  ;;  %v514_v40 = vadd.f32 %v749_v28, %v513_v32 }
 0x100   :  { %v613_v42 = vadd.f32 %v612_v29, %v598_v36  ;;  %379 = vst [vmem:[%s1189_s4 + $0x28] sm:$0xff] %v752_v39  ;;  %v808_v43 = vpop.f32.mrb[4].mxu1  ;;  %v138_v44 = vpop.f32.mrb[5].mxu0  ;;  %v577_v45 = vadd.f32 %v805_v30, %v576_v35  ;;  %v538_v53 = vmul.f32 %v752_v39, %v752_v39 }
 0x101   :  { %378 = vst [vmem:[%s1189_s4 + $0x20] sm:$0xff] %v138_v44  ;;  %v515_v46 = vadd.f32 %v514_v40, %v138_v44  ;;  %v537_v47 = vmul.f32 %v138_v44, %v138_v44  ;;  %v551_v48 = vadd.f32 %v550_v38, %v536_v37  ;;  %v315_v49 = vpop.f32.mrb[5].mxu1  ;;  %v601_v57 = vmul.f32 %v808_v43, %v808_v43 }
 0x102   :  { %v578_v50 = vadd.f32 %v577_v45, %v315_v49  ;;  %v600_v51 = vmul.f32 %v315_v49, %v315_v49  ;;  %v614_v52 = vadd.f32 %v613_v42, %v599_v41 }
 0x103   :  { %v552_v54 = vadd.f32 %v551_v48, %v537_v47  ;;  %v755_v55 = vpop.f32.mrb[6].mxu0  ;;  %v516_v56 = vadd.f32 %v752_v39, %v515_v46 }
 0x104   :  { %v615_v58 = vadd.f32 %v614_v52, %v600_v51  ;;  %381 = vst [vmem:[%s1189_s4 + $0x38] sm:$0xff] %v755_v55  ;;  %v811_v59 = vpop.f32.mrb[6].mxu1  ;;  %v148_v60 = vpop.f32.mrb[7].mxu0  ;;  %v579_v61 = vadd.f32 %v808_v43, %v578_v50  ;;  %v540_v5 = vmul.f32 %v755_v55, %v755_v55 }
 0x105   :  { %380 = vst [vmem:[%s1189_s4 + $0x30] sm:$0xff] %v148_v60  ;;  %v517_v62 = vadd.f32 %v516_v56, %v148_v60  ;;  %v539_v63 = vmul.f32 %v148_v60, %v148_v60  ;;  %v553_v0 = vadd.f32 %v552_v54, %v538_v53  ;;  %v325_v1 = vpop.f32.mrb[7].mxu1  ;;  %v603_v9 = vmul.f32 %v811_v59, %v811_v59 }
 0x106   :  { %v580_v2 = vadd.f32 %v579_v61, %v325_v1  ;;  %v602_v3 = vmul.f32 %v325_v1, %v325_v1  ;;  %v616_v4 = vadd.f32 %v615_v58, %v601_v57 }
 0x107   :  { %v554_v6 = vadd.f32 %v553_v0, %v539_v63  ;;  %v758_v7 = vpop.f32.mrb[8].mxu0  ;;  %v518_v8 = vadd.f32 %v755_v55, %v517_v62 }
 0x108   :  { %v617_v10 = vadd.f32 %v616_v4, %v602_v3  ;;  %383 = vst [vmem:[%s1189_s4 + $0x48] sm:$0xff] %v758_v7  ;;  %v814_v11 = vpop.f32.mrb[8].mxu1  ;;  %v158_v12 = vpop.f32.mrb[9].mxu0  ;;  %v581_v13 = vadd.f32 %v811_v59, %v580_v2  ;;  %v542_v21 = vmul.f32 %v758_v7, %v758_v7 }
 0x109   :  { %382 = vst [vmem:[%s1189_s4 + $0x40] sm:$0xff] %v158_v12  ;;  %v519_v14 = vadd.f32 %v518_v8, %v158_v12  ;;  %v541_v15 = vmul.f32 %v158_v12, %v158_v12  ;;  %v555_v16 = vadd.f32 %v554_v6, %v540_v5  ;;  %v335_v17 = vpop.f32.mrb[9].mxu1  ;;  %v605_v25 = vmul.f32 %v814_v11, %v814_v11 }
 0x10a   :  { %v582_v18 = vadd.f32 %v581_v13, %v335_v17  ;;  %v604_v19 = vmul.f32 %v335_v17, %v335_v17  ;;  %v618_v20 = vadd.f32 %v617_v10, %v603_v9 }
 0x10b   :  { %v556_v22 = vadd.f32 %v555_v16, %v541_v15  ;;  %v761_v23 = vpop.f32.mrb[10].mxu0  ;;  %v520_v24 = vadd.f32 %v758_v7, %v519_v14 }
 0x10c   :  { %v619_v26 = vadd.f32 %v618_v20, %v604_v19  ;;  %385 = vst [vmem:[%s1189_s4 + $0x58] sm:$0xff] %v761_v23  ;;  %v817_v27 = vpop.f32.mrb[10].mxu1  ;;  %v168_v28 = vpop.f32.mrb[11].mxu0  ;;  %v583_v29 = vadd.f32 %v814_v11, %v582_v18  ;;  %v544_v37 = vmul.f32 %v761_v23, %v761_v23 }
 0x10d   :  { %384 = vst [vmem:[%s1189_s4 + $0x50] sm:$0xff] %v168_v28  ;;  %v521_v30 = vadd.f32 %v520_v24, %v168_v28  ;;  %v543_v31 = vmul.f32 %v168_v28, %v168_v28  ;;  %v557_v32 = vadd.f32 %v556_v22, %v542_v21  ;;  %v345_v33 = vpop.f32.mrb[11].mxu1  ;;  %v607_v41 = vmul.f32 %v817_v27, %v817_v27 }
 0x10e   :  { %v584_v34 = vadd.f32 %v583_v29, %v345_v33  ;;  %v606_v35 = vmul.f32 %v345_v33, %v345_v33  ;;  %v620_v36 = vadd.f32 %v619_v26, %v605_v25  ;;  %v511_v33 = vld [vmem:[%s1187_s5] sm:$0x3] }
 0x10f   :  { %v558_v38 = vadd.f32 %v557_v32, %v543_v31  ;;  %v764_v39 = vpop.f32.mrb[12].mxu0  ;;  %v522_v40 = vadd.f32 %v761_v23, %v521_v30 }
 0x110   :  { %v621_v42 = vadd.f32 %v620_v36, %v606_v35  ;;  %387 = vst [vmem:[%s1189_s4 + $0x68] sm:$0xff] %v764_v39  ;;  %v820_v43 = vpop.f32.mrb[12].mxu1  ;;  %v178_v44 = vpop.f32.mrb[13].mxu0  ;;  %v585_v45 = vadd.f32 %v817_v27, %v584_v34  ;;  %v546_v53 = vmul.f32 %v764_v39, %v764_v39  ;;  %v574_v36 = vld [vmem:[%s1188_s6] sm:$0x3] }
 0x111   :  { %386 = vst [vmem:[%s1189_s4 + $0x60] sm:$0xff] %v178_v44  ;;  %v523_v46 = vadd.f32 %v522_v40, %v178_v44  ;;  %v545_v47 = vmul.f32 %v178_v44, %v178_v44  ;;  %v559_v48 = vadd.f32 %v558_v38, %v544_v37  ;;  %v355_v49 = vpop.f32.mrb[13].mxu1  ;;  %v609_v57 = vmul.f32 %v820_v43, %v820_v43 }
 0x112   :  { %v586_v50 = vadd.f32 %v585_v45, %v355_v49  ;;  %v608_v51 = vmul.f32 %v355_v49, %v355_v49  ;;  %v622_v52 = vadd.f32 %v621_v42, %v607_v41 }
 0x113   :  { %v560_v54 = vadd.f32 %v559_v48, %v545_v47  ;;  %v767_v55 = vpop.f32.mrb[14].mxu0  ;;  %v524_v56 = vadd.f32 %v764_v39, %v523_v46 }
 0x114   :  { %v623_v58 = vadd.f32 %v622_v52, %v608_v51  ;;  %389 = vst [vmem:[%s1189_s4 + $0x78] sm:$0xff] %v767_v55  ;;  %v823_v59 = vpop.f32.mrb[14].mxu1  ;;  %v188_v60 = vpop.f32.mrb[15].mxu0  ;;  %v587_v61 = vadd.f32 %v820_v43, %v586_v50  ;;  %v548_v5 = vmul.f32 %v767_v55, %v767_v55 }
 0x115   :  { %388 = vst [vmem:[%s1189_s4 + $0x70] sm:$0xff] %v188_v60  ;;  %v525_v62 = vadd.f32 %v524_v56, %v188_v60  ;;  %v547_v63 = vmul.f32 %v188_v60, %v188_v60  ;;  %v561_v0 = vadd.f32 %v560_v54, %v546_v53  ;;  %v365_v1 = vpop.f32.mrb[15].mxu1  ;;  %v611_v8 = vmul.f32 %v823_v59, %v823_v59 }
 0x116   :  { %v588_v2 = vadd.f32 %v587_v61, %v365_v1  ;;  %v610_v3 = vmul.f32 %v365_v1, %v365_v1  ;;  %v624_v4 = vadd.f32 %v623_v58, %v609_v57 }
 0x117   :  { %v526_v6 = vadd.f32 %v767_v55, %v525_v62  ;;  %v562_v7 = vadd.f32 %v561_v0, %v547_v63 }
 0x118   :  { %v589_v9 = vadd.f32 %v823_v59, %v588_v2  ;;  %v625_v10 = vadd.f32 %v624_v4, %v610_v3 }
 0x119   :  { %v527_v11 = vrot.slane %v526_v6, 4  ;;  %v563_v12 = vadd.f32 %v562_v7, %v548_v5 }
 0x11a   :  { %v590_v13 = vrot.slane %v589_v9, 4  ;;  %v626_v14 = vadd.f32 %v625_v10, %v611_v8 }
 0x11b   :  { %v528_v15 = vadd.f32 %v527_v11, %v526_v6  ;;  %v564_v16 = vrot.slane %v563_v12, 4 }
 0x11c   :  { %v591_v17 = vadd.f32 %v590_v13, %v589_v9  ;;  %v627_v18 = vrot.slane %v626_v14, 4 }
 0x11d   :  { %v529_v19 = vrot.slane %v528_v15, 2  ;;  %v565_v20 = vadd.f32 %v564_v16, %v563_v12 }
 0x11e   :  { %v592_v21 = vrot.slane %v591_v17, 2  ;;  %v628_v22 = vadd.f32 %v627_v18, %v626_v14 }
 0x11f   :  { %v530_v23 = vadd.f32 %v529_v19, %v528_v15  ;;  %v566_v24 = vrot.slane %v565_v20, 2 }
 0x120   :  { %v593_v25 = vadd.f32 %v592_v21, %v591_v17  ;;  %v629_v26 = vrot.slane %v628_v22, 2 }
 0x121   :  { %v531_v27 = vrot.slane %v530_v23, 1  ;;  %v567_v28 = vadd.f32 %v566_v24, %v565_v20 }
 0x122   :  { %v594_v29 = vrot.slane %v593_v25, 1  ;;  %v630_v30 = vadd.f32 %v629_v26, %v628_v22 }
 0x123   :  { %v568_v31 = vrot.slane %v567_v28, 1  ;;  %v532_v34 = vadd.f32 %v531_v27, %v530_v23 }
 0x124   :  { %v631_v32 = vrot.slane %v630_v30, 1  ;;  %v595_v37 = vadd.f32 %v594_v29, %v593_v25 }
 0x125   :  { %v569_v35 = vadd.f32 %v568_v31, %v567_v28 }
 0x126   :  { %v632_v38 = vadd.f32 %v631_v32, %v630_v30 }
 0x127   :  { %v571_v39 = vsel %vm570_vm0, %v532_v34, %v569_v35 }
 0x128   :  { %v572_v40 = vadd.f32 %v571_v39, %v511_v33  ;;  %v633_v41 = vsel %vm570_vm0, %v595_v37, %v632_v38 }
 0x129   :  { %v634_v42 = vadd.f32 %v633_v41, %v574_v36 }
 0x12a   :  { %573 = vst [vmem:[%s1187_s5] sm:$0x3] %v572_v40 }
 0x12b   :  { %635 = vst [vmem:[%s1188_s6] sm:$0x3] %v634_v42 }

// kernel: res_bottleneck_block.11
= control target key start
LH: loop header
LB: loop body
LE: loop exit
PB: predicated region body
PF: predicated region fallthrough
CT: control target
= control target key end

     0   :  { %v58_v49 = vlaneseq  ;;  %s1049_s5 = inlined_call_operand.vmem [shape: f32[128,128], index: 5, kind: input, shape index: {}]   ;;  %s1050_s4 = inlined_call_operand.vmem [shape: f32[128,128], index: 4, kind: input, shape index: {}]   ;;  %s1051_s1 = inlined_call_operand.vmem [shape: f32[2,128], index: 1, kind: input, shape index: {}]   ;;  %s1052_s6 = inlined_call_operand.vmem [shape: f32[2,128], index: 6, kind: input, shape index: {}]   ;;  %s1053_s2 = inlined_call_operand.vmem [shape: f32[1,128], index: 2, kind: input, shape index: {}]   ;;  %s1054_s0 = inlined_call_operand.vmem [shape: f32[128,128], index: 0, kind: input, shape index: {}]   ;;  %s1055_s3 = inlined_call_operand.vmem [shape: f32[1,128], index: 3, kind: input, shape index: {}]   ;;  %s1056_s7 = inlined_call_operand.vmem [shape: f32[1,128], index: 7, kind: input, shape index: {}]   ;;  %s1057_s8 = inlined_call_operand.vmem [shape: f32[1,128], index: 8, kind: input, shape index: {}]   ;;  %s1058_s9 = inlined_call_operand.vmem [shape: f32[128,128], index: 9, kind: output, shape index: {}]  }
   0x1   :  { %v161_v0 = vld [vmem:[%s1049_s5] sm:$0xff]  ;;  %v162_v1 = vld [vmem:[%s1049_s5 + $0x8] sm:$0xff]  ;;  %v163_v2 = vld [vmem:[%s1049_s5 + $0x10] sm:$0xff] }
   0x2   :  { %v547_v3 = vpack.c.bf16 %v162_v1, %v161_v0  ;;  %v164_v4 = vld [vmem:[%s1049_s5 + $0x18] sm:$0xff]  ;;  %v165_v6 = vld [vmem:[%s1049_s5 + $0x20] sm:$0xff]  ;;  %v166_v7 = vld [vmem:[%s1049_s5 + $0x28] sm:$0xff]  ;;  %v751_v51 = vshrl.u32 %v58_v49, 7 }
   0x3   :  { %v551_v5 = vpack.c.bf16 %v164_v4, %v163_v2  ;;  %v555_v8 = vpack.c.bf16 %v166_v7, %v165_v6  ;;  %v145_v9 = vld [vmem:[%s1050_s4] sm:$0xff]  ;;  %v167_v11 = vld [vmem:[%s1049_s5 + $0x30] sm:$0xff]  ;;  %v168_v12 = vld [vmem:[%s1049_s5 + $0x38] sm:$0xff] }
   0x4   :  { %548 = vmatprep.subr.bf16.mxu0 %v547_v3  ;;  %579 = vmatprep.subr.bf16.mxu1 %v547_v3  ;;  %v153_v10 = vld [vmem:[%s1050_s4 + $0x40] sm:$0xff]  ;;  %v559_v13 = vpack.c.bf16 %v168_v12, %v167_v11  ;;  %v170_v15 = vld [vmem:[%s1049_s5 + $0x48] sm:$0xff]  ;;  %v171_v17 = vld [vmem:[%s1049_s5 + $0x50] sm:$0xff]  ;;  %v60_v53 = vsub.s32 0, %v751_v51  ;;  %v89_v59 = vsub.s32 1, %v751_v51 }
   0x5   :  { %550 = vmatpush3.bf16.msra.mxu0 %v547_v3  ;;  %587 = vmatpush3.bf16.msra.mxu1 %v547_v3  ;;  %v169_v14 = vld [vmem:[%s1049_s5 + $0x40] sm:$0xff]  ;;  %v172_v18 = vld [vmem:[%s1049_s5 + $0x58] sm:$0xff]  ;;  %v174_v21 = vld [vmem:[%s1049_s5 + $0x68] sm:$0xff] }
   0x6   :  { %552 = vmatprep.subr.bf16.mxu0 %v551_v5  ;;  %580 = vmatprep.subr.bf16.mxu1 %v551_v5  ;;  %v563_v16 = vpack.c.bf16 %v170_v15, %v169_v14  ;;  %v567_v19 = vpack.c.bf16 %v172_v18, %v171_v17  ;;  %v173_v20 = vld [vmem:[%s1049_s5 + $0x60] sm:$0xff]  ;;  %v175_v23 = vld [vmem:[%s1049_s5 + $0x70] sm:$0xff]  ;;  %v176_v24 = vld [vmem:[%s1049_s5 + $0x78] sm:$0xff] }
   0x7   :  { %523 = vmatprep.mubr.f32.mxu0 %v145_v9  ;;  %535 = vmatprep.mubr.f32.mxu1 %v153_v10  ;;  %v571_v22 = vpack.c.bf16 %v174_v21, %v173_v20  ;;  %v575_v25 = vpack.c.bf16 %v176_v24, %v175_v23  ;;  %v146_v26 = vld [vmem:[%s1050_s4 + $0x8] sm:$0xff]  ;;  %v147_v28 = vld [vmem:[%s1050_s4 + $0x10] sm:$0xff]  ;;  %v148_v30 = vld [vmem:[%s1050_s4 + $0x18] sm:$0xff] }
   0x8   :  { %v154_v27 = vld [vmem:[%s1050_s4 + $0x48] sm:$0xff]  ;;  %v155_v29 = vld [vmem:[%s1050_s4 + $0x50] sm:$0xff]  ;;  %v156_v31 = vld [vmem:[%s1050_s4 + $0x58] sm:$0xff] }
   0x9   :  { %554 = vmatpush3.bf16.msra.mxu0 %v551_v5  ;;  %588 = vmatpush3.bf16.msra.mxu1 %v551_v5  ;;  %v149_v32 = vld [vmem:[%s1050_s4 + $0x20] sm:$0xff]  ;;  %v150_v34 = vld [vmem:[%s1050_s4 + $0x28] sm:$0xff]  ;;  %v151_v36 = vld [vmem:[%s1050_s4 + $0x30] sm:$0xff] }
   0xa   :  { %556 = vmatprep.subr.bf16.mxu0 %v555_v8  ;;  %581 = vmatprep.subr.bf16.mxu1 %v555_v8  ;;  %v157_v33 = vld [vmem:[%s1050_s4 + $0x60] sm:$0xff]  ;;  %v158_v35 = vld [vmem:[%s1050_s4 + $0x68] sm:$0xff]  ;;  %v159_v37 = vld [vmem:[%s1050_s4 + $0x70] sm:$0xff] }
   0xb   :  { %v152_v38 = vld [vmem:[%s1050_s4 + $0x38] sm:$0xff]  ;;  %v48_v40 = vld [vmem:[%s1051_s1] sm:$0x3]  ;;  %v33_v61 = vld [vmem:[%s1054_s0 + $0x8] sm:$0xff] }
   0xc   :  { %v160_v39 = vld [vmem:[%s1050_s4 + $0x78] sm:$0xff]  ;;  %v51_v41 = vmul.f32 0.0078125, %v48_v40  ;;  %v322_v46 = vld [vmem:[%s1052_s6] sm:$0x3]  ;;  %v41_v3 = vld [vmem:[%s1054_s0 + $0x48] sm:$0xff] }
   0xd   :  { %558 = vmatpush3.bf16.msra.mxu0 %v555_v8  ;;  %589 = vmatpush3.bf16.msra.mxu1 %v555_v8  ;;  %v325_v48 = vmul.f32 0.0078125, %v322_v46  ;;  %v455_v56 = vld [vmem:[%s1053_s2] ss:$0 sm:$0xff]  ;;  %v35_v7 = vld [vmem:[%s1054_s0 + $0x18] sm:$0xff]  ;;  %v34_v10 = vld [vmem:[%s1054_s0 + $0x10] sm:$0xff] }
   0xe   :  { %560 = vmatprep.subr.bf16.mxu0 %v559_v13  ;;  %582 = vmatprep.subr.bf16.mxu1 %v559_v13  ;;  %v52_v42 = vmul.f32 %v51_v41, %v51_v41  ;;  %v757_v57 = vrot.slane %v51_v41, %v60_v53  ;;  %v772_v2 = vld [vmem:[%s1055_s3] ss:$0 sm:$0xff]  ;;  %v43_v8 = vld [vmem:[%s1054_s0 + $0x58] sm:$0xff]  ;;  %v42_v11 = vld [vmem:[%s1054_s0 + $0x50] sm:$0xff] }
   0xf   :  { %v326_v50 = vmul.f32 %v325_v48, %v325_v48  ;;  %v32_v4 = vld [vmem:[%s1054_s0] sm:$0xff]  ;;  %v37_v14 = vld [vmem:[%s1054_s0 + $0x28] sm:$0xff]  ;;  %v39_v23 = vld [vmem:[%s1054_s0 + $0x38] sm:$0xff] }
  0x10   :  { %v54_v43 = vrot.slane %v52_v42, 7  ;;  %v63_v62 = vsub.f32 %v33_v61, %v757_v57  ;;  %v40_v5 = vld [vmem:[%s1054_s0 + $0x40] sm:$0xff]  ;;  %v71_v9 = vsub.f32 %v41_v3, %v757_v57  ;;  %v62_v12 = vsub.f32 %v32_v4, %v757_v57  ;;  %v45_v15 = vld [vmem:[%s1054_s0 + $0x68] sm:$0xff]  ;;  %v47_v24 = vld [vmem:[%s1054_s0 + $0x78] sm:$0xff] }
  0x11   :  { %562 = vmatpush3.bf16.msra.mxu0 %v559_v13  ;;  %590 = vmatpush3.bf16.msra.mxu1 %v559_v13  ;;  %v328_v52 = vrot.slane %v326_v50, 7  ;;  %v70_v13 = vsub.f32 %v40_v5, %v757_v57  ;;  %v73_v17 = vsub.f32 %v43_v8, %v757_v57  ;;  %v36_v18 = vld [vmem:[%s1054_s0 + $0x20] sm:$0xff]  ;;  %v64_v21 = vsub.f32 %v34_v10, %v757_v57 }
  0x12   :  { %564 = vmatprep.subr.bf16.mxu0 %v563_v16  ;;  %583 = vmatprep.subr.bf16.mxu1 %v563_v16  ;;  %v56_v44 = vsub.f32 %v51_v41, %v54_v43  ;;  %v77_v40 = vsub.f32 %v47_v24, %v757_v57  ;;  %v921_v24 = vld [vmem:[%s1057_s8] ss:$0 sm:$0xff] }
  0x13   :  { %v330_v54 = vsub.f32 %v325_v48, %v328_v52 }
  0x14   :  { %v57_v45 = vmax.f32 %v56_v44, 0.0 }
  0x15   :  { %566 = vmatpush3.bf16.msra.mxu0 %v563_v16  ;;  %591 = vmatpush3.bf16.msra.mxu1 %v563_v16  ;;  %v331_v60 = vmax.f32 %v330_v54, 0.0  ;;  %v65_v16 = vsub.f32 %v35_v7, %v757_v57 }
  0x16   :  { %568 = vmatprep.subr.bf16.mxu0 %v567_v19  ;;  %584 = vmatprep.subr.bf16.mxu1 %v567_v19  ;;  %v78_v47 = vadd.f32 1e-05, %v57_v45 }
  0x17   :  { %v352_v0 = vadd.f32 1e-05, %v331_v60 }
  0x18   :  { %595 = vrsqrt.f32 %v78_v47 }
  0x19   :  { %570 = vmatpush3.bf16.msra.mxu0 %v567_v19  ;;  %592 = vmatpush3.bf16.msra.mxu1 %v567_v19  ;;  %597 = vrsqrt.f32 %v352_v0  ;;  %v44_v19 = vld [vmem:[%s1054_s0 + $0x60] sm:$0xff] }
  0x1a   :  { %572 = vmatprep.subr.bf16.mxu0 %v571_v22  ;;  %585 = vmatprep.subr.bf16.mxu1 %v571_v22 }
  0x1d   :  { %574 = vmatpush3.bf16.msra.mxu0 %v571_v22  ;;  %593 = vmatpush3.bf16.msra.mxu1 %v571_v22  ;;  %v72_v22 = vsub.f32 %v42_v11, %v757_v57 }
  0x1e   :  { %576 = vmatprep.subr.bf16.mxu0 %v575_v25  ;;  %586 = vmatprep.subr.bf16.mxu1 %v575_v25 }
  0x21   :  { %578 = vmatpush3.bf16.msra.mxu0 %v575_v25  ;;  %594 = vmatpush3.bf16.msra.mxu1 %v575_v25  ;;  %v824_v25 = vrot.slane %v325_v48, %v60_v53 }
  0x22   :  { %v596_v55 = vpop.eup %595 }
  0x23   :  { %v86_v58 = vmul.f32 %v596_v55, %v455_v56 }
  0x24   :  { %524 = vmatmul.mubr.f32.vlgmr.msra.gmra.mrb[0].mxu0 %v146_v26  ;;  %536 = vmatmul.mubr.f32.vlgmr.msra.gmra.mrb[0].mxu1 %v154_v27  ;;  %v67_v27 = vsub.f32 %v37_v14, %v757_v57 }
  0x25   :  { %526 = vmatprep.mubr.f32.mxu0 %v147_v28  ;;  %538 = vmatprep.mubr.f32.mxu1 %v155_v29  ;;  %v766_v63 = vrot.slane %v86_v58, %v89_v59  ;;  %v75_v28 = vsub.f32 %v45_v15, %v757_v57  ;;  %v38_v29 = vld [vmem:[%s1054_s0 + $0x30] sm:$0xff] }
  0x26   :  { %v68_v43 = vsub.f32 %v38_v29, %v757_v57 }
  0x27   :  { %v92_v1 = vmul.f32 %v766_v63, %v63_v62  ;;  %v100_v26 = vmul.f32 %v766_v63, %v71_v9  ;;  %v93_v41 = vmul.f32 %v766_v63, %v64_v21  ;;  %v101_v42 = vmul.f32 %v766_v63, %v72_v22 }
  0x28   :  { %527 = vmatmul.mubr.f32.gmra.mrb[2].mxu0 %v148_v30  ;;  %539 = vmatmul.mubr.f32.gmra.mrb[2].mxu1 %v156_v31  ;;  %v46_v30 = vld [vmem:[%s1054_s0 + $0x70] sm:$0xff]  ;;  %v598_v31 = vpop.eup %597  ;;  %v96_v47 = vmul.f32 %v766_v63, %v67_v27  ;;  %v104_v48 = vmul.f32 %v766_v63, %v75_v28  ;;  %v97_v61 = vmul.f32 %v766_v63, %v68_v43 }
  0x29   :  { %529 = vmatprep.mubr.f32.mxu0 %v149_v32  ;;  %541 = vmatprep.mubr.f32.mxu1 %v157_v33  ;;  %v784_v6 = vadd.f32 %v772_v2, %v92_v1  ;;  %v457_v32 = vld [vmem:[%s1056_s7] ss:$0 sm:$0xff]  ;;  %v91_v33 = vmul.f32 %v766_v63, %v62_v12  ;;  %v76_v44 = vsub.f32 %v46_v30, %v757_v57 }
  0x2a   :  { %v360_v45 = vmul.f32 %v598_v31, %v457_v32  ;;  %v851_v46 = vadd.f32 %v772_v2, %v100_v26  ;;  %v872_v58 = vadd.f32 %v772_v2, %v93_v41  ;;  %v875_v60 = vadd.f32 %v772_v2, %v101_v42 }
  0x2b   :  { %v130_v20 = vmax.f32 %v784_v6, 0.0  ;;  %v856_v49 = vadd.f32 %v772_v2, %v91_v33  ;;  %v105_v62 = vmul.f32 %v766_v63, %v76_v44  ;;  %v885_v3 = vadd.f32 %v772_v2, %v96_v47 }
  0x2c   :  { %530 = vmatmul.mubr.f32.gmra.mrb[4].mxu0 %v150_v34  ;;  %542 = vmatmul.mubr.f32.gmra.mrb[4].mxu1 %v158_v35  ;;  %v99_v34 = vmul.f32 %v766_v63, %v70_v13  ;;  %v66_v35 = vsub.f32 %v36_v18, %v757_v57  ;;  %v881_v0 = vrot.slane %v360_v45, %v89_v59  ;;  %v138_v1 = vmax.f32 %v851_v46, 0.0 }
  0x2d   :  { %532 = vmatprep.mubr.f32.mxu0 %v151_v36  ;;  %544 = vmatprep.mubr.f32.mxu1 %v159_v37  ;;  %v74_v36 = vsub.f32 %v44_v19, %v757_v57  ;;  %v94_v37 = vmul.f32 %v766_v63, %v65_v16  ;;  %v888_v4 = vadd.f32 %v772_v2, %v104_v48  ;;  %v129_v5 = vmax.f32 %v856_v49, 0.0 }
  0x2e   :  { %v859_v50 = vadd.f32 %v772_v2, %v99_v34  ;;  %v95_v52 = vmul.f32 %v766_v63, %v66_v35  ;;  %v131_v13 = vmax.f32 %v872_v58, 0.0  ;;  %v139_v14 = vmax.f32 %v875_v60, 0.0 }
  0x2f   :  { %v103_v53 = vmul.f32 %v766_v63, %v74_v36  ;;  %v864_v54 = vadd.f32 %v772_v2, %v94_v37  ;;  %v909_v15 = vadd.f32 %v772_v2, %v97_v61  ;;  %v912_v16 = vadd.f32 %v772_v2, %v105_v62 }
  0x30   :  { %533 = vmatmul.mubr.f32.gmra.mrb[6].mxu0 %v152_v38  ;;  %545 = vmatmul.mubr.f32.gmra.mrb[6].mxu1 %v160_v39  ;;  %v102_v38 = vmul.f32 %v766_v63, %v73_v17  ;;  %v69_v39 = vsub.f32 %v39_v23, %v757_v57  ;;  %v106_v57 = vmul.f32 %v766_v63, %v77_v40  ;;  %v137_v7 = vmax.f32 %v859_v50, 0.0 }
  0x31   :  { %v893_v8 = vadd.f32 %v772_v2, %v95_v52  ;;  %v132_v51 = vmax.f32 %v864_v54, 0.0  ;;  %v134_v22 = vmax.f32 %v885_v3, 0.0  ;;  %v142_v23 = vmax.f32 %v888_v4, 0.0 }
  0x32   :  { %v867_v55 = vadd.f32 %v772_v2, %v102_v38  ;;  %v98_v56 = vmul.f32 %v766_v63, %v69_v39  ;;  %v896_v63 = vadd.f32 %v772_v2, %v103_v53  ;;  %v904_v10 = vadd.f32 %v772_v2, %v106_v57 }
  0x33   :  { %v133_v27 = vmax.f32 %v893_v8, 0.0  ;;  %v135_v37 = vmax.f32 %v909_v15, 0.0  ;;  %v143_v38 = vmax.f32 %v912_v16, 0.0 }
  0x34   :  { %v140_v59 = vmax.f32 %v867_v55, 0.0  ;;  %v901_v9 = vadd.f32 %v772_v2, %v98_v56  ;;  %v141_v28 = vmax.f32 %v896_v63, 0.0  ;;  %v144_v32 = vmax.f32 %v904_v10, 0.0 }
  0x36   :  { %v136_v31 = vmax.f32 %v901_v9, 0.0 }
  0xf7   :  { %v525_v11 = vpop.f32.mrb[0].mxu0  ;;  %v537_v12 = vpop.f32.mrb[0].mxu1 }
  0xf8   :  { %v337_v17 = vsub.f32 %v525_v11, %v824_v25  ;;  %v345_v18 = vsub.f32 %v537_v12, %v824_v25  ;;  %v243_v19 = vpop.f32.mrb[1].mxu0  ;;  %v283_v21 = vpop.f32.mrb[1].mxu1 }
  0xf9   :  { %v336_v26 = vsub.f32 %v243_v19, %v824_v25  ;;  %v344_v2 = vsub.f32 %v283_v21, %v824_v25 }
  0xfa   :  { %v366_v29 = vmul.f32 %v881_v0, %v337_v17  ;;  %v374_v30 = vmul.f32 %v881_v0, %v345_v18 }
  0xfb   :  { %v365_v33 = vmul.f32 %v881_v0, %v336_v26  ;;  %v373_v34 = vmul.f32 %v881_v0, %v344_v2  ;;  %v528_v35 = vpop.f32.mrb[2].mxu0  ;;  %v540_v36 = vpop.f32.mrb[2].mxu1 }
  0xfc   :  { %v388_v39 = vadd.f32 %v921_v24, %v366_v29  ;;  %v396_v40 = vadd.f32 %v921_v24, %v374_v30  ;;  %v339_v41 = vsub.f32 %v528_v35, %v824_v25  ;;  %v347_v42 = vsub.f32 %v540_v36, %v824_v25  ;;  %v253_v43 = vpop.f32.mrb[3].mxu0  ;;  %v293_v44 = vpop.f32.mrb[3].mxu1 }
  0xfd   :  { %v387_v45 = vadd.f32 %v921_v24, %v365_v33  ;;  %v395_v46 = vadd.f32 %v921_v24, %v373_v34  ;;  %v338_v47 = vsub.f32 %v253_v43, %v824_v25  ;;  %v346_v48 = vsub.f32 %v293_v44, %v824_v25 }
  0xfe   :  { %v404_v49 = vadd.f32 %v388_v39, %v130_v20  ;;  %v412_v50 = vadd.f32 %v396_v40, %v138_v1  ;;  %v368_v52 = vmul.f32 %v881_v0, %v339_v41  ;;  %v376_v53 = vmul.f32 %v881_v0, %v347_v42 }
  0xff   :  { %v403_v56 = vadd.f32 %v387_v45, %v129_v5  ;;  %v411_v57 = vadd.f32 %v395_v46, %v137_v7  ;;  %v367_v61 = vmul.f32 %v881_v0, %v338_v47  ;;  %v375_v62 = vmul.f32 %v881_v0, %v346_v48  ;;  %v531_v11 = vpop.f32.mrb[4].mxu0  ;;  %v543_v12 = vpop.f32.mrb[4].mxu1 }
 0x100   :  { %v420_v17 = vmax.f32 %v404_v49, 0.0  ;;  %v428_v18 = vmax.f32 %v412_v50, 0.0  ;;  %v390_v19 = vadd.f32 %v921_v24, %v368_v52  ;;  %v398_v6 = vadd.f32 %v921_v24, %v376_v53  ;;  %v263_v20 = vpop.f32.mrb[5].mxu0  ;;  %v303_v1 = vpop.f32.mrb[5].mxu1 }
 0x101   :  { %v419_v21 = vmax.f32 %v403_v56, 0.0  ;;  %v427_v26 = vmax.f32 %v411_v57, 0.0  ;;  %v389_v2 = vadd.f32 %v921_v24, %v367_v61  ;;  %v397_v5 = vadd.f32 %v921_v24, %v375_v62 }
 0x102   :  { %436 = vst [vmem:[%s1058_s9 + $0x8] sm:$0xff] %v420_v17  ;;  %444 = vst [vmem:[%s1058_s9 + $0x48] sm:$0xff] %v428_v18  ;;  %v406_v7 = vadd.f32 %v390_v19, %v132_v51  ;;  %v414_v29 = vadd.f32 %v398_v6, %v140_v59  ;;  %v341_v30 = vsub.f32 %v531_v11, %v824_v25 }
 0x103   :  { %v349_v33 = vsub.f32 %v543_v12, %v824_v25  ;;  %435 = vst [vmem:[%s1058_s9] sm:$0xff] %v419_v21  ;;  %443 = vst [vmem:[%s1058_s9 + $0x40] sm:$0xff] %v427_v26  ;;  %v405_v34 = vadd.f32 %v389_v2, %v131_v13  ;;  %v413_v54 = vadd.f32 %v397_v5, %v139_v14  ;;  %v534_v59 = vpop.f32.mrb[6].mxu0  ;;  %v546_v35 = vpop.f32.mrb[6].mxu1 }
 0x104   :  { %v340_v55 = vsub.f32 %v263_v20, %v824_v25  ;;  %v348_v51 = vsub.f32 %v303_v1, %v824_v25  ;;  %v422_v36 = vmax.f32 %v406_v7, 0.0  ;;  %v430_v39 = vmax.f32 %v414_v29, 0.0  ;;  %v273_v42 = vpop.f32.mrb[7].mxu0  ;;  %v313_v43 = vpop.f32.mrb[7].mxu1 }
 0x105   :  { %v370_v40 = vmul.f32 %v881_v0, %v341_v30  ;;  %v378_v41 = vmul.f32 %v881_v0, %v349_v33  ;;  %v421_v44 = vmax.f32 %v405_v34, 0.0  ;;  %v429_v58 = vmax.f32 %v413_v54, 0.0 }
 0x106   :  { %v369_v13 = vmul.f32 %v881_v0, %v340_v55  ;;  %v377_v60 = vmul.f32 %v881_v0, %v348_v51  ;;  %438 = vst [vmem:[%s1058_s9 + $0x18] sm:$0xff] %v422_v36  ;;  %446 = vst [vmem:[%s1058_s9 + $0x58] sm:$0xff] %v430_v39  ;;  %v343_v46 = vsub.f32 %v534_v59, %v824_v25 }
 0x107   :  { %v392_v14 = vadd.f32 %v921_v24, %v370_v40  ;;  %v400_v45 = vadd.f32 %v921_v24, %v378_v41  ;;  %v351_v47 = vsub.f32 %v546_v35, %v824_v25  ;;  %437 = vst [vmem:[%s1058_s9 + $0x10] sm:$0xff] %v421_v44  ;;  %445 = vst [vmem:[%s1058_s9 + $0x50] sm:$0xff] %v429_v58 }
 0x108   :  { %v391_v48 = vadd.f32 %v921_v24, %v369_v13  ;;  %v399_v49 = vadd.f32 %v921_v24, %v377_v60  ;;  %v342_v50 = vsub.f32 %v273_v42, %v824_v25  ;;  %v350_v52 = vsub.f32 %v313_v43, %v824_v25 }
 0x109   :  { %v408_v53 = vadd.f32 %v392_v14, %v134_v22  ;;  %v416_v56 = vadd.f32 %v400_v45, %v142_v23  ;;  %v372_v57 = vmul.f32 %v881_v0, %v343_v46  ;;  %v380_v61 = vmul.f32 %v881_v0, %v351_v47 }
 0x10a   :  { %v407_v62 = vadd.f32 %v391_v48, %v133_v27  ;;  %v415_v11 = vadd.f32 %v399_v49, %v141_v28  ;;  %v371_v12 = vmul.f32 %v881_v0, %v342_v50  ;;  %v379_v25 = vmul.f32 %v881_v0, %v350_v52 }
 0x10b   :  { %v424_v17 = vmax.f32 %v408_v53, 0.0  ;;  %v432_v3 = vmax.f32 %v416_v56, 0.0  ;;  %v394_v22 = vadd.f32 %v921_v24, %v372_v57  ;;  %v402_v4 = vadd.f32 %v921_v24, %v380_v61 }
 0x10c   :  { %v423_v23 = vmax.f32 %v407_v62, 0.0  ;;  %v431_v18 = vmax.f32 %v415_v11, 0.0  ;;  %v393_v19 = vadd.f32 %v921_v24, %v371_v12  ;;  %v401_v8 = vadd.f32 %v921_v24, %v379_v25 }
 0x10d   :  { %440 = vst [vmem:[%s1058_s9 + $0x28] sm:$0xff] %v424_v17  ;;  %448 = vst [vmem:[%s1058_s9 + $0x68] sm:$0xff] %v432_v3  ;;  %v410_v0 = vadd.f32 %v394_v22, %v136_v31  ;;  %v418_v63 = vadd.f32 %v402_v4, %v144_v32 }
 0x10e   :  { %439 = vst [vmem:[%s1058_s9 + $0x20] sm:$0xff] %v423_v23  ;;  %447 = vst [vmem:[%s1058_s9 + $0x60] sm:$0xff] %v431_v18  ;;  %v409_v24 = vadd.f32 %v393_v19, %v135_v37  ;;  %v417_v27 = vadd.f32 %v401_v8, %v143_v38 }
 0x10f   :  { %v426_v28 = vmax.f32 %v410_v0, 0.0  ;;  %v434_v9 = vmax.f32 %v418_v63, 0.0 }
 0x110   :  { %v425_v31 = vmax.f32 %v409_v24, 0.0  ;;  %v433_v6 = vmax.f32 %v417_v27, 0.0 }
 0x111   :  { %442 = vst [vmem:[%s1058_s9 + $0x38] sm:$0xff] %v426_v28  ;;  %450 = vst [vmem:[%s1058_s9 + $0x78] sm:$0xff] %v434_v9 }
 0x112   :  { %441 = vst [vmem:[%s1058_s9 + $0x30] sm:$0xff] %v425_v31  ;;  %449 = vst [vmem:[%s1058_s9 + $0x70] sm:$0xff] %v433_v6 }

</bundles_post_ra>
